<compile_context>
chip_gen: v6e
topology: v6e:2x2x1
jax: 0.10.0
libtpu: 0.0.40
codegen_flags: <defaults>
</compile_context>

<pallas_src>
import math

import jax
import jax.numpy as jnp
from jax.experimental import pallas as pl
from jax.experimental.pallas import tpu as pltpu


# bf16 matmul operands + f32 accumulation (review item).  Use jnp.float32 here
# if exact f32 parity with a PyTorch reference is required.
MATMUL_DTYPE = jnp.bfloat16


# ----------------------------- in-kernel helpers ----------------------------

def _ln(x, g, b, eps=1e-5):
    """LayerNorm over the last axis, f32 math (eps matches nn.Transformer)."""
    mean = jnp.mean(x, axis=-1, keepdims=True)
    cen = x - mean
    var = jnp.mean(cen * cen, axis=-1, keepdims=True)
    return cen * jax.lax.rsqrt(var + eps) * g + b


def _mm(a, b, cd):
    """MXU matmul with cd (bf16/f32) operands and f32 accumulation."""
    return jnp.dot(a.astype(cd), b.astype(cd), preferred_element_type=jnp.float32)


def _mha(q2d, k2d, v2d, mask, wo, bo, num_heads, cd):
    """Multi-head attention for ONE batch element, fully inside the kernel.

    q2d: (Sq, E) f32, k2d/v2d: (Sk, E) f32, mask: None or (Sq, Sk) additive f32,
    wo: (E, E), bo: (1, E).  Heads are split onto a leading batch axis and both
    attention matmuls run as batched einsums (no HxH block-diagonal blowup); the
    head merge is fused with a single (Sq,E)x(E,E) output projection.
    """
    Sq, E = q2d.shape
    Dh = E // num_heads
    q2d = q2d * (1.0 / math.sqrt(Dh))

    qh = jnp.stack([q2d[:, h * Dh:(h + 1) * Dh] for h in range(num_heads)], axis=0)
    kh = jnp.stack([k2d[:, h * Dh:(h + 1) * Dh] for h in range(num_heads)], axis=0)
    vh = jnp.stack([v2d[:, h * Dh:(h + 1) * Dh] for h in range(num_heads)], axis=0)

    s = jnp.einsum('hqd,hkd->hqk', qh.astype(cd), kh.astype(cd),
                   preferred_element_type=jnp.float32)           # (H, Sq, Sk) f32
    if mask is not None:
        s = s + mask[None, :, :]
    s = s - jnp.max(s, axis=-1, keepdims=True)
    p = jnp.exp(s)
    p = p / jnp.sum(p, axis=-1, keepdims=True)                   # exact division (f32)
    o = jnp.einsum('hqk,hkd->hqd', p.astype(cd), vh.astype(cd),
                   preferred_element_type=jnp.float32)           # (H, Sq, Dh)

    o2d = jnp.concatenate([o[h] for h in range(num_heads)], axis=-1)   # (Sq, E)
    return _mm(o2d, wo, cd) + bo


# ------------------------------- Pallas kernels ------------------------------

def _make_encoder_stack_kernel(num_heads, num_layers, cd):
    def kernel(x_ref,
               wqkv_ref, bqkv_ref, wo_ref, bo_ref, ln1g_ref, ln1b_ref,
               ff1w_ref, ff1b_ref, ff2w_ref, ff2b_ref, ln2g_ref, ln2b_ref,
               fng_ref, fnb_ref,
               mem_ref, x_scr):
        l = pl.program_id(1)

        @pl.when(l == 0)
        def _():
            x_scr[...] = x_ref[...]

        x = x_scr[...]                                   # (S, E) f32 residual stream
        E = x.shape[-1]

        # fused QKV projection + self-attention + residual/LN
        qkv = _mm(x, wqkv_ref[...], cd) + bqkv_ref[...]
        a = _mha(qkv[:, :E], qkv[:, E:2 * E], qkv[:, 2 * E:], None,
                 wo_ref[...], bo_ref[...], num_heads, cd)
        x = _ln(x + a, ln1g_ref[...], ln1b_ref[...])

        # feed-forward + residual/LN
        h = jnp.maximum(_mm(x, ff1w_ref[...], cd) + ff1b_ref[...], 0.0)
        f = _mm(h, ff2w_ref[...], cd) + ff2b_ref[...]
        x = _ln(x + f, ln2g_ref[...], ln2b_ref[...])

        x_scr[...] = x

        @pl.when(l == num_layers - 1)
        def _():
            mem_ref[...] = _ln(x, fng_ref[...], fnb_ref[...])   # fused final encoder LN
    return kernel


def _make_decoder_stack_kernel(num_heads, num_layers, cd):
    def kernel(y_ref, mem_ref, tmask_ref,
               sa_wqkv_ref, sa_bqkv_ref, sa_wo_ref, sa_bo_ref, ln1g_ref, ln1b_ref,
               ca_wq_ref, ca_bq_ref, ca_wkv_ref, ca_bkv_ref, ca_wo_ref, ca_bo_ref,
               ln2g_ref, ln2b_ref,
               ff1w_ref, ff1b_ref, ff2w_ref, ff2b_ref, ln3g_ref, ln3b_ref,
               fng_ref, fnb_ref, outw_ref, outb_ref,
               out_ref, y_scr):
        l = pl.program_id(1)

        @pl.when(l == 0)
        def _():
            y_scr[...] = y_ref[...]

        y = y_scr[...]                                   # (T, E) f32 residual stream
        mem = mem_ref[...]                               # (S, E) f32 encoder memory
        E = y.shape[-1]

        # masked self-attention
        qkv = _mm(y, sa_wqkv_ref[...], cd) + sa_bqkv_ref[...]
        a = _mha(qkv[:, :E], qkv[:, E:2 * E], qkv[:, 2 * E:], tmask_ref[...],
                 sa_wo_ref[...], sa_bo_ref[...], num_heads, cd)
        y = _ln(y + a, ln1g_ref[...], ln1b_ref[...])

        # cross-attention over encoder memory (fused K/V projection)
        q = _mm(y, ca_wq_ref[...], cd) + ca_bq_ref[...]
        kv = _mm(mem, ca_wkv_ref[...], cd) + ca_bkv_ref[...]
        c = _mha(q, kv[:, :E], kv[:, E:], None,
                 ca_wo_ref[...], ca_bo_ref[...], num_heads, cd)
        y = _ln(y + c, ln2g_ref[...], ln2b_ref[...])

        # feed-forward
        h = jnp.maximum(_mm(y, ff1w_ref[...], cd) + ff1b_ref[...], 0.0)
        f = _mm(h, ff2w_ref[...], cd) + ff2b_ref[...]
        y = _ln(y + f, ln3g_ref[...], ln3b_ref[...])

        y_scr[...] = y

        @pl.when(l == num_layers - 1)
        def _():
            # fused final decoder LayerNorm + output Linear (lane-padded to 128)
            z = _ln(y, fng_ref[...], fnb_ref[...])
            out_ref[...] = _mm(z, outw_ref[...], cd) + outb_ref[...]
    return kernel


# ------------------------------ pallas_call glue -----------------------------

def _layer_spec(arr):
    """Stacked per-layer weight: (L, d1, d2) -> (d1, d2) block selected by layer."""
    _, d1, d2 = arr.shape
    return pl.BlockSpec((None, d1, d2), lambda b, l: (l, 0, 0))


def _batch_spec(arr):
    """Batched activation: (B, d1, d2) -> (d1, d2) block selected by batch."""
    _, d1, d2 = arr.shape
    return pl.BlockSpec((None, d1, d2), lambda b, l: (b, 0, 0))


def _const_spec(arr):
    nd = arr.ndim
    return pl.BlockSpec(arr.shape, lambda b, l, nd=nd: (0,) * nd)


_COMPILER_PARAMS = pltpu.CompilerParams(
    dimension_semantics=("parallel", "arbitrary"),   # batch || , layers sequential
    vmem_limit_bytes=32 * 1024 * 1024,
)


def encoder_stack(params, cfg, x):
    """x: (B, S, E) f32 -> encoder memory (B, S, E) f32 (final LN applied)."""
    B, S, E = x.shape
    L, H, cd = cfg["num_encoder_layers"], cfg["num_heads"], cfg["matmul_dtype"]
    p = params["enc"]
    stacked = [p["wqkv"], p["bqkv"], p["wo"], p["bo"], p["ln1_g"], p["ln1_b"],
               p["ff1_w"], p["ff1_b"], p["ff2_w"], p["ff2_b"], p["ln2_g"], p["ln2_b"]]
    shared = [params["enc_norm_g"], params["enc_norm_b"]]

    return pl.pallas_call(
        _make_encoder_stack_kernel(H, L, cd),
        out_shape=jax.ShapeDtypeStruct((B, S, E), jnp.float32),
        grid=(B, L),
        in_specs=([_batch_spec(x)]
                  + [_layer_spec(a) for a in stacked]
                  + [_const_spec(a) for a in shared]),
        out_specs=pl.BlockSpec((None, S, E), lambda b, l: (b, 0, 0)),
        scratch_shapes=[pltpu.VMEM((S, E), jnp.float32)],
        compiler_params=_COMPILER_PARAMS,
    )(x, *stacked, *shared)


def decoder_stack(params, cfg, y, memory, tgt_mask):
    """y: (B, T, E), memory: (B, S, E), tgt_mask: (T, T) -> logits (B, T, OUT_PAD)."""
    B, T, E = y.shape
    L, H, cd = cfg["num_decoder_layers"], cfg["num_heads"], cfg["matmul_dtype"]
    OUTP = cfg["padded_output_dim"]
    p = params["dec"]
    stacked = [p["sa_wqkv"], p["sa_bqkv"], p["sa_wo"], p["sa_bo"], p["ln1_g"], p["ln1_b"],
               p["ca_wq"], p["ca_bq"], p["ca_wkv"], p["ca_bkv"], p["ca_wo"], p["ca_bo"],
               p["ln2_g"], p["ln2_b"],
               p["ff1_w"], p["ff1_b"], p["ff2_w"], p["ff2_b"], p["ln3_g"], p["ln3_b"]]
    shared = [params["dec_norm_g"], params["dec_norm_b"], params["out_w"], params["out_b"]]

    return pl.pallas_call(
        _make_decoder_stack_kernel(H, L, cd),
        out_shape=jax.ShapeDtypeStruct((B, T, OUTP), jnp.float32),
        grid=(B, L),
        in_specs=([_batch_spec(y), _batch_spec(memory), _const_spec(tgt_mask)]
                  + [_layer_spec(a) for a in stacked]
                  + [_const_spec(a) for a in shared]),
        out_specs=pl.BlockSpec((None, T, OUTP), lambda b, l: (b, 0, 0)),
        scratch_shapes=[pltpu.VMEM((T, E), jnp.float32)],
        compiler_params=_COMPILER_PARAMS,
    )(y, memory, tgt_mask, *stacked, *shared)


# --------------------------- model-level construction ------------------------

def positional_encoding_table(max_len, d_model):
    position = jnp.arange(max_len, dtype=jnp.float32)[:, None]
    div_term = jnp.exp(jnp.arange(0, d_model, 2, dtype=jnp.float32)
                       * (-math.log(10000.0) / d_model))
    pe = jnp.zeros((max_len, d_model), jnp.float32)
    pe = pe.at[:, 0::2].set(jnp.sin(position * div_term))
    pe = pe.at[:, 1::2].set(jnp.cos(position * div_term))
    return pe[:, None, :]        # (max_len, 1, d_model) — broadcasts over batch


def transformer_forward(params, cfg, src, tgt, tgt_mask=None):
    d_model = cfg["d_model"]
    S, B = src.shape
    T, _ = tgt.shape
    emb_scale = math.sqrt(d_model)

    # TODO(synk): embedding gathers + PE add stay in plain JAX (gather has no clean
    # tile-rectangular BlockSpec); dropout layers are eval-mode identities.
    src_e = params["embed_src"][src] * emb_scale + params["pe"][:S]     # (S, B, E)
    tgt_e = params["embed_tgt"][tgt] * emb_scale + params["pe"][:T]     # (T, B, E)

    # batch-major layout so the kernels shard batch on the "parallel" grid axis
    src_e = jnp.transpose(src_e, (1, 0, 2))          # (B, S, E)
    tgt_e = jnp.transpose(tgt_e, (1, 0, 2))          # (B, T, E)

    if tgt_mask is None:
        tgt_mask = jnp.zeros((T, T), jnp.float32)
    tgt_mask = tgt_mask.astype(jnp.float32)

    memory = encoder_stack(params, cfg, src_e)                       # (B, S, E)
    out_p = decoder_stack(params, cfg, tgt_e, memory, tgt_mask)      # (B, T, OUT_PAD)

    out = jnp.transpose(out_p, (1, 0, 2))[:, :, :cfg["output_dim"]]  # (T, B, out_dim)
    return out


# ------------------------------- parameter init ------------------------------

def init_params(key, cfg):
    d, dff = cfg["d_model"], cfg["dim_feedforward"]
    L_e, L_d = cfg["num_encoder_layers"], cfg["num_decoder_layers"]
    cd, OUTP, out_dim = cfg["matmul_dtype"], cfg["padded_output_dim"], cfg["output_dim"]
    ks = jax.random.split(key, 16)

    def w(k, shape):                       # matmul weights stored in compute dtype
        return (jax.random.normal(k, shape, jnp.float32) * 0.05).astype(cd)

    def zeros(shape):
        return jnp.zeros(shape, jnp.float32)

    def ones(shape):
        return jnp.ones(shape, jnp.float32)

    enc = dict(
        wqkv=w(ks[0], (L_e, d, 3 * d)), bqkv=zeros((L_e, 1, 3 * d)),
        wo=w(ks[1], (L_e, d, d)),       bo=zeros((L_e, 1, d)),
        ln1_g=ones((L_e, 1, d)),        ln1_b=zeros((L_e, 1, d)),
        ff1_w=w(ks[2], (L_e, d, dff)),  ff1_b=zeros((L_e, 1, dff)),
        ff2_w=w(ks[3], (L_e, dff, d)),  ff2_b=zeros((L_e, 1, d)),
        ln2_g=ones((L_e, 1, d)),        ln2_b=zeros((L_e, 1, d)),
    )
    dec = dict(
        sa_wqkv=w(ks[4], (L_d, d, 3 * d)), sa_bqkv=zeros((L_d, 1, 3 * d)),
        sa_wo=w(ks[5], (L_d, d, d)),       sa_bo=zeros((L_d, 1, d)),
        ln1_g=ones((L_d, 1, d)),           ln1_b=zeros((L_d, 1, d)),
        ca_wq=w(ks[6], (L_d, d, d)),       ca_bq=zeros((L_d, 1, d)),
        ca_wkv=w(ks[7], (L_d, d, 2 * d)),  ca_bkv=zeros((L_d, 1, 2 * d)),
        ca_wo=w(ks[8], (L_d, d, d)),       ca_bo=zeros((L_d, 1, d)),
        ln2_g=ones((L_d, 1, d)),           ln2_b=zeros((L_d, 1, d)),
        ff1_w=w(ks[9], (L_d, d, dff)),     ff1_b=zeros((L_d, 1, dff)),
        ff2_w=w(ks[10], (L_d, dff, d)),    ff2_b=zeros((L_d, 1, d)),
        ln3_g=ones((L_d, 1, d)),           ln3_b=zeros((L_d, 1, d)),
    )

    # output Linear, lane-padded to a multiple of 128 (padding sliced off in JAX)
    out_w = jnp.zeros((d, OUTP), jnp.float32)
    out_w = out_w.at[:, :out_dim].set(
        jax.random.normal(ks[11], (d, out_dim), jnp.float32) * 0.05)

    return dict(
        embed_src=jax.random.normal(ks[12], (cfg["input_dim"], d), jnp.float32) * 0.05,
        embed_tgt=jax.random.normal(ks[13], (cfg["output_dim"], d), jnp.float32) * 0.05,
        pe=positional_encoding_table(cfg["max_seq_length"], d),
        enc=enc, dec=dec,
        enc_norm_g=ones((1, d)), enc_norm_b=zeros((1, d)),
        dec_norm_g=ones((1, d)), dec_norm_b=zeros((1, d)),
        out_w=out_w.astype(cd), out_b=zeros((1, OUTP)),
    )


# ------------------------------------ main -----------------------------------

if __name__ == "__main__":
    cfg = dict(input_dim=50, output_dim=40, d_model=32, num_heads=4,
               num_encoder_layers=2, num_decoder_layers=2,
               dim_feedforward=64, max_seq_length=100,
               matmul_dtype=MATMUL_DTYPE)
    cfg["padded_output_dim"] = ((cfg["output_dim"] + 127) // 128) * 128

    S, T, B = 8, 8, 2   # src length, tgt length, batch

    key = jax.random.PRNGKey(0)
    k_params, k_src, k_tgt = jax.random.split(key, 3)
    params = init_params(k_params, cfg)

    src = jax.random.randint(k_src, (S, B), 0, cfg["input_dim"], dtype=jnp.int32)
    tgt = jax.random.randint(k_tgt, (T, B), 0, cfg["output_dim"], dtype=jnp.int32)
    # additive causal mask (like nn.Transformer.generate_square_subsequent_mask)
    tgt_mask = jnp.where(jnp.triu(jnp.ones((T, T), bool), k=1), -1e9, 0.0).astype(jnp.float32)

    fwd = jax.jit(lambda p, s, t, m: transformer_forward(p, cfg, s, t, m))
    out = jax.block_until_ready(fwd(params, src, tgt, tgt_mask))

    assert out.shape == (T, B, cfg["output_dim"])
    assert bool(jnp.all(jnp.isfinite(out)))
    print("KERNEL_OK")
</pallas_src>

<mosaic_0001>
module attributes {stable_mosaic.version = 11 : i64} {
  func.func @kernel(%arg0: i32, %arg1: i32, %arg2: memref<1x8x32xf32, #tpu.memory_space<vmem>>, %arg3: memref<1x32x96xbf16, #tpu.memory_space<vmem>>, %arg4: memref<1x1x96xf32, #tpu.memory_space<vmem>>, %arg5: memref<1x32x32xbf16, #tpu.memory_space<vmem>>, %arg6: memref<1x1x32xf32, #tpu.memory_space<vmem>>, %arg7: memref<1x1x32xf32, #tpu.memory_space<vmem>>, %arg8: memref<1x1x32xf32, #tpu.memory_space<vmem>>, %arg9: memref<1x32x64xbf16, #tpu.memory_space<vmem>>, %arg10: memref<1x1x64xf32, #tpu.memory_space<vmem>>, %arg11: memref<1x64x32xbf16, #tpu.memory_space<vmem>>, %arg12: memref<1x1x32xf32, #tpu.memory_space<vmem>>, %arg13: memref<1x1x32xf32, #tpu.memory_space<vmem>>, %arg14: memref<1x1x32xf32, #tpu.memory_space<vmem>>, %arg15: memref<1x32xf32, #tpu.memory_space<vmem>>, %arg16: memref<1x32xf32, #tpu.memory_space<vmem>>, %arg17: memref<1x8x32xf32, #tpu.memory_space<vmem>>, %arg18: memref<8x32xf32, #tpu.memory_space<vmem>>) attributes {dimension_semantics = [#tpu.dimension_semantics<parallel>, #tpu.dimension_semantics<arbitrary>], iteration_bounds = array<i64: 2, 2>, scalar_prefetch = 0 : i64, scratch_operands = 1 : i64, tpu.core_type = #tpu.core_type<tc>, window_params = [{transform_indices = @transform_0, window_bounds = array<i64: 1, 8, 32>}, {transform_indices = @transform_1, window_bounds = array<i64: 1, 32, 96>}, {transform_indices = @transform_2, window_bounds = array<i64: 1, 1, 96>}, {transform_indices = @transform_3, window_bounds = array<i64: 1, 32, 32>}, {transform_indices = @transform_4, window_bounds = array<i64: 1, 1, 32>}, {transform_indices = @transform_5, window_bounds = array<i64: 1, 1, 32>}, {transform_indices = @transform_6, window_bounds = array<i64: 1, 1, 32>}, {transform_indices = @transform_7, window_bounds = array<i64: 1, 32, 64>}, {transform_indices = @transform_8, window_bounds = array<i64: 1, 1, 64>}, {transform_indices = @transform_9, window_bounds = array<i64: 1, 64, 32>}, {transform_indices = @transform_10, window_bounds = array<i64: 1, 1, 32>}, {transform_indices = @transform_11, window_bounds = array<i64: 1, 1, 32>}, {transform_indices = @transform_12, window_bounds = array<i64: 1, 1, 32>}, {pipeline_mode = #tpu.pipeline_mode<synchronous>, transform_indices = @transform_13, window_bounds = array<i64: 1, 32>}, {pipeline_mode = #tpu.pipeline_mode<synchronous>, transform_indices = @transform_14, window_bounds = array<i64: 1, 32>}, {transform_indices = @transform_15, window_bounds = array<i64: 1, 8, 32>}]} {
    %c0_i32 = arith.constant 0 : i32
    %0 = arith.cmpi eq, %arg1, %c0_i32 : i32
    %1 = arith.extui %0 : i1 to i32
    %c0_i32_0 = arith.constant 0 : i32
    %2 = arith.cmpi ne, %1, %c0_i32_0 : i32
    scf.if %2 {
      %c0_60 = arith.constant 0 : index
      %c0_61 = arith.constant 0 : index
      %c0_62 = arith.constant 0 : index
      %148 = vector.load %arg2[%c0_60, %c0_61, %c0_62] : memref<1x8x32xf32, #tpu.memory_space<vmem>>, vector<1x8x32xf32>
      %149 = vector.shape_cast %148 : vector<1x8x32xf32> to vector<8x32xf32>
      %c0_63 = arith.constant 0 : index
      %c0_64 = arith.constant 0 : index
      %150 = vector.load %arg18[%c0_63, %c0_64] : memref<8x32xf32, #tpu.memory_space<vmem>>, vector<8x32xf32>
      tpu.vector_store %arg18[%c0_63, %c0_64], %149 {strides = array<i32>} : memref<8x32xf32, #tpu.memory_space<vmem>>, vector<8x32xf32>,
    } else {
    }
    %c0 = arith.constant 0 : index
    %c0_1 = arith.constant 0 : index
    %3 = vector.load %arg18[%c0, %c0_1] : memref<8x32xf32, #tpu.memory_space<vmem>>, vector<8x32xf32>
    %c0_2 = arith.constant 0 : index
    %c0_3 = arith.constant 0 : index
    %c0_4 = arith.constant 0 : index
    %4 = vector.load %arg3[%c0_2, %c0_3, %c0_4] : memref<1x32x96xbf16, #tpu.memory_space<vmem>>, vector<1x32x96xbf16>
    %5 = vector.shape_cast %4 : vector<1x32x96xbf16> to vector<32x96xbf16>
    %6 = arith.truncf %3 : vector<8x32xf32> to vector<8x32xbf16>
    %cst = arith.constant dense<0.000000e+00> : vector<8x96xf32>
    %7 = tpu.matmul %6, %5, %cst {dimension_numbers = #tpu.dot_dimension_numbers<[1], [0], [0], [1], [0, 0, 1, 1], [], []>} : vector<8x32xbf16>, vector<32x96xbf16>, vector<8x96xf32> -> vector<8x96xf32>
    %c0_5 = arith.constant 0 : index
    %c0_6 = arith.constant 0 : index
    %c0_7 = arith.constant 0 : index
    %8 = vector.load %arg4[%c0_5, %c0_6, %c0_7] : memref<1x1x96xf32, #tpu.memory_space<vmem>>, vector<1x1x96xf32>
    %9 = vector.shape_cast %8 : vector<1x1x96xf32> to vector<1x96xf32>
    %10 = vector.broadcast %9 : vector<1x96xf32> to vector<8x96xf32>
    %11 = arith.addf %7, %10 : vector<8x96xf32>
    %12 = vector.extract_strided_slice %11 {offsets = [0, 0], sizes = [8, 32], strides = [1, 1]} : vector<8x96xf32> to vector<8x32xf32>
    %13 = vector.extract_strided_slice %11 {offsets = [0, 32], sizes = [8, 32], strides = [1, 1]} : vector<8x96xf32> to vector<8x32xf32>
    %14 = vector.extract_strided_slice %11 {offsets = [0, 64], sizes = [8, 32], strides = [1, 1]} : vector<8x96xf32> to vector<8x32xf32>
    %c0_8 = arith.constant 0 : index
    %c0_9 = arith.constant 0 : index
    %c0_10 = arith.constant 0 : index
    %15 = vector.load %arg5[%c0_8, %c0_9, %c0_10] : memref<1x32x32xbf16, #tpu.memory_space<vmem>>, vector<1x32x32xbf16>
    %16 = vector.shape_cast %15 : vector<1x32x32xbf16> to vector<32x32xbf16>
    %c0_11 = arith.constant 0 : index
    %c0_12 = arith.constant 0 : index
    %c0_13 = arith.constant 0 : index
    %17 = vector.load %arg6[%c0_11, %c0_12, %c0_13] : memref<1x1x32xf32, #tpu.memory_space<vmem>>, vector<1x1x32xf32>
    %18 = vector.shape_cast %17 : vector<1x1x32xf32> to vector<1x32xf32>
    %cst_14 = arith.constant 0.353553385 : f32
    %19 = vector.broadcast %cst_14 : f32 to vector<8x32xf32>
    %20 = arith.mulf %12, %19 : vector<8x32xf32>
    %21 = vector.extract_strided_slice %20 {offsets = [0, 0], sizes = [8, 8], strides = [1, 1]} : vector<8x32xf32> to vector<8x8xf32>
    %22 = vector.extract_strided_slice %20 {offsets = [0, 8], sizes = [8, 8], strides = [1, 1]} : vector<8x32xf32> to vector<8x8xf32>
    %23 = vector.extract_strided_slice %20 {offsets = [0, 16], sizes = [8, 8], strides = [1, 1]} : vector<8x32xf32> to vector<8x8xf32>
    %24 = vector.extract_strided_slice %20 {offsets = [0, 24], sizes = [8, 8], strides = [1, 1]} : vector<8x32xf32> to vector<8x8xf32>
    %25 = vector.shape_cast %21 : vector<8x8xf32> to vector<1x8x8xf32>
    %26 = vector.shape_cast %22 : vector<8x8xf32> to vector<1x8x8xf32>
    %27 = vector.shape_cast %23 : vector<8x8xf32> to vector<1x8x8xf32>
    %28 = vector.shape_cast %24 : vector<8x8xf32> to vector<1x8x8xf32>
    %29 = tpu.concatenate %25, %26, %27, %28 in 0 : vector<1x8x8xf32>, vector<1x8x8xf32>, vector<1x8x8xf32>, vector<1x8x8xf32> -> vector<4x8x8xf32>
    %30 = vector.extract_strided_slice %13 {offsets = [0, 0], sizes = [8, 8], strides = [1, 1]} : vector<8x32xf32> to vector<8x8xf32>
    %31 = vector.extract_strided_slice %13 {offsets = [0, 8], sizes = [8, 8], strides = [1, 1]} : vector<8x32xf32> to vector<8x8xf32>
    %32 = vector.extract_strided_slice %13 {offsets = [0, 16], sizes = [8, 8], strides = [1, 1]} : vector<8x32xf32> to vector<8x8xf32>
    %33 = vector.extract_strided_slice %13 {offsets = [0, 24], sizes = [8, 8], strides = [1, 1]} : vector<8x32xf32> to vector<8x8xf32>
    %34 = vector.shape_cast %30 : vector<8x8xf32> to vector<1x8x8xf32>
    %35 = vector.shape_cast %31 : vector<8x8xf32> to vector<1x8x8xf32>
    %36 = vector.shape_cast %32 : vector<8x8xf32> to vector<1x8x8xf32>
    %37 = vector.shape_cast %33 : vector<8x8xf32> to vector<1x8x8xf32>
    %38 = tpu.concatenate %34, %35, %36, %37 in 0 : vector<1x8x8xf32>, vector<1x8x8xf32>, vector<1x8x8xf32>, vector<1x8x8xf32> -> vector<4x8x8xf32>
    %39 = vector.extract_strided_slice %14 {offsets = [0, 0], sizes = [8, 8], strides = [1, 1]} : vector<8x32xf32> to vector<8x8xf32>
    %40 = vector.extract_strided_slice %14 {offsets = [0, 8], sizes = [8, 8], strides = [1, 1]} : vector<8x32xf32> to vector<8x8xf32>
    %41 = vector.extract_strided_slice %14 {offsets = [0, 16], sizes = [8, 8], strides = [1, 1]} : vector<8x32xf32> to vector<8x8xf32>
    %42 = vector.extract_strided_slice %14 {offsets = [0, 24], sizes = [8, 8], strides = [1, 1]} : vector<8x32xf32> to vector<8x8xf32>
    %43 = vector.shape_cast %39 : vector<8x8xf32> to vector<1x8x8xf32>
    %44 = vector.shape_cast %40 : vector<8x8xf32> to vector<1x8x8xf32>
    %45 = vector.shape_cast %41 : vector<8x8xf32> to vector<1x8x8xf32>
    %46 = vector.shape_cast %42 : vector<8x8xf32> to vector<1x8x8xf32>
    %47 = tpu.concatenate %43, %44, %45, %46 in 0 : vector<1x8x8xf32>, vector<1x8x8xf32>, vector<1x8x8xf32>, vector<1x8x8xf32> -> vector<4x8x8xf32>
    %48 = arith.truncf %29 : vector<4x8x8xf32> to vector<4x8x8xbf16>
    %49 = arith.truncf %38 : vector<4x8x8xf32> to vector<4x8x8xbf16>
    "tpu.trace_start"() <{level = 10 : i32, message = "hqd,hkd->hqk"}> : () -> ()
    %cst_15 = arith.constant dense<0.000000e+00> : vector<4x8x8xf32>
    %50 = tpu.matmul %48, %49, %cst_15 {dimension_numbers = #tpu.dot_dimension_numbers<[2], [2], [1], [1], [0, 0, 0, 1, 1, 1], [0], [0]>} : vector<4x8x8xbf16>, vector<4x8x8xbf16>, vector<4x8x8xf32> -> vector<4x8x8xf32>
    "tpu.trace_stop"() : () -> ()
    %cst_16 = arith.constant dense<0xFF800000> : vector<4x8xf32>
    %51 = vector.multi_reduction <maximumf>, %50, %cst_16 [2] : vector<4x8x8xf32> to vector<4x8xf32>
    %52 = vector.shape_cast %51 : vector<4x8xf32> to vector<4x8x1xf32>
    %53 = vector.broadcast %52 : vector<4x8x1xf32> to vector<4x8x8xf32>
    %54 = arith.subf %50, %53 : vector<4x8x8xf32>
    %55 = math.exp %54 : vector<4x8x8xf32>
    %cst_17 = arith.constant dense<0.000000e+00> : vector<4x8xf32>
    %56 = vector.multi_reduction <add>, %55, %cst_17 [2] : vector<4x8x8xf32> to vector<4x8xf32>
    %57 = vector.shape_cast %56 : vector<4x8xf32> to vector<4x8x1xf32>
    %58 = vector.broadcast %57 : vector<4x8x1xf32> to vector<4x8x8xf32>
    %59 = arith.divf %55, %58 : vector<4x8x8xf32>
    %60 = arith.truncf %59 : vector<4x8x8xf32> to vector<4x8x8xbf16>
    %61 = arith.truncf %47 : vector<4x8x8xf32> to vector<4x8x8xbf16>
    "tpu.trace_start"() <{level = 10 : i32, message = "hqk,hkd->hqd"}> : () -> ()
    %cst_18 = arith.constant dense<0.000000e+00> : vector<4x8x8xf32>
    %62 = tpu.matmul %60, %61, %cst_18 {dimension_numbers = #tpu.dot_dimension_numbers<[2], [1], [1], [2], [0, 0, 0, 1, 1, 2], [0], [0]>} : vector<4x8x8xbf16>, vector<4x8x8xbf16>, vector<4x8x8xf32> -> vector<4x8x8xf32>
    "tpu.trace_stop"() : () -> ()
    %63 = vector.extract_strided_slice %62 {offsets = [0, 0, 0], sizes = [1, 8, 8], strides = [1, 1, 1]} : vector<4x8x8xf32> to vector<1x8x8xf32>
    %64 = vector.shape_cast %63 : vector<1x8x8xf32> to vector<8x8xf32>
    %65 = vector.extract_strided_slice %62 {offsets = [1, 0, 0], sizes = [1, 8, 8], strides = [1, 1, 1]} : vector<4x8x8xf32> to vector<1x8x8xf32>
    %66 = vector.shape_cast %65 : vector<1x8x8xf32> to vector<8x8xf32>
    %67 = vector.extract_strided_slice %62 {offsets = [2, 0, 0], sizes = [1, 8, 8], strides = [1, 1, 1]} : vector<4x8x8xf32> to vector<1x8x8xf32>
    %68 = vector.shape_cast %67 : vector<1x8x8xf32> to vector<8x8xf32>
    %69 = vector.extract_strided_slice %62 {offsets = [3, 0, 0], sizes = [1, 8, 8], strides = [1, 1, 1]} : vector<4x8x8xf32> to vector<1x8x8xf32>
    %70 = vector.shape_cast %69 : vector<1x8x8xf32> to vector<8x8xf32>
    %71 = tpu.concatenate %64, %66, %68, %70 in 1 : vector<8x8xf32>, vector<8x8xf32>, vector<8x8xf32>, vector<8x8xf32> -> vector<8x32xf32>
    %72 = arith.truncf %71 : vector<8x32xf32> to vector<8x32xbf16>
    %cst_19 = arith.constant dense<0.000000e+00> : vector<8x32xf32>
    %73 = tpu.matmul %72, %16, %cst_19 {dimension_numbers = #tpu.dot_dimension_numbers<[1], [0], [0], [1], [0, 0, 1, 1], [], []>} : vector<8x32xbf16>, vector<32x32xbf16>, vector<8x32xf32> -> vector<8x32xf32>
    %74 = vector.broadcast %18 : vector<1x32xf32> to vector<8x32xf32>
    %75 = arith.addf %73, %74 : vector<8x32xf32>
    %76 = arith.addf %3, %75 : vector<8x32xf32>
    %c0_20 = arith.constant 0 : index
    %c0_21 = arith.constant 0 : index
    %c0_22 = arith.constant 0 : index
    %77 = vector.load %arg7[%c0_20, %c0_21, %c0_22] : memref<1x1x32xf32, #tpu.memory_space<vmem>>, vector<1x1x32xf32>
    %78 = vector.shape_cast %77 : vector<1x1x32xf32> to vector<1x32xf32>
    %c0_23 = arith.constant 0 : index
    %c0_24 = arith.constant 0 : index
    %c0_25 = arith.constant 0 : index
    %79 = vector.load %arg8[%c0_23, %c0_24, %c0_25] : memref<1x1x32xf32, #tpu.memory_space<vmem>>, vector<1x1x32xf32>
    %80 = vector.shape_cast %79 : vector<1x1x32xf32> to vector<1x32xf32>
    %cst_26 = arith.constant dense<0.000000e+00> : vector<8xf32>
    %81 = vector.multi_reduction <add>, %76, %cst_26 [1] : vector<8x32xf32> to vector<8xf32>
    %82 = vector.shape_cast %81 : vector<8xf32> to vector<8x1xf32>
    %cst_27 = arith.constant 3.200000e+01 : f32
    %83 = vector.broadcast %cst_27 : f32 to vector<8x1xf32>
    %84 = arith.divf %82, %83 : vector<8x1xf32>
    %85 = vector.broadcast %84 : vector<8x1xf32> to vector<8x32xf32>
    %86 = arith.subf %76, %85 : vector<8x32xf32>
    %87 = arith.mulf %86, %86 : vector<8x32xf32>
    %cst_28 = arith.constant dense<0.000000e+00> : vector<8xf32>
    %88 = vector.multi_reduction <add>, %87, %cst_28 [1] : vector<8x32xf32> to vector<8xf32>
    %89 = vector.shape_cast %88 : vector<8xf32> to vector<8x1xf32>
    %cst_29 = arith.constant 3.200000e+01 : f32
    %90 = vector.broadcast %cst_29 : f32 to vector<8x1xf32>
    %91 = arith.divf %89, %90 : vector<8x1xf32>
    %cst_30 = arith.constant 9.99999974E-6 : f32
    %92 = vector.broadcast %cst_30 : f32 to vector<8x1xf32>
    %93 = arith.addf %91, %92 : vector<8x1xf32>
    %94 = math.rsqrt %93 : vector<8x1xf32>
    %95 = vector.broadcast %94 : vector<8x1xf32> to vector<8x32xf32>
    %96 = arith.mulf %86, %95 : vector<8x32xf32>
    %97 = vector.broadcast %78 : vector<1x32xf32> to vector<8x32xf32>
    %98 = arith.mulf %96, %97 : vector<8x32xf32>
    %99 = vector.broadcast %80 : vector<1x32xf32> to vector<8x32xf32>
    %100 = arith.addf %98, %99 : vector<8x32xf32>
    %c0_31 = arith.constant 0 : index
    %c0_32 = arith.constant 0 : index
    %c0_33 = arith.constant 0 : index
    %101 = vector.load %arg9[%c0_31, %c0_32, %c0_33] : memref<1x32x64xbf16, #tpu.memory_space<vmem>>, vector<1x32x64xbf16>
    %102 = vector.shape_cast %101 : vector<1x32x64xbf16> to vector<32x64xbf16>
    %103 = arith.truncf %100 : vector<8x32xf32> to vector<8x32xbf16>
    %cst_34 = arith.constant dense<0.000000e+00> : vector<8x64xf32>
    %104 = tpu.matmul %103, %102, %cst_34 {dimension_numbers = #tpu.dot_dimension_numbers<[1], [0], [0], [1], [0, 0, 1, 1], [], []>} : vector<8x32xbf16>, vector<32x64xbf16>, vector<8x64xf32> -> vector<8x64xf32>
    %c0_35 = arith.constant 0 : index
    %c0_36 = arith.constant 0 : index
    %c0_37 = arith.constant 0 : index
    %105 = vector.load %arg10[%c0_35, %c0_36, %c0_37] : memref<1x1x64xf32, #tpu.memory_space<vmem>>, vector<1x1x64xf32>
    %106 = vector.shape_cast %105 : vector<1x1x64xf32> to vector<1x64xf32>
    %107 = vector.broadcast %106 : vector<1x64xf32> to vector<8x64xf32>
    %108 = arith.addf %104, %107 : vector<8x64xf32>
    %cst_38 = arith.constant 0.000000e+00 : f32
    %109 = vector.broadcast %cst_38 : f32 to vector<8x64xf32>
    %110 = arith.maximumf %108, %109 : vector<8x64xf32>
    %c0_39 = arith.constant 0 : index
    %c0_40 = arith.constant 0 : index
    %c0_41 = arith.constant 0 : index
    %111 = vector.load %arg11[%c0_39, %c0_40, %c0_41] : memref<1x64x32xbf16, #tpu.memory_space<vmem>>, vector<1x64x32xbf16>
    %112 = vector.shape_cast %111 : vector<1x64x32xbf16> to vector<64x32xbf16>
    %113 = arith.truncf %110 : vector<8x64xf32> to vector<8x64xbf16>
    %cst_42 = arith.constant dense<0.000000e+00> : vector<8x32xf32>
    %114 = tpu.matmul %113, %112, %cst_42 {dimension_numbers = #tpu.dot_dimension_numbers<[1], [0], [0], [1], [0, 0, 1, 1], [], []>} : vector<8x64xbf16>, vector<64x32xbf16>, vector<8x32xf32> -> vector<8x32xf32>
    %c0_43 = arith.constant 0 : index
    %c0_44 = arith.constant 0 : index
    %c0_45 = arith.constant 0 : index
    %115 = vector.load %arg12[%c0_43, %c0_44, %c0_45] : memref<1x1x32xf32, #tpu.memory_space<vmem>>, vector<1x1x32xf32>
    %116 = vector.shape_cast %115 : vector<1x1x32xf32> to vector<1x32xf32>
    %117 = vector.broadcast %116 : vector<1x32xf32> to vector<8x32xf32>
    %118 = arith.addf %114, %117 : vector<8x32xf32>
    %119 = arith.addf %100, %118 : vector<8x32xf32>
    %c0_46 = arith.constant 0 : index
    %c0_47 = arith.constant 0 : index
    %c0_48 = arith.constant 0 : index
    %120 = vector.load %arg13[%c0_46, %c0_47, %c0_48] : memref<1x1x32xf32, #tpu.memory_space<vmem>>, vector<1x1x32xf32>
    %121 = vector.shape_cast %120 : vector<1x1x32xf32> to vector<1x32xf32>
    %c0_49 = arith.constant 0 : index
    %c0_50 = arith.constant 0 : index
    %c0_51 = arith.constant 0 : index
    %122 = vector.load %arg14[%c0_49, %c0_50, %c0_51] : memref<1x1x32xf32, #tpu.memory_space<vmem>>, vector<1x1x32xf32>
    %123 = vector.shape_cast %122 : vector<1x1x32xf32> to vector<1x32xf32>
    %cst_52 = arith.constant dense<0.000000e+00> : vector<8xf32>
    %124 = vector.multi_reduction <add>, %119, %cst_52 [1] : vector<8x32xf32> to vector<8xf32>
    %125 = vector.shape_cast %124 : vector<8xf32> to vector<8x1xf32>
    %cst_53 = arith.constant 3.200000e+01 : f32
    %126 = vector.broadcast %cst_53 : f32 to vector<8x1xf32>
    %127 = arith.divf %125, %126 : vector<8x1xf32>
    %128 = vector.broadcast %127 : vector<8x1xf32> to vector<8x32xf32>
    %129 = arith.subf %119, %128 : vector<8x32xf32>
    %130 = arith.mulf %129, %129 : vector<8x32xf32>
    %cst_54 = arith.constant dense<0.000000e+00> : vector<8xf32>
    %131 = vector.multi_reduction <add>, %130, %cst_54 [1] : vector<8x32xf32> to vector<8xf32>
    %132 = vector.shape_cast %131 : vector<8xf32> to vector<8x1xf32>
    %cst_55 = arith.constant 3.200000e+01 : f32
    %133 = vector.broadcast %cst_55 : f32 to vector<8x1xf32>
    %134 = arith.divf %132, %133 : vector<8x1xf32>
    %cst_56 = arith.constant 9.99999974E-6 : f32
    %135 = vector.broadcast %cst_56 : f32 to vector<8x1xf32>
    %136 = arith.addf %134, %135 : vector<8x1xf32>
    %137 = math.rsqrt %136 : vector<8x1xf32>
    %138 = vector.broadcast %137 : vector<8x1xf32> to vector<8x32xf32>
    %139 = arith.mulf %129, %138 : vector<8x32xf32>
    %140 = vector.broadcast %121 : vector<1x32xf32> to vector<8x32xf32>
    %141 = arith.mulf %139, %140 : vector<8x32xf32>
    %142 = vector.broadcast %123 : vector<1x32xf32> to vector<8x32xf32>
    %143 = arith.addf %141, %142 : vector<8x32xf32>
    %c0_57 = arith.constant 0 : index
    %c0_58 = arith.constant 0 : index
    %144 = vector.load %arg18[%c0_57, %c0_58] : memref<8x32xf32, #tpu.memory_space<vmem>>, vector<8x32xf32>
    tpu.vector_store %arg18[%c0_57, %c0_58], %143 {strides = array<i32>} : memref<8x32xf32, #tpu.memory_space<vmem>>, vector<8x32xf32>,
    %c1_i32 = arith.constant 1 : i32
    %145 = arith.cmpi eq, %arg1, %c1_i32 : i32
    %146 = arith.extui %145 : i1 to i32
    %c0_i32_59 = arith.constant 0 : i32
    %147 = arith.cmpi ne, %146, %c0_i32_59 : i32
    scf.if %147 {
      %c0_60 = arith.constant 0 : index
      %c0_61 = arith.constant 0 : index
      %148 = vector.load %arg15[%c0_60, %c0_61] : memref<1x32xf32, #tpu.memory_space<vmem>>, vector<1x32xf32>
      %c0_62 = arith.constant 0 : index
      %c0_63 = arith.constant 0 : index
      %149 = vector.load %arg16[%c0_62, %c0_63] : memref<1x32xf32, #tpu.memory_space<vmem>>, vector<1x32xf32>
      %cst_64 = arith.constant dense<0.000000e+00> : vector<8xf32>
      %150 = vector.multi_reduction <add>, %143, %cst_64 [1] : vector<8x32xf32> to vector<8xf32>
      %151 = vector.shape_cast %150 : vector<8xf32> to vector<8x1xf32>
      %cst_65 = arith.constant 3.200000e+01 : f32
      %152 = vector.broadcast %cst_65 : f32 to vector<8x1xf32>
      %153 = arith.divf %151, %152 : vector<8x1xf32>
      %154 = vector.broadcast %153 : vector<8x1xf32> to vector<8x32xf32>
      %155 = arith.subf %143, %154 : vector<8x32xf32>
      %156 = arith.mulf %155, %155 : vector<8x32xf32>
      %cst_66 = arith.constant dense<0.000000e+00> : vector<8xf32>
      %157 = vector.multi_reduction <add>, %156, %cst_66 [1] : vector<8x32xf32> to vector<8xf32>
      %158 = vector.shape_cast %157 : vector<8xf32> to vector<8x1xf32>
      %cst_67 = arith.constant 3.200000e+01 : f32
      %159 = vector.broadcast %cst_67 : f32 to vector<8x1xf32>
      %160 = arith.divf %158, %159 : vector<8x1xf32>
      %cst_68 = arith.constant 9.99999974E-6 : f32
      %161 = vector.broadcast %cst_68 : f32 to vector<8x1xf32>
      %162 = arith.addf %160, %161 : vector<8x1xf32>
      %163 = math.rsqrt %162 : vector<8x1xf32>
      %164 = vector.broadcast %163 : vector<8x1xf32> to vector<8x32xf32>
      %165 = arith.mulf %155, %164 : vector<8x32xf32>
      %166 = vector.broadcast %148 : vector<1x32xf32> to vector<8x32xf32>
      %167 = arith.mulf %165, %166 : vector<8x32xf32>
      %168 = vector.broadcast %149 : vector<1x32xf32> to vector<8x32xf32>
      %169 = arith.addf %167, %168 : vector<8x32xf32>
      %c0_69 = arith.constant 0 : index
      %c0_70 = arith.constant 0 : index
      %c0_71 = arith.constant 0 : index
      %170 = vector.load %arg17[%c0_69, %c0_70, %c0_71] : memref<1x8x32xf32, #tpu.memory_space<vmem>>, vector<1x8x32xf32>
      %171 = vector.shape_cast %170 : vector<1x8x32xf32> to vector<8x32xf32>
      %172 = vector.shape_cast %169 : vector<8x32xf32> to vector<1x8x32xf32>
      tpu.vector_store %arg17[%c0_69, %c0_70, %c0_71], %172 {strides = array<i32>} : memref<1x8x32xf32, #tpu.memory_space<vmem>>, vector<1x8x32xf32>,
    } else {
    }
    return
  }
  func.func @transform_0(%arg0: i32, %arg1: i32) -> (i32, i32, i32) {
    %c0_i32 = arith.constant 0 : i32
    %c0_i32_0 = arith.constant 0 : i32
    %c0_i32_1 = arith.constant 0 : i32
    return %arg0, %c0_i32, %c0_i32_0 : i32, i32, i32
  }
  func.func @transform_1(%arg0: i32, %arg1: i32) -> (i32, i32, i32) {
    %c0_i32 = arith.constant 0 : i32
    %c0_i32_0 = arith.constant 0 : i32
    %c0_i32_1 = arith.constant 0 : i32
    return %arg1, %c0_i32, %c0_i32_0 : i32, i32, i32
  }
  func.func @transform_2(%arg0: i32, %arg1: i32) -> (i32, i32, i32) {
    %c0_i32 = arith.constant 0 : i32
    %c0_i32_0 = arith.constant 0 : i32
    %c0_i32_1 = arith.constant 0 : i32
    return %arg1, %c0_i32, %c0_i32_0 : i32, i32, i32
  }
  func.func @transform_3(%arg0: i32, %arg1: i32) -> (i32, i32, i32) {
    %c0_i32 = arith.constant 0 : i32
    %c0_i32_0 = arith.constant 0 : i32
    %c0_i32_1 = arith.constant 0 : i32
    return %arg1, %c0_i32, %c0_i32_0 : i32, i32, i32
  }
  func.func @transform_4(%arg0: i32, %arg1: i32) -> (i32, i32, i32) {
    %c0_i32 = arith.constant 0 : i32
    %c0_i32_0 = arith.constant 0 : i32
    %c0_i32_1 = arith.constant 0 : i32
    return %arg1, %c0_i32, %c0_i32_0 : i32, i32, i32
  }
  func.func @transform_5(%arg0: i32, %arg1: i32) -> (i32, i32, i32) {
    %c0_i32 = arith.constant 0 : i32
    %c0_i32_0 = arith.constant 0 : i32
    %c0_i32_1 = arith.constant 0 : i32
    return %arg1, %c0_i32, %c0_i32_0 : i32, i32, i32
  }
  func.func @transform_6(%arg0: i32, %arg1: i32) -> (i32, i32, i32) {
    %c0_i32 = arith.constant 0 : i32
    %c0_i32_0 = arith.constant 0 : i32
    %c0_i32_1 = arith.constant 0 : i32
    return %arg1, %c0_i32, %c0_i32_0 : i32, i32, i32
  }
  func.func @transform_7(%arg0: i32, %arg1: i32) -> (i32, i32, i32) {
    %c0_i32 = arith.constant 0 : i32
    %c0_i32_0 = arith.constant 0 : i32
    %c0_i32_1 = arith.constant 0 : i32
    return %arg1, %c0_i32, %c0_i32_0 : i32, i32, i32
  }
  func.func @transform_8(%arg0: i32, %arg1: i32) -> (i32, i32, i32) {
    %c0_i32 = arith.constant 0 : i32
    %c0_i32_0 = arith.constant 0 : i32
    %c0_i32_1 = arith.constant 0 : i32
    return %arg1, %c0_i32, %c0_i32_0 : i32, i32, i32
  }
  func.func @transform_9(%arg0: i32, %arg1: i32) -> (i32, i32, i32) {
    %c0_i32 = arith.constant 0 : i32
    %c0_i32_0 = arith.constant 0 : i32
    %c0_i32_1 = arith.constant 0 : i32
    return %arg1, %c0_i32, %c0_i32_0 : i32, i32, i32
  }
  func.func @transform_10(%arg0: i32, %arg1: i32) -> (i32, i32, i32) {
    %c0_i32 = arith.constant 0 : i32
    %c0_i32_0 = arith.constant 0 : i32
    %c0_i32_1 = arith.constant 0 : i32
    return %arg1, %c0_i32, %c0_i32_0 : i32, i32, i32
  }
  func.func @transform_11(%arg0: i32, %arg1: i32) -> (i32, i32, i32) {
    %c0_i32 = arith.constant 0 : i32
    %c0_i32_0 = arith.constant 0 : i32
    %c0_i32_1 = arith.constant 0 : i32
    return %arg1, %c0_i32, %c0_i32_0 : i32, i32, i32
  }
  func.func @transform_12(%arg0: i32, %arg1: i32) -> (i32, i32, i32) {
    %c0_i32 = arith.constant 0 : i32
    %c0_i32_0 = arith.constant 0 : i32
    %c0_i32_1 = arith.constant 0 : i32
    return %arg1, %c0_i32, %c0_i32_0 : i32, i32, i32
  }
  func.func @transform_13(%arg0: i32, %arg1: i32) -> (i32, i32) {
    %c0_i32 = arith.constant 0 : i32
    %c0_i32_0 = arith.constant 0 : i32
    %c0_i32_1 = arith.constant 0 : i32
    return %c0_i32, %c0_i32_0 : i32, i32
  }
  func.func @transform_14(%arg0: i32, %arg1: i32) -> (i32, i32) {
    %c0_i32 = arith.constant 0 : i32
    %c0_i32_0 = arith.constant 0 : i32
    %c0_i32_1 = arith.constant 0 : i32
    return %c0_i32, %c0_i32_0 : i32, i32
  }
  func.func @transform_15(%arg0: i32, %arg1: i32) -> (i32, i32, i32) {
    %c0_i32 = arith.constant 0 : i32
    %c0_i32_0 = arith.constant 0 : i32
    %c0_i32_1 = arith.constant 0 : i32
    return %arg0, %c0_i32, %c0_i32_0 : i32, i32, i32
  }
}

module attributes {stable_mosaic.version = 11 : i64} {
  func.func @kernel(%arg0: i32, %arg1: i32, %arg2: memref<1x8x32xf32, #tpu.memory_space<vmem>>, %arg3: memref<1x8x32xf32, #tpu.memory_space<vmem>>, %arg4: memref<8x8xf32, #tpu.memory_space<vmem>>, %arg5: memref<1x32x96xbf16, #tpu.memory_space<vmem>>, %arg6: memref<1x1x96xf32, #tpu.memory_space<vmem>>, %arg7: memref<1x32x32xbf16, #tpu.memory_space<vmem>>, %arg8: memref<1x1x32xf32, #tpu.memory_space<vmem>>, %arg9: memref<1x1x32xf32, #tpu.memory_space<vmem>>, %arg10: memref<1x1x32xf32, #tpu.memory_space<vmem>>, %arg11: memref<1x32x32xbf16, #tpu.memory_space<vmem>>, %arg12: memref<1x1x32xf32, #tpu.memory_space<vmem>>, %arg13: memref<1x32x64xbf16, #tpu.memory_space<vmem>>, %arg14: memref<1x1x64xf32, #tpu.memory_space<vmem>>, %arg15: memref<1x32x32xbf16, #tpu.memory_space<vmem>>, %arg16: memref<1x1x32xf32, #tpu.memory_space<vmem>>, %arg17: memref<1x1x32xf32, #tpu.memory_space<vmem>>, %arg18: memref<1x1x32xf32, #tpu.memory_space<vmem>>, %arg19: memref<1x32x64xbf16, #tpu.memory_space<vmem>>, %arg20: memref<1x1x64xf32, #tpu.memory_space<vmem>>, %arg21: memref<1x64x32xbf16, #tpu.memory_space<vmem>>, %arg22: memref<1x1x32xf32, #tpu.memory_space<vmem>>, %arg23: memref<1x1x32xf32, #tpu.memory_space<vmem>>, %arg24: memref<1x1x32xf32, #tpu.memory_space<vmem>>, %arg25: memref<1x32xf32, #tpu.memory_space<vmem>>, %arg26: memref<1x32xf32, #tpu.memory_space<vmem>>, %arg27: memref<32x128xbf16, #tpu.memory_space<vmem>>, %arg28: memref<1x128xf32, #tpu.memory_space<vmem>>, %arg29: memref<1x8x128xf32, #tpu.memory_space<vmem>>, %arg30: memref<8x32xf32, #tpu.memory_space<vmem>>) attributes {dimension_semantics = [#tpu.dimension_semantics<parallel>, #tpu.dimension_semantics<arbitrary>], iteration_bounds = array<i64: 2, 2>, scalar_prefetch = 0 : i64, scratch_operands = 1 : i64, tpu.core_type = #tpu.core_type<tc>, window_params = [{transform_indices = @transform_0, window_bounds = array<i64: 1, 8, 32>}, {transform_indices = @transform_1, window_bounds = array<i64: 1, 8, 32>}, {pipeline_mode = #tpu.pipeline_mode<synchronous>, transform_indices = @transform_2, window_bounds = array<i64: 8, 8>}, {transform_indices = @transform_3, window_bounds = array<i64: 1, 32, 96>}, {transform_indices = @transform_4, window_bounds = array<i64: 1, 1, 96>}, {transform_indices = @transform_5, window_bounds = array<i64: 1, 32, 32>}, {transform_indices = @transform_6, window_bounds = array<i64: 1, 1, 32>}, {transform_indices = @transform_7, window_bounds = array<i64: 1, 1, 32>}, {transform_indices = @transform_8, window_bounds = array<i64: 1, 1, 32>}, {transform_indices = @transform_9, window_bounds = array<i64: 1, 32, 32>}, {transform_indices = @transform_10, window_bounds = array<i64: 1, 1, 32>}, {transform_indices = @transform_11, window_bounds = array<i64: 1, 32, 64>}, {transform_indices = @transform_12, window_bounds = array<i64: 1, 1, 64>}, {transform_indices = @transform_13, window_bounds = array<i64: 1, 32, 32>}, {transform_indices = @transform_14, window_bounds = array<i64: 1, 1, 32>}, {transform_indices = @transform_15, window_bounds = array<i64: 1, 1, 32>}, {transform_indices = @transform_16, window_bounds = array<i64: 1, 1, 32>}, {transform_indices = @transform_17, window_bounds = array<i64: 1, 32, 64>}, {transform_indices = @transform_18, window_bounds = array<i64: 1, 1, 64>}, {transform_indices = @transform_19, window_bounds = array<i64: 1, 64, 32>}, {transform_indices = @transform_20, window_bounds = array<i64: 1, 1, 32>}, {transform_indices = @transform_21, window_bounds = array<i64: 1, 1, 32>}, {transform_indices = @transform_22, window_bounds = array<i64: 1, 1, 32>}, {pipeline_mode = #tpu.pipeline_mode<synchronous>, transform_indices = @transform_23, window_bounds = array<i64: 1, 32>}, {pipeline_mode = #tpu.pipeline_mode<synchronous>, transform_indices = @transform_24, window_bounds = array<i64: 1, 32>}, {pipeline_mode = #tpu.pipeline_mode<synchronous>, transform_indices = @transform_25, window_bounds = array<i64: 32, 128>}, {pipeline_mode = #tpu.pipeline_mode<synchronous>, transform_indices = @transform_26, window_bounds = array<i64: 1, 128>}, {transform_indices = @transform_27, window_bounds = array<i64: 1, 8, 128>}]} {
    %c0_i32 = arith.constant 0 : i32
    %0 = arith.cmpi eq, %arg1, %c0_i32 : i32
    %1 = arith.extui %0 : i1 to i32
    %c0_i32_0 = arith.constant 0 : i32
    %2 = arith.cmpi ne, %1, %c0_i32_0 : i32
    scf.if %2 {
      %c0_102 = arith.constant 0 : index
      %c0_103 = arith.constant 0 : index
      %c0_104 = arith.constant 0 : index
      %258 = vector.load %arg2[%c0_102, %c0_103, %c0_104] : memref<1x8x32xf32, #tpu.memory_space<vmem>>, vector<1x8x32xf32>
      %259 = vector.shape_cast %258 : vector<1x8x32xf32> to vector<8x32xf32>
      %c0_105 = arith.constant 0 : index
      %c0_106 = arith.constant 0 : index
      %260 = vector.load %arg30[%c0_105, %c0_106] : memref<8x32xf32, #tpu.memory_space<vmem>>, vector<8x32xf32>
      tpu.vector_store %arg30[%c0_105, %c0_106], %259 {strides = array<i32>} : memref<8x32xf32, #tpu.memory_space<vmem>>, vector<8x32xf32>,
    } else {
    }
    %c0 = arith.constant 0 : index
    %c0_1 = arith.constant 0 : index
    %3 = vector.load %arg30[%c0, %c0_1] : memref<8x32xf32, #tpu.memory_space<vmem>>, vector<8x32xf32>
    %c0_2 = arith.constant 0 : index
    %c0_3 = arith.constant 0 : index
    %c0_4 = arith.constant 0 : index
    %4 = vector.load %arg3[%c0_2, %c0_3, %c0_4] : memref<1x8x32xf32, #tpu.memory_space<vmem>>, vector<1x8x32xf32>
    %5 = vector.shape_cast %4 : vector<1x8x32xf32> to vector<8x32xf32>
    %c0_5 = arith.constant 0 : index
    %c0_6 = arith.constant 0 : index
    %c0_7 = arith.constant 0 : index
    %6 = vector.load %arg5[%c0_5, %c0_6, %c0_7] : memref<1x32x96xbf16, #tpu.memory_space<vmem>>, vector<1x32x96xbf16>
    %7 = vector.shape_cast %6 : vector<1x32x96xbf16> to vector<32x96xbf16>
    %8 = arith.truncf %3 : vector<8x32xf32> to vector<8x32xbf16>
    %cst = arith.constant dense<0.000000e+00> : vector<8x96xf32>
    %9 = tpu.matmul %8, %7, %cst {dimension_numbers = #tpu.dot_dimension_numbers<[1], [0], [0], [1], [0, 0, 1, 1], [], []>} : vector<8x32xbf16>, vector<32x96xbf16>, vector<8x96xf32> -> vector<8x96xf32>
    %c0_8 = arith.constant 0 : index
    %c0_9 = arith.constant 0 : index
    %c0_10 = arith.constant 0 : index
    %10 = vector.load %arg6[%c0_8, %c0_9, %c0_10] : memref<1x1x96xf32, #tpu.memory_space<vmem>>, vector<1x1x96xf32>
    %11 = vector.shape_cast %10 : vector<1x1x96xf32> to vector<1x96xf32>
    %12 = vector.broadcast %11 : vector<1x96xf32> to vector<8x96xf32>
    %13 = arith.addf %9, %12 : vector<8x96xf32>
    %14 = vector.extract_strided_slice %13 {offsets = [0, 0], sizes = [8, 32], strides = [1, 1]} : vector<8x96xf32> to vector<8x32xf32>
    %15 = vector.extract_strided_slice %13 {offsets = [0, 32], sizes = [8, 32], strides = [1, 1]} : vector<8x96xf32> to vector<8x32xf32>
    %16 = vector.extract_strided_slice %13 {offsets = [0, 64], sizes = [8, 32], strides = [1, 1]} : vector<8x96xf32> to vector<8x32xf32>
    %c0_11 = arith.constant 0 : index
    %c0_12 = arith.constant 0 : index
    %17 = vector.load %arg4[%c0_11, %c0_12] : memref<8x8xf32, #tpu.memory_space<vmem>>, vector<8x8xf32>
    %c0_13 = arith.constant 0 : index
    %c0_14 = arith.constant 0 : index
    %c0_15 = arith.constant 0 : index
    %18 = vector.load %arg7[%c0_13, %c0_14, %c0_15] : memref<1x32x32xbf16, #tpu.memory_space<vmem>>, vector<1x32x32xbf16>
    %19 = vector.shape_cast %18 : vector<1x32x32xbf16> to vector<32x32xbf16>
    %c0_16 = arith.constant 0 : index
    %c0_17 = arith.constant 0 : index
    %c0_18 = arith.constant 0 : index
    %20 = vector.load %arg8[%c0_16, %c0_17, %c0_18] : memref<1x1x32xf32, #tpu.memory_space<vmem>>, vector<1x1x32xf32>
    %21 = vector.shape_cast %20 : vector<1x1x32xf32> to vector<1x32xf32>
    %cst_19 = arith.constant 0.353553385 : f32
    %22 = vector.broadcast %cst_19 : f32 to vector<8x32xf32>
    %23 = arith.mulf %14, %22 : vector<8x32xf32>
    %24 = vector.extract_strided_slice %23 {offsets = [0, 0], sizes = [8, 8], strides = [1, 1]} : vector<8x32xf32> to vector<8x8xf32>
    %25 = vector.extract_strided_slice %23 {offsets = [0, 8], sizes = [8, 8], strides = [1, 1]} : vector<8x32xf32> to vector<8x8xf32>
    %26 = vector.extract_strided_slice %23 {offsets = [0, 16], sizes = [8, 8], strides = [1, 1]} : vector<8x32xf32> to vector<8x8xf32>
    %27 = vector.extract_strided_slice %23 {offsets = [0, 24], sizes = [8, 8], strides = [1, 1]} : vector<8x32xf32> to vector<8x8xf32>
    %28 = vector.shape_cast %24 : vector<8x8xf32> to vector<1x8x8xf32>
    %29 = vector.shape_cast %25 : vector<8x8xf32> to vector<1x8x8xf32>
    %30 = vector.shape_cast %26 : vector<8x8xf32> to vector<1x8x8xf32>
    %31 = vector.shape_cast %27 : vector<8x8xf32> to vector<1x8x8xf32>
    %32 = tpu.concatenate %28, %29, %30, %31 in 0 : vector<1x8x8xf32>, vector<1x8x8xf32>, vector<1x8x8xf32>, vector<1x8x8xf32> -> vector<4x8x8xf32>
    %33 = vector.extract_strided_slice %15 {offsets = [0, 0], sizes = [8, 8], strides = [1, 1]} : vector<8x32xf32> to vector<8x8xf32>
    %34 = vector.extract_strided_slice %15 {offsets = [0, 8], sizes = [8, 8], strides = [1, 1]} : vector<8x32xf32> to vector<8x8xf32>
    %35 = vector.extract_strided_slice %15 {offsets = [0, 16], sizes = [8, 8], strides = [1, 1]} : vector<8x32xf32> to vector<8x8xf32>
    %36 = vector.extract_strided_slice %15 {offsets = [0, 24], sizes = [8, 8], strides = [1, 1]} : vector<8x32xf32> to vector<8x8xf32>
    %37 = vector.shape_cast %33 : vector<8x8xf32> to vector<1x8x8xf32>
    %38 = vector.shape_cast %34 : vector<8x8xf32> to vector<1x8x8xf32>
    %39 = vector.shape_cast %35 : vector<8x8xf32> to vector<1x8x8xf32>
    %40 = vector.shape_cast %36 : vector<8x8xf32> to vector<1x8x8xf32>
    %41 = tpu.concatenate %37, %38, %39, %40 in 0 : vector<1x8x8xf32>, vector<1x8x8xf32>, vector<1x8x8xf32>, vector<1x8x8xf32> -> vector<4x8x8xf32>
    %42 = vector.extract_strided_slice %16 {offsets = [0, 0], sizes = [8, 8], strides = [1, 1]} : vector<8x32xf32> to vector<8x8xf32>
    %43 = vector.extract_strided_slice %16 {offsets = [0, 8], sizes = [8, 8], strides = [1, 1]} : vector<8x32xf32> to vector<8x8xf32>
    %44 = vector.extract_strided_slice %16 {offsets = [0, 16], sizes = [8, 8], strides = [1, 1]} : vector<8x32xf32> to vector<8x8xf32>
    %45 = vector.extract_strided_slice %16 {offsets = [0, 24], sizes = [8, 8], strides = [1, 1]} : vector<8x32xf32> to vector<8x8xf32>
    %46 = vector.shape_cast %42 : vector<8x8xf32> to vector<1x8x8xf32>
    %47 = vector.shape_cast %43 : vector<8x8xf32> to vector<1x8x8xf32>
    %48 = vector.shape_cast %44 : vector<8x8xf32> to vector<1x8x8xf32>
    %49 = vector.shape_cast %45 : vector<8x8xf32> to vector<1x8x8xf32>
    %50 = tpu.concatenate %46, %47, %48, %49 in 0 : vector<1x8x8xf32>, vector<1x8x8xf32>, vector<1x8x8xf32>, vector<1x8x8xf32> -> vector<4x8x8xf32>
    %51 = arith.truncf %32 : vector<4x8x8xf32> to vector<4x8x8xbf16>
    %52 = arith.truncf %41 : vector<4x8x8xf32> to vector<4x8x8xbf16>
    "tpu.trace_start"() <{level = 10 : i32, message = "hqd,hkd->hqk"}> : () -> ()
    %cst_20 = arith.constant dense<0.000000e+00> : vector<4x8x8xf32>
    %53 = tpu.matmul %51, %52, %cst_20 {dimension_numbers = #tpu.dot_dimension_numbers<[2], [2], [1], [1], [0, 0, 0, 1, 1, 1], [0], [0]>} : vector<4x8x8xbf16>, vector<4x8x8xbf16>, vector<4x8x8xf32> -> vector<4x8x8xf32>
    "tpu.trace_stop"() : () -> ()
    %54 = vector.shape_cast %17 : vector<8x8xf32> to vector<1x8x8xf32>
    %55 = vector.broadcast %54 : vector<1x8x8xf32> to vector<4x8x8xf32>
    %56 = arith.addf %53, %55 : vector<4x8x8xf32>
    %cst_21 = arith.constant dense<0xFF800000> : vector<4x8xf32>
    %57 = vector.multi_reduction <maximumf>, %56, %cst_21 [2] : vector<4x8x8xf32> to vector<4x8xf32>
    %58 = vector.shape_cast %57 : vector<4x8xf32> to vector<4x8x1xf32>
    %59 = vector.broadcast %58 : vector<4x8x1xf32> to vector<4x8x8xf32>
    %60 = arith.subf %56, %59 : vector<4x8x8xf32>
    %61 = math.exp %60 : vector<4x8x8xf32>
    %cst_22 = arith.constant dense<0.000000e+00> : vector<4x8xf32>
    %62 = vector.multi_reduction <add>, %61, %cst_22 [2] : vector<4x8x8xf32> to vector<4x8xf32>
    %63 = vector.shape_cast %62 : vector<4x8xf32> to vector<4x8x1xf32>
    %64 = vector.broadcast %63 : vector<4x8x1xf32> to vector<4x8x8xf32>
    %65 = arith.divf %61, %64 : vector<4x8x8xf32>
    %66 = arith.truncf %65 : vector<4x8x8xf32> to vector<4x8x8xbf16>
    %67 = arith.truncf %50 : vector<4x8x8xf32> to vector<4x8x8xbf16>
    "tpu.trace_start"() <{level = 10 : i32, message = "hqk,hkd->hqd"}> : () -> ()
    %cst_23 = arith.constant dense<0.000000e+00> : vector<4x8x8xf32>
    %68 = tpu.matmul %66, %67, %cst_23 {dimension_numbers = #tpu.dot_dimension_numbers<[2], [1], [1], [2], [0, 0, 0, 1, 1, 2], [0], [0]>} : vector<4x8x8xbf16>, vector<4x8x8xbf16>, vector<4x8x8xf32> -> vector<4x8x8xf32>
    "tpu.trace_stop"() : () -> ()
    %69 = vector.extract_strided_slice %68 {offsets = [0, 0, 0], sizes = [1, 8, 8], strides = [1, 1, 1]} : vector<4x8x8xf32> to vector<1x8x8xf32>
    %70 = vector.shape_cast %69 : vector<1x8x8xf32> to vector<8x8xf32>
    %71 = vector.extract_strided_slice %68 {offsets = [1, 0, 0], sizes = [1, 8, 8], strides = [1, 1, 1]} : vector<4x8x8xf32> to vector<1x8x8xf32>
    %72 = vector.shape_cast %71 : vector<1x8x8xf32> to vector<8x8xf32>
    %73 = vector.extract_strided_slice %68 {offsets = [2, 0, 0], sizes = [1, 8, 8], strides = [1, 1, 1]} : vector<4x8x8xf32> to vector<1x8x8xf32>
    %74 = vector.shape_cast %73 : vector<1x8x8xf32> to vector<8x8xf32>
    %75 = vector.extract_strided_slice %68 {offsets = [3, 0, 0], sizes = [1, 8, 8], strides = [1, 1, 1]} : vector<4x8x8xf32> to vector<1x8x8xf32>
    %76 = vector.shape_cast %75 : vector<1x8x8xf32> to vector<8x8xf32>
    %77 = tpu.concatenate %70, %72, %74, %76 in 1 : vector<8x8xf32>, vector<8x8xf32>, vector<8x8xf32>, vector<8x8xf32> -> vector<8x32xf32>
    %78 = arith.truncf %77 : vector<8x32xf32> to vector<8x32xbf16>
    %cst_24 = arith.constant dense<0.000000e+00> : vector<8x32xf32>
    %79 = tpu.matmul %78, %19, %cst_24 {dimension_numbers = #tpu.dot_dimension_numbers<[1], [0], [0], [1], [0, 0, 1, 1], [], []>} : vector<8x32xbf16>, vector<32x32xbf16>, vector<8x32xf32> -> vector<8x32xf32>
    %80 = vector.broadcast %21 : vector<1x32xf32> to vector<8x32xf32>
    %81 = arith.addf %79, %80 : vector<8x32xf32>
    %82 = arith.addf %3, %81 : vector<8x32xf32>
    %c0_25 = arith.constant 0 : index
    %c0_26 = arith.constant 0 : index
    %c0_27 = arith.constant 0 : index
    %83 = vector.load %arg9[%c0_25, %c0_26, %c0_27] : memref<1x1x32xf32, #tpu.memory_space<vmem>>, vector<1x1x32xf32>
    %84 = vector.shape_cast %83 : vector<1x1x32xf32> to vector<1x32xf32>
    %c0_28 = arith.constant 0 : index
    %c0_29 = arith.constant 0 : index
    %c0_30 = arith.constant 0 : index
    %85 = vector.load %arg10[%c0_28, %c0_29, %c0_30] : memref<1x1x32xf32, #tpu.memory_space<vmem>>, vector<1x1x32xf32>
    %86 = vector.shape_cast %85 : vector<1x1x32xf32> to vector<1x32xf32>
    %cst_31 = arith.constant dense<0.000000e+00> : vector<8xf32>
    %87 = vector.multi_reduction <add>, %82, %cst_31 [1] : vector<8x32xf32> to vector<8xf32>
    %88 = vector.shape_cast %87 : vector<8xf32> to vector<8x1xf32>
    %cst_32 = arith.constant 3.200000e+01 : f32
    %89 = vector.broadcast %cst_32 : f32 to vector<8x1xf32>
    %90 = arith.divf %88, %89 : vector<8x1xf32>
    %91 = vector.broadcast %90 : vector<8x1xf32> to vector<8x32xf32>
    %92 = arith.subf %82, %91 : vector<8x32xf32>
    %93 = arith.mulf %92, %92 : vector<8x32xf32>
    %cst_33 = arith.constant dense<0.000000e+00> : vector<8xf32>
    %94 = vector.multi_reduction <add>, %93, %cst_33 [1] : vector<8x32xf32> to vector<8xf32>
    %95 = vector.shape_cast %94 : vector<8xf32> to vector<8x1xf32>
    %cst_34 = arith.constant 3.200000e+01 : f32
    %96 = vector.broadcast %cst_34 : f32 to vector<8x1xf32>
    %97 = arith.divf %95, %96 : vector<8x1xf32>
    %cst_35 = arith.constant 9.99999974E-6 : f32
    %98 = vector.broadcast %cst_35 : f32 to vector<8x1xf32>
    %99 = arith.addf %97, %98 : vector<8x1xf32>
    %100 = math.rsqrt %99 : vector<8x1xf32>
    %101 = vector.broadcast %100 : vector<8x1xf32> to vector<8x32xf32>
    %102 = arith.mulf %92, %101 : vector<8x32xf32>
    %103 = vector.broadcast %84 : vector<1x32xf32> to vector<8x32xf32>
    %104 = arith.mulf %102, %103 : vector<8x32xf32>
    %105 = vector.broadcast %86 : vector<1x32xf32> to vector<8x32xf32>
    %106 = arith.addf %104, %105 : vector<8x32xf32>
    %c0_36 = arith.constant 0 : index
    %c0_37 = arith.constant 0 : index
    %c0_38 = arith.constant 0 : index
    %107 = vector.load %arg11[%c0_36, %c0_37, %c0_38] : memref<1x32x32xbf16, #tpu.memory_space<vmem>>, vector<1x32x32xbf16>
    %108 = vector.shape_cast %107 : vector<1x32x32xbf16> to vector<32x32xbf16>
    %109 = arith.truncf %106 : vector<8x32xf32> to vector<8x32xbf16>
    %cst_39 = arith.constant dense<0.000000e+00> : vector<8x32xf32>
    %110 = tpu.matmul %109, %108, %cst_39 {dimension_numbers = #tpu.dot_dimension_numbers<[1], [0], [0], [1], [0, 0, 1, 1], [], []>} : vector<8x32xbf16>, vector<32x32xbf16>, vector<8x32xf32> -> vector<8x32xf32>
    %c0_40 = arith.constant 0 : index
    %c0_41 = arith.constant 0 : index
    %c0_42 = arith.constant 0 : index
    %111 = vector.load %arg12[%c0_40, %c0_41, %c0_42] : memref<1x1x32xf32, #tpu.memory_space<vmem>>, vector<1x1x32xf32>
    %112 = vector.shape_cast %111 : vector<1x1x32xf32> to vector<1x32xf32>
    %113 = vector.broadcast %112 : vector<1x32xf32> to vector<8x32xf32>
    %114 = arith.addf %110, %113 : vector<8x32xf32>
    %c0_43 = arith.constant 0 : index
    %c0_44 = arith.constant 0 : index
    %c0_45 = arith.constant 0 : index
    %115 = vector.load %arg13[%c0_43, %c0_44, %c0_45] : memref<1x32x64xbf16, #tpu.memory_space<vmem>>, vector<1x32x64xbf16>
    %116 = vector.shape_cast %115 : vector<1x32x64xbf16> to vector<32x64xbf16>
    %117 = arith.truncf %5 : vector<8x32xf32> to vector<8x32xbf16>
    %cst_46 = arith.constant dense<0.000000e+00> : vector<8x64xf32>
    %118 = tpu.matmul %117, %116, %cst_46 {dimension_numbers = #tpu.dot_dimension_numbers<[1], [0], [0], [1], [0, 0, 1, 1], [], []>} : vector<8x32xbf16>, vector<32x64xbf16>, vector<8x64xf32> -> vector<8x64xf32>
    %c0_47 = arith.constant 0 : index
    %c0_48 = arith.constant 0 : index
    %c0_49 = arith.constant 0 : index
    %119 = vector.load %arg14[%c0_47, %c0_48, %c0_49] : memref<1x1x64xf32, #tpu.memory_space<vmem>>, vector<1x1x64xf32>
    %120 = vector.shape_cast %119 : vector<1x1x64xf32> to vector<1x64xf32>
    %121 = vector.broadcast %120 : vector<1x64xf32> to vector<8x64xf32>
    %122 = arith.addf %118, %121 : vector<8x64xf32>
    %123 = vector.extract_strided_slice %122 {offsets = [0, 0], sizes = [8, 32], strides = [1, 1]} : vector<8x64xf32> to vector<8x32xf32>
    %124 = vector.extract_strided_slice %122 {offsets = [0, 32], sizes = [8, 32], strides = [1, 1]} : vector<8x64xf32> to vector<8x32xf32>
    %c0_50 = arith.constant 0 : index
    %c0_51 = arith.constant 0 : index
    %c0_52 = arith.constant 0 : index
    %125 = vector.load %arg15[%c0_50, %c0_51, %c0_52] : memref<1x32x32xbf16, #tpu.memory_space<vmem>>, vector<1x32x32xbf16>
    %126 = vector.shape_cast %125 : vector<1x32x32xbf16> to vector<32x32xbf16>
    %c0_53 = arith.constant 0 : index
    %c0_54 = arith.constant 0 : index
    %c0_55 = arith.constant 0 : index
    %127 = vector.load %arg16[%c0_53, %c0_54, %c0_55] : memref<1x1x32xf32, #tpu.memory_space<vmem>>, vector<1x1x32xf32>
    %128 = vector.shape_cast %127 : vector<1x1x32xf32> to vector<1x32xf32>
    %cst_56 = arith.constant 0.353553385 : f32
    %129 = vector.broadcast %cst_56 : f32 to vector<8x32xf32>
    %130 = arith.mulf %114, %129 : vector<8x32xf32>
    %131 = vector.extract_strided_slice %130 {offsets = [0, 0], sizes = [8, 8], strides = [1, 1]} : vector<8x32xf32> to vector<8x8xf32>
    %132 = vector.extract_strided_slice %130 {offsets = [0, 8], sizes = [8, 8], strides = [1, 1]} : vector<8x32xf32> to vector<8x8xf32>
    %133 = vector.extract_strided_slice %130 {offsets = [0, 16], sizes = [8, 8], strides = [1, 1]} : vector<8x32xf32> to vector<8x8xf32>
    %134 = vector.extract_strided_slice %130 {offsets = [0, 24], sizes = [8, 8], strides = [1, 1]} : vector<8x32xf32> to vector<8x8xf32>
    %135 = vector.shape_cast %131 : vector<8x8xf32> to vector<1x8x8xf32>
    %136 = vector.shape_cast %132 : vector<8x8xf32> to vector<1x8x8xf32>
    %137 = vector.shape_cast %133 : vector<8x8xf32> to vector<1x8x8xf32>
    %138 = vector.shape_cast %134 : vector<8x8xf32> to vector<1x8x8xf32>
    %139 = tpu.concatenate %135, %136, %137, %138 in 0 : vector<1x8x8xf32>, vector<1x8x8xf32>, vector<1x8x8xf32>, vector<1x8x8xf32> -> vector<4x8x8xf32>
    %140 = vector.extract_strided_slice %123 {offsets = [0, 0], sizes = [8, 8], strides = [1, 1]} : vector<8x32xf32> to vector<8x8xf32>
    %141 = vector.extract_strided_slice %123 {offsets = [0, 8], sizes = [8, 8], strides = [1, 1]} : vector<8x32xf32> to vector<8x8xf32>
    %142 = vector.extract_strided_slice %123 {offsets = [0, 16], sizes = [8, 8], strides = [1, 1]} : vector<8x32xf32> to vector<8x8xf32>
    %143 = vector.extract_strided_slice %123 {offsets = [0, 24], sizes = [8, 8], strides = [1, 1]} : vector<8x32xf32> to vector<8x8xf32>
    %144 = vector.shape_cast %140 : vector<8x8xf32> to vector<1x8x8xf32>
    %145 = vector.shape_cast %141 : vector<8x8xf32> to vector<1x8x8xf32>
    %146 = vector.shape_cast %142 : vector<8x8xf32> to vector<1x8x8xf32>
    %147 = vector.shape_cast %143 : vector<8x8xf32> to vector<1x8x8xf32>
    %148 = tpu.concatenate %144, %145, %146, %147 in 0 : vector<1x8x8xf32>, vector<1x8x8xf32>, vector<1x8x8xf32>, vector<1x8x8xf32> -> vector<4x8x8xf32>
    %149 = vector.extract_strided_slice %124 {offsets = [0, 0], sizes = [8, 8], strides = [1, 1]} : vector<8x32xf32> to vector<8x8xf32>
    %150 = vector.extract_strided_slice %124 {offsets = [0, 8], sizes = [8, 8], strides = [1, 1]} : vector<8x32xf32> to vector<8x8xf32>
    %151 = vector.extract_strided_slice %124 {offsets = [0, 16], sizes = [8, 8], strides = [1, 1]} : vector<8x32xf32> to vector<8x8xf32>
    %152 = vector.extract_strided_slice %124 {offsets = [0, 24], sizes = [8, 8], strides = [1, 1]} : vector<8x32xf32> to vector<8x8xf32>
    %153 = vector.shape_cast %149 : vector<8x8xf32> to vector<1x8x8xf32>
    %154 = vector.shape_cast %150 : vector<8x8xf32> to vector<1x8x8xf32>
    %155 = vector.shape_cast %151 : vector<8x8xf32> to vector<1x8x8xf32>
    %156 = vector.shape_cast %152 : vector<8x8xf32> to vector<1x8x8xf32>
    %157 = tpu.concatenate %153, %154, %155, %156 in 0 : vector<1x8x8xf32>, vector<1x8x8xf32>, vector<1x8x8xf32>, vector<1x8x8xf32> -> vector<4x8x8xf32>
    %158 = arith.truncf %139 : vector<4x8x8xf32> to vector<4x8x8xbf16>
    %159 = arith.truncf %148 : vector<4x8x8xf32> to vector<4x8x8xbf16>
    "tpu.trace_start"() <{level = 10 : i32, message = "hqd,hkd->hqk"}> : () -> ()
    %cst_57 = arith.constant dense<0.000000e+00> : vector<4x8x8xf32>
    %160 = tpu.matmul %158, %159, %cst_57 {dimension_numbers = #tpu.dot_dimension_numbers<[2], [2], [1], [1], [0, 0, 0, 1, 1, 1], [0], [0]>} : vector<4x8x8xbf16>, vector<4x8x8xbf16>, vector<4x8x8xf32> -> vector<4x8x8xf32>
    "tpu.trace_stop"() : () -> ()
    %cst_58 = arith.constant dense<0xFF800000> : vector<4x8xf32>
    %161 = vector.multi_reduction <maximumf>, %160, %cst_58 [2] : vector<4x8x8xf32> to vector<4x8xf32>
    %162 = vector.shape_cast %161 : vector<4x8xf32> to vector<4x8x1xf32>
    %163 = vector.broadcast %162 : vector<4x8x1xf32> to vector<4x8x8xf32>
    %164 = arith.subf %160, %163 : vector<4x8x8xf32>
    %165 = math.exp %164 : vector<4x8x8xf32>
    %cst_59 = arith.constant dense<0.000000e+00> : vector<4x8xf32>
    %166 = vector.multi_reduction <add>, %165, %cst_59 [2] : vector<4x8x8xf32> to vector<4x8xf32>
    %167 = vector.shape_cast %166 : vector<4x8xf32> to vector<4x8x1xf32>
    %168 = vector.broadcast %167 : vector<4x8x1xf32> to vector<4x8x8xf32>
    %169 = arith.divf %165, %168 : vector<4x8x8xf32>
    %170 = arith.truncf %169 : vector<4x8x8xf32> to vector<4x8x8xbf16>
    %171 = arith.truncf %157 : vector<4x8x8xf32> to vector<4x8x8xbf16>
    "tpu.trace_start"() <{level = 10 : i32, message = "hqk,hkd->hqd"}> : () -> ()
    %cst_60 = arith.constant dense<0.000000e+00> : vector<4x8x8xf32>
    %172 = tpu.matmul %170, %171, %cst_60 {dimension_numbers = #tpu.dot_dimension_numbers<[2], [1], [1], [2], [0, 0, 0, 1, 1, 2], [0], [0]>} : vector<4x8x8xbf16>, vector<4x8x8xbf16>, vector<4x8x8xf32> -> vector<4x8x8xf32>
    "tpu.trace_stop"() : () -> ()
    %173 = vector.extract_strided_slice %172 {offsets = [0, 0, 0], sizes = [1, 8, 8], strides = [1, 1, 1]} : vector<4x8x8xf32> to vector<1x8x8xf32>
    %174 = vector.shape_cast %173 : vector<1x8x8xf32> to vector<8x8xf32>
    %175 = vector.extract_strided_slice %172 {offsets = [1, 0, 0], sizes = [1, 8, 8], strides = [1, 1, 1]} : vector<4x8x8xf32> to vector<1x8x8xf32>
    %176 = vector.shape_cast %175 : vector<1x8x8xf32> to vector<8x8xf32>
    %177 = vector.extract_strided_slice %172 {offsets = [2, 0, 0], sizes = [1, 8, 8], strides = [1, 1, 1]} : vector<4x8x8xf32> to vector<1x8x8xf32>
    %178 = vector.shape_cast %177 : vector<1x8x8xf32> to vector<8x8xf32>
    %179 = vector.extract_strided_slice %172 {offsets = [3, 0, 0], sizes = [1, 8, 8], strides = [1, 1, 1]} : vector<4x8x8xf32> to vector<1x8x8xf32>
    %180 = vector.shape_cast %179 : vector<1x8x8xf32> to vector<8x8xf32>
    %181 = tpu.concatenate %174, %176, %178, %180 in 1 : vector<8x8xf32>, vector<8x8xf32>, vector<8x8xf32>, vector<8x8xf32> -> vector<8x32xf32>
    %182 = arith.truncf %181 : vector<8x32xf32> to vector<8x32xbf16>
    %cst_61 = arith.constant dense<0.000000e+00> : vector<8x32xf32>
    %183 = tpu.matmul %182, %126, %cst_61 {dimension_numbers = #tpu.dot_dimension_numbers<[1], [0], [0], [1], [0, 0, 1, 1], [], []>} : vector<8x32xbf16>, vector<32x32xbf16>, vector<8x32xf32> -> vector<8x32xf32>
    %184 = vector.broadcast %128 : vector<1x32xf32> to vector<8x32xf32>
    %185 = arith.addf %183, %184 : vector<8x32xf32>
    %186 = arith.addf %106, %185 : vector<8x32xf32>
    %c0_62 = arith.constant 0 : index
    %c0_63 = arith.constant 0 : index
    %c0_64 = arith.constant 0 : index
    %187 = vector.load %arg17[%c0_62, %c0_63, %c0_64] : memref<1x1x32xf32, #tpu.memory_space<vmem>>, vector<1x1x32xf32>
    %188 = vector.shape_cast %187 : vector<1x1x32xf32> to vector<1x32xf32>
    %c0_65 = arith.constant 0 : index
    %c0_66 = arith.constant 0 : index
    %c0_67 = arith.constant 0 : index
    %189 = vector.load %arg18[%c0_65, %c0_66, %c0_67] : memref<1x1x32xf32, #tpu.memory_space<vmem>>, vector<1x1x32xf32>
    %190 = vector.shape_cast %189 : vector<1x1x32xf32> to vector<1x32xf32>
    %cst_68 = arith.constant dense<0.000000e+00> : vector<8xf32>
    %191 = vector.multi_reduction <add>, %186, %cst_68 [1] : vector<8x32xf32> to vector<8xf32>
    %192 = vector.shape_cast %191 : vector<8xf32> to vector<8x1xf32>
    %cst_69 = arith.constant 3.200000e+01 : f32
    %193 = vector.broadcast %cst_69 : f32 to vector<8x1xf32>
    %194 = arith.divf %192, %193 : vector<8x1xf32>
    %195 = vector.broadcast %194 : vector<8x1xf32> to vector<8x32xf32>
    %196 = arith.subf %186, %195 : vector<8x32xf32>
    %197 = arith.mulf %196, %196 : vector<8x32xf32>
    %cst_70 = arith.constant dense<0.000000e+00> : vector<8xf32>
    %198 = vector.multi_reduction <add>, %197, %cst_70 [1] : vector<8x32xf32> to vector<8xf32>
    %199 = vector.shape_cast %198 : vector<8xf32> to vector<8x1xf32>
    %cst_71 = arith.constant 3.200000e+01 : f32
    %200 = vector.broadcast %cst_71 : f32 to vector<8x1xf32>
    %201 = arith.divf %199, %200 : vector<8x1xf32>
    %cst_72 = arith.constant 9.99999974E-6 : f32
    %202 = vector.broadcast %cst_72 : f32 to vector<8x1xf32>
    %203 = arith.addf %201, %202 : vector<8x1xf32>
    %204 = math.rsqrt %203 : vector<8x1xf32>
    %205 = vector.broadcast %204 : vector<8x1xf32> to vector<8x32xf32>
    %206 = arith.mulf %196, %205 : vector<8x32xf32>
    %207 = vector.broadcast %188 : vector<1x32xf32> to vector<8x32xf32>
    %208 = arith.mulf %206, %207 : vector<8x32xf32>
    %209 = vector.broadcast %190 : vector<1x32xf32> to vector<8x32xf32>
    %210 = arith.addf %208, %209 : vector<8x32xf32>
    %c0_73 = arith.constant 0 : index
    %c0_74 = arith.constant 0 : index
    %c0_75 = arith.constant 0 : index
    %211 = vector.load %arg19[%c0_73, %c0_74, %c0_75] : memref<1x32x64xbf16, #tpu.memory_space<vmem>>, vector<1x32x64xbf16>
    %212 = vector.shape_cast %211 : vector<1x32x64xbf16> to vector<32x64xbf16>
    %213 = arith.truncf %210 : vector<8x32xf32> to vector<8x32xbf16>
    %cst_76 = arith.constant dense<0.000000e+00> : vector<8x64xf32>
    %214 = tpu.matmul %213, %212, %cst_76 {dimension_numbers = #tpu.dot_dimension_numbers<[1], [0], [0], [1], [0, 0, 1, 1], [], []>} : vector<8x32xbf16>, vector<32x64xbf16>, vector<8x64xf32> -> vector<8x64xf32>
    %c0_77 = arith.constant 0 : index
    %c0_78 = arith.constant 0 : index
    %c0_79 = arith.constant 0 : index
    %215 = vector.load %arg20[%c0_77, %c0_78, %c0_79] : memref<1x1x64xf32, #tpu.memory_space<vmem>>, vector<1x1x64xf32>
    %216 = vector.shape_cast %215 : vector<1x1x64xf32> to vector<1x64xf32>
    %217 = vector.broadcast %216 : vector<1x64xf32> to vector<8x64xf32>
    %218 = arith.addf %214, %217 : vector<8x64xf32>
    %cst_80 = arith.constant 0.000000e+00 : f32
    %219 = vector.broadcast %cst_80 : f32 to vector<8x64xf32>
    %220 = arith.maximumf %218, %219 : vector<8x64xf32>
    %c0_81 = arith.constant 0 : index
    %c0_82 = arith.constant 0 : index
    %c0_83 = arith.constant 0 : index
    %221 = vector.load %arg21[%c0_81, %c0_82, %c0_83] : memref<1x64x32xbf16, #tpu.memory_space<vmem>>, vector<1x64x32xbf16>
    %222 = vector.shape_cast %221 : vector<1x64x32xbf16> to vector<64x32xbf16>
    %223 = arith.truncf %220 : vector<8x64xf32> to vector<8x64xbf16>
    %cst_84 = arith.constant dense<0.000000e+00> : vector<8x32xf32>
    %224 = tpu.matmul %223, %222, %cst_84 {dimension_numbers = #tpu.dot_dimension_numbers<[1], [0], [0], [1], [0, 0, 1, 1], [], []>} : vector<8x64xbf16>, vector<64x32xbf16>, vector<8x32xf32> -> vector<8x32xf32>
    %c0_85 = arith.constant 0 : index
    %c0_86 = arith.constant 0 : index
    %c0_87 = arith.constant 0 : index
    %225 = vector.load %arg22[%c0_85, %c0_86, %c0_87] : memref<1x1x32xf32, #tpu.memory_space<vmem>>, vector<1x1x32xf32>
    %226 = vector.shape_cast %225 : vector<1x1x32xf32> to vector<1x32xf32>
    %227 = vector.broadcast %226 : vector<1x32xf32> to vector<8x32xf32>
    %228 = arith.addf %224, %227 : vector<8x32xf32>
    %229 = arith.addf %210, %228 : vector<8x32xf32>
    %c0_88 = arith.constant 0 : index
    %c0_89 = arith.constant 0 : index
    %c0_90 = arith.constant 0 : index
    %230 = vector.load %arg23[%c0_88, %c0_89, %c0_90] : memref<1x1x32xf32, #tpu.memory_space<vmem>>, vector<1x1x32xf32>
    %231 = vector.shape_cast %230 : vector<1x1x32xf32> to vector<1x32xf32>
    %c0_91 = arith.constant 0 : index
    %c0_92 = arith.constant 0 : index
    %c0_93 = arith.constant 0 : index
    %232 = vector.load %arg24[%c0_91, %c0_92, %c0_93] : memref<1x1x32xf32, #tpu.memory_space<vmem>>, vector<1x1x32xf32>
    %233 = vector.shape_cast %232 : vector<1x1x32xf32> to vector<1x32xf32>
    %cst_94 = arith.constant dense<0.000000e+00> : vector<8xf32>
    %234 = vector.multi_reduction <add>, %229, %cst_94 [1] : vector<8x32xf32> to vector<8xf32>
    %235 = vector.shape_cast %234 : vector<8xf32> to vector<8x1xf32>
    %cst_95 = arith.constant 3.200000e+01 : f32
    %236 = vector.broadcast %cst_95 : f32 to vector<8x1xf32>
    %237 = arith.divf %235, %236 : vector<8x1xf32>
    %238 = vector.broadcast %237 : vector<8x1xf32> to vector<8x32xf32>
    %239 = arith.subf %229, %238 : vector<8x32xf32>
    %240 = arith.mulf %239, %239 : vector<8x32xf32>
    %cst_96 = arith.constant dense<0.000000e+00> : vector<8xf32>
    %241 = vector.multi_reduction <add>, %240, %cst_96 [1] : vector<8x32xf32> to vector<8xf32>
    %242 = vector.shape_cast %241 : vector<8xf32> to vector<8x1xf32>
    %cst_97 = arith.constant 3.200000e+01 : f32
    %243 = vector.broadcast %cst_97 : f32 to vector<8x1xf32>
    %244 = arith.divf %242, %243 : vector<8x1xf32>
    %cst_98 = arith.constant 9.99999974E-6 : f32
    %245 = vector.broadcast %cst_98 : f32 to vector<8x1xf32>
    %246 = arith.addf %244, %245 : vector<8x1xf32>
    %247 = math.rsqrt %246 : vector<8x1xf32>
    %248 = vector.broadcast %247 : vector<8x1xf32> to vector<8x32xf32>
    %249 = arith.mulf %239, %248 : vector<8x32xf32>
    %250 = vector.broadcast %231 : vector<1x32xf32> to vector<8x32xf32>
    %251 = arith.mulf %249, %250 : vector<8x32xf32>
    %252 = vector.broadcast %233 : vector<1x32xf32> to vector<8x32xf32>
    %253 = arith.addf %251, %252 : vector<8x32xf32>
    %c0_99 = arith.constant 0 : index
    %c0_100 = arith.constant 0 : index
    %254 = vector.load %arg30[%c0_99, %c0_100] : memref<8x32xf32, #tpu.memory_space<vmem>>, vector<8x32xf32>
    tpu.vector_store %arg30[%c0_99, %c0_100], %253 {strides = array<i32>} : memref<8x32xf32, #tpu.memory_space<vmem>>, vector<8x32xf32>,
    %c1_i32 = arith.constant 1 : i32
    %255 = arith.cmpi eq, %arg1, %c1_i32 : i32
    %256 = arith.extui %255 : i1 to i32
    %c0_i32_101 = arith.constant 0 : i32
    %257 = arith.cmpi ne, %256, %c0_i32_101 : i32
    scf.if %257 {
      %c0_102 = arith.constant 0 : index
      %c0_103 = arith.constant 0 : index
      %258 = vector.load %arg25[%c0_102, %c0_103] : memref<1x32xf32, #tpu.memory_space<vmem>>, vector<1x32xf32>
      %c0_104 = arith.constant 0 : index
      %c0_105 = arith.constant 0 : index
      %259 = vector.load %arg26[%c0_104, %c0_105] : memref<1x32xf32, #tpu.memory_space<vmem>>, vector<1x32xf32>
      %cst_106 = arith.constant dense<0.000000e+00> : vector<8xf32>
      %260 = vector.multi_reduction <add>, %253, %cst_106 [1] : vector<8x32xf32> to vector<8xf32>
      %261 = vector.shape_cast %260 : vector<8xf32> to vector<8x1xf32>
      %cst_107 = arith.constant 3.200000e+01 : f32
      %262 = vector.broadcast %cst_107 : f32 to vector<8x1xf32>
      %263 = arith.divf %261, %262 : vector<8x1xf32>
      %264 = vector.broadcast %263 : vector<8x1xf32> to vector<8x32xf32>
      %265 = arith.subf %253, %264 : vector<8x32xf32>
      %266 = arith.mulf %265, %265 : vector<8x32xf32>
      %cst_108 = arith.constant dense<0.000000e+00> : vector<8xf32>
      %267 = vector.multi_reduction <add>, %266, %cst_108 [1] : vector<8x32xf32> to vector<8xf32>
      %268 = vector.shape_cast %267 : vector<8xf32> to vector<8x1xf32>
      %cst_109 = arith.constant 3.200000e+01 : f32
      %269 = vector.broadcast %cst_109 : f32 to vector<8x1xf32>
      %270 = arith.divf %268, %269 : vector<8x1xf32>
      %cst_110 = arith.constant 9.99999974E-6 : f32
      %271 = vector.broadcast %cst_110 : f32 to vector<8x1xf32>
      %272 = arith.addf %270, %271 : vector<8x1xf32>
      %273 = math.rsqrt %272 : vector<8x1xf32>
      %274 = vector.broadcast %273 : vector<8x1xf32> to vector<8x32xf32>
      %275 = arith.mulf %265, %274 : vector<8x32xf32>
      %276 = vector.broadcast %258 : vector<1x32xf32> to vector<8x32xf32>
      %277 = arith.mulf %275, %276 : vector<8x32xf32>
      %278 = vector.broadcast %259 : vector<1x32xf32> to vector<8x32xf32>
      %279 = arith.addf %277, %278 : vector<8x32xf32>
      %c0_111 = arith.constant 0 : index
      %c0_112 = arith.constant 0 : index
      %280 = vector.load %arg27[%c0_111, %c0_112] : memref<32x128xbf16, #tpu.memory_space<vmem>>, vector<32x128xbf16>
      %281 = arith.truncf %279 : vector<8x32xf32> to vector<8x32xbf16>
      %cst_113 = arith.constant dense<0.000000e+00> : vector<8x128xf32>
      %282 = tpu.matmul %281, %280, %cst_113 {dimension_numbers = #tpu.dot_dimension_numbers<[1], [0], [0], [1], [0, 0, 1, 1], [], []>} : vector<8x32xbf16>, vector<32x128xbf16>, vector<8x128xf32> -> vector<8x128xf32>
      %c0_114 = arith.constant 0 : index
      %c0_115 = arith.constant 0 : index
      %283 = vector.load %arg28[%c0_114, %c0_115] : memref<1x128xf32, #tpu.memory_space<vmem>>, vector<1x128xf32>
      %284 = vector.broadcast %283 : vector<1x128xf32> to vector<8x128xf32>
      %285 = arith.addf %282, %284 : vector<8x128xf32>
      %c0_116 = arith.constant 0 : index
      %c0_117 = arith.constant 0 : index
      %c0_118 = arith.constant 0 : index
      %286 = vector.load %arg29[%c0_116, %c0_117, %c0_118] : memref<1x8x128xf32, #tpu.memory_space<vmem>>, vector<1x8x128xf32>
      %287 = vector.shape_cast %286 : vector<1x8x128xf32> to vector<8x128xf32>
      %288 = vector.shape_cast %285 : vector<8x128xf32> to vector<1x8x128xf32>
      tpu.vector_store %arg29[%c0_116, %c0_117, %c0_118], %288 {strides = array<i32>} : memref<1x8x128xf32, #tpu.memory_space<vmem>>, vector<1x8x128xf32>,
    } else {
    }
    return
  }
  func.func @transform_0(%arg0: i32, %arg1: i32) -> (i32, i32, i32) {
    %c0_i32 = arith.constant 0 : i32
    %c0_i32_0 = arith.constant 0 : i32
    %c0_i32_1 = arith.constant 0 : i32
    return %arg0, %c0_i32, %c0_i32_0 : i32, i32, i32
  }
  func.func @transform_1(%arg0: i32, %arg1: i32) -> (i32, i32, i32) {
    %c0_i32 = arith.constant 0 : i32
    %c0_i32_0 = arith.constant 0 : i32
    %c0_i32_1 = arith.constant 0 : i32
    return %arg0, %c0_i32, %c0_i32_0 : i32, i32, i32
  }
  func.func @transform_2(%arg0: i32, %arg1: i32) -> (i32, i32) {
    %c0_i32 = arith.constant 0 : i32
    %c0_i32_0 = arith.constant 0 : i32
    %c0_i32_1 = arith.constant 0 : i32
    return %c0_i32, %c0_i32_0 : i32, i32
  }
  func.func @transform_3(%arg0: i32, %arg1: i32) -> (i32, i32, i32) {
    %c0_i32 = arith.constant 0 : i32
    %c0_i32_0 = arith.constant 0 : i32
    %c0_i32_1 = arith.constant 0 : i32
    return %arg1, %c0_i32, %c0_i32_0 : i32, i32, i32
  }
  func.func @transform_4(%arg0: i32, %arg1: i32) -> (i32, i32, i32) {
    %c0_i32 = arith.constant 0 : i32
    %c0_i32_0 = arith.constant 0 : i32
    %c0_i32_1 = arith.constant 0 : i32
    return %arg1, %c0_i32, %c0_i32_0 : i32, i32, i32
  }
  func.func @transform_5(%arg0: i32, %arg1: i32) -> (i32, i32, i32) {
    %c0_i32 = arith.constant 0 : i32
    %c0_i32_0 = arith.constant 0 : i32
    %c0_i32_1 = arith.constant 0 : i32
    return %arg1, %c0_i32, %c0_i32_0 : i32, i32, i32
  }
  func.func @transform_6(%arg0: i32, %arg1: i32) -> (i32, i32, i32) {
    %c0_i32 = arith.constant 0 : i32
    %c0_i32_0 = arith.constant 0 : i32
    %c0_i32_1 = arith.constant 0 : i32
    return %arg1, %c0_i32, %c0_i32_0 : i32, i32, i32
  }
  func.func @transform_7(%arg0: i32, %arg1: i32) -> (i32, i32, i32) {
    %c0_i32 = arith.constant 0 : i32
    %c0_i32_0 = arith.constant 0 : i32
    %c0_i32_1 = arith.constant 0 : i32
    return %arg1, %c0_i32, %c0_i32_0 : i32, i32, i32
  }
  func.func @transform_8(%arg0: i32, %arg1: i32) -> (i32, i32, i32) {
    %c0_i32 = arith.constant 0 : i32
    %c0_i32_0 = arith.constant 0 : i32
    %c0_i32_1 = arith.constant 0 : i32
    return %arg1, %c0_i32, %c0_i32_0 : i32, i32, i32
  }
  func.func @transform_9(%arg0: i32, %arg1: i32) -> (i32, i32, i32) {
    %c0_i32 = arith.constant 0 : i32
    %c0_i32_0 = arith.constant 0 : i32
    %c0_i32_1 = arith.constant 0 : i32
    return %arg1, %c0_i32, %c0_i32_0 : i32, i32, i32
  }
  func.func @transform_10(%arg0: i32, %arg1: i32) -> (i32, i32, i32) {
    %c0_i32 = arith.constant 0 : i32
    %c0_i32_0 = arith.constant 0 : i32
    %c0_i32_1 = arith.constant 0 : i32
    return %arg1, %c0_i32, %c0_i32_0 : i32, i32, i32
  }
  func.func @transform_11(%arg0: i32, %arg1: i32) -> (i32, i32, i32) {
    %c0_i32 = arith.constant 0 : i32
    %c0_i32_0 = arith.constant 0 : i32
    %c0_i32_1 = arith.constant 0 : i32
    return %arg1, %c0_i32, %c0_i32_0 : i32, i32, i32
  }
  func.func @transform_12(%arg0: i32, %arg1: i32) -> (i32, i32, i32) {
    %c0_i32 = arith.constant 0 : i32
    %c0_i32_0 = arith.constant 0 : i32
    %c0_i32_1 = arith.constant 0 : i32
    return %arg1, %c0_i32, %c0_i32_0 : i32, i32, i32
  }
  func.func @transform_13(%arg0: i32, %arg1: i32) -> (i32, i32, i32) {
    %c0_i32 = arith.constant 0 : i32
    %c0_i32_0 = arith.constant 0 : i32
    %c0_i32_1 = arith.constant 0 : i32
    return %arg1, %c0_i32, %c0_i32_0 : i32, i32, i32
  }
  func.func @transform_14(%arg0: i32, %arg1: i32) -> (i32, i32, i32) {
    %c0_i32 = arith.constant 0 : i32
    %c0_i32_0 = arith.constant 0 : i32
    %c0_i32_1 = arith.constant 0 : i32
    return %arg1, %c0_i32, %c0_i32_0 : i32, i32, i32
  }
  func.func @transform_15(%arg0: i32, %arg1: i32) -> (i32, i32, i32) {
    %c0_i32 = arith.constant 0 : i32
    %c0_i32_0 = arith.constant 0 : i32
    %c0_i32_1 = arith.constant 0 : i32
    return %arg1, %c0_i32, %c0_i32_0 : i32, i32, i32
  }
  func.func @transform_16(%arg0: i32, %arg1: i32) -> (i32, i32, i32) {
    %c0_i32 = arith.constant 0 : i32
    %c0_i32_0 = arith.constant 0 : i32
    %c0_i32_1 = arith.constant 0 : i32
    return %arg1, %c0_i32, %c0_i32_0 : i32, i32, i32
  }
  func.func @transform_17(%arg0: i32, %arg1: i32) -> (i32, i32, i32) {
    %c0_i32 = arith.constant 0 : i32
    %c0_i32_0 = arith.constant 0 : i32
    %c0_i32_1 = arith.constant 0 : i32
    return %arg1, %c0_i32, %c0_i32_0 : i32, i32, i32
  }
  func.func @transform_18(%arg0: i32, %arg1: i32) -> (i32, i32, i32) {
    %c0_i32 = arith.constant 0 : i32
    %c0_i32_0 = arith.constant 0 : i32
    %c0_i32_1 = arith.constant 0 : i32
    return %arg1, %c0_i32, %c0_i32_0 : i32, i32, i32
  }
  func.func @transform_19(%arg0: i32, %arg1: i32) -> (i32, i32, i32) {
    %c0_i32 = arith.constant 0 : i32
    %c0_i32_0 = arith.constant 0 : i32
    %c0_i32_1 = arith.constant 0 : i32
    return %arg1, %c0_i32, %c0_i32_0 : i32, i32, i32
  }
  func.func @transform_20(%arg0: i32, %arg1: i32) -> (i32, i32, i32) {
    %c0_i32 = arith.constant 0 : i32
    %c0_i32_0 = arith.constant 0 : i32
    %c0_i32_1 = arith.constant 0 : i32
    return %arg1, %c0_i32, %c0_i32_0 : i32, i32, i32
  }
  func.func @transform_21(%arg0: i32, %arg1: i32) -> (i32, i32, i32) {
    %c0_i32 = arith.constant 0 : i32
    %c0_i32_0 = arith.constant 0 : i32
    %c0_i32_1 = arith.constant 0 : i32
    return %arg1, %c0_i32, %c0_i32_0 : i32, i32, i32
  }
  func.func @transform_22(%arg0: i32, %arg1: i32) -> (i32, i32, i32) {
    %c0_i32 = arith.constant 0 : i32
    %c0_i32_0 = arith.constant 0 : i32
    %c0_i32_1 = arith.constant 0 : i32
    return %arg1, %c0_i32, %c0_i32_0 : i32, i32, i32
  }
  func.func @transform_23(%arg0: i32, %arg1: i32) -> (i32, i32) {
    %c0_i32 = arith.constant 0 : i32
    %c0_i32_0 = arith.constant 0 : i32
    %c0_i32_1 = arith.constant 0 : i32
    return %c0_i32, %c0_i32_0 : i32, i32
  }
  func.func @transform_24(%arg0: i32, %arg1: i32) -> (i32, i32) {
    %c0_i32 = arith.constant 0 : i32
    %c0_i32_0 = arith.constant 0 : i32
    %c0_i32_1 = arith.constant 0 : i32
    return %c0_i32, %c0_i32_0 : i32, i32
  }
  func.func @transform_25(%arg0: i32, %arg1: i32) -> (i32, i32) {
    %c0_i32 = arith.constant 0 : i32
    %c0_i32_0 = arith.constant 0 : i32
    %c0_i32_1 = arith.constant 0 : i32
    return %c0_i32, %c0_i32_0 : i32, i32
  }
  func.func @transform_26(%arg0: i32, %arg1: i32) -> (i32, i32) {
    %c0_i32 = arith.constant 0 : i32
    %c0_i32_0 = arith.constant 0 : i32
    %c0_i32_1 = arith.constant 0 : i32
    return %c0_i32, %c0_i32_0 : i32, i32
  }
  func.func @transform_27(%arg0: i32, %arg1: i32) -> (i32, i32, i32) {
    %c0_i32 = arith.constant 0 : i32
    %c0_i32_0 = arith.constant 0 : i32
    %c0_i32_1 = arith.constant 0 : i32
    return %arg0, %c0_i32, %c0_i32_0 : i32, i32, i32
  }
}

</mosaic_0001>

<bundles_post_ra>
// kernel: _lambda_.2
= control target key start
LH: loop header
LB: loop body
LE: loop exit
PB: predicated region body
PF: predicated region fallthrough
CT: control target
= control target key end

     0   :  { %s2135_s18 = smov 0   ;;  %s2137_s19 = smov 0   ;;  %s2406_s0 = inlined_call_operand.vmem [shape: f32[2,8,32], index: 0, kind: input, shape index: {}]   ;;  %s2407_s1 = inlined_call_operand.vmem [shape: bf16[2,32,96], index: 1, kind: input, shape index: {}]   ;;  %s2408_s2 = inlined_call_operand.vmem [shape: f32[2,1,96], index: 2, kind: input, shape index: {}]   ;;  %s2409_s3 = inlined_call_operand.vmem [shape: bf16[2,32,32], index: 3, kind: input, shape index: {}]   ;;  %s2410_s4 = inlined_call_operand.vmem [shape: f32[2,1,32], index: 4, kind: input, shape index: {}]   ;;  %s2411_s5 = inlined_call_operand.vmem [shape: f32[2,1,32], index: 5, kind: input, shape index: {}]   ;;  %s2412_s6 = inlined_call_operand.vmem [shape: f32[2,1,32], index: 6, kind: input, shape index: {}]   ;;  %s2413_s7 = inlined_call_operand.vmem [shape: bf16[2,32,64], index: 7, kind: input, shape index: {}]   ;;  %s2414_s8 = inlined_call_operand.vmem [shape: f32[2,1,64], index: 8, kind: input, shape index: {}]   ;;  %s2415_s9 = inlined_call_operand.vmem [shape: bf16[2,64,32], index: 9, kind: input, shape index: {}]   ;;  %s2416_s10 = inlined_call_operand.vmem [shape: f32[2,1,32], index: 10, kind: input, shape index: {}]   ;;  %s2417_s11 = inlined_call_operand.vmem [shape: f32[2,1,32], index: 11, kind: input, shape index: {}]   ;;  %s2418_s12 = inlined_call_operand.vmem [shape: f32[2,1,32], index: 12, kind: input, shape index: {}]   ;;  %s2419_s13 = inlined_call_operand.vmem [shape: f32[1,32], index: 13, kind: input, shape index: {}]   ;;  %s2420_s14 = inlined_call_operand.vmem [shape: f32[1,32], index: 14, kind: input, shape index: {}]   ;;  %s2421_s15 = inlined_call_operand.vmem [shape: f32[2,8,32], index: 15, kind: output, shape index: {}]  }
   0x1   :  { %2426 = sst [smem:[#allocation9_spill]] %s2406_s0  ;;  %s2139_s20 = smov 0  }
   0x2   :  { %2427 = sst [smem:[#allocation10_spill]] %s2407_s1  ;;  %s2141_s21 = smov 0  }
   0x3   :  { %2428 = sst [smem:[#allocation11_spill]] %s2409_s3  ;;  %s2143_s22 = smov 0  }
   0x4   :  { %2429 = sst [smem:[#allocation12_spill]] %s2413_s7 }
   0x5   :  { %2430 = sst [smem:[#allocation13_spill]] %s2414_s8 }
   0x6   :  { %2431 = sst [smem:[#allocation14_spill]] %s2418_s12 }
   0x7   :  { %2432 = sst [smem:[#allocation15_spill]] %s2419_s13 }
   0x8   :  { %2433 = sst [smem:[#allocation16_spill]] %s2420_s14 }
   0x9   :  { %2434 = sst [smem:[#allocation17_spill]] %s2421_s15 }
   0xa LB: > { %2435 = sst [smem:[#allocation3_spill]] %s2027_s18  ;;  %s34_s23 = sadd.s32 1, %s2035_s20  ;;  %s2043_s22 = sphi %s2143_s22, %s25_s22   ;;  %s2039_s21 = sphi %s2141_s21, %s2463_s21   ;;  %s2035_s20 = sphi %s2139_s20, %s2462_s20   ;;  %s2031_s19 = sphi %s2137_s19, %s2461_s19   ;;  %s2027_s18 = sphi %s2135_s18, %s2460_s18  }
   0xb   : > { %2436 = sst [smem:[#allocation4_spill]] %s2035_s20  ;;  %s37_s24 = sadd.s32 1, %s2039_s21 }
   0xc   : > { %2437 = sst [smem:[#allocation5_spill]] %s2039_s21  ;;  %p35_p0 = scmp.ge.s32.totalorder %s34_s23, 2 }
   0xd   : > { %2438 = sst [smem:[#allocation6_spill]] %s2043_s22  ;;  %p1758_p1 = scmp.ge.s32.totalorder %s2043_s22, 1 }
   0xe   : > { %p552_p2 = scmp.lt.s32.totalorder %s2043_s22, 5  ;;  %s2465_s23 = smov (%p35_p0, %s34_s23), 0 }
   0xf   : > { %2439 = sst [smem:[#allocation7_spill]] %s2465_s23  ;;  %s2467_s24 = smov (!%p35_p0, %s37_s24), %s2039_s21 }
  0x10   : > { %p553_p3 = pnand %p1758_p1, %p552_p2  ;;  %p39_p4 = scmp.ge.s32.totalorder %s2467_s24, 2 }
  0x11   : > { %p642_p5 = scmp.lt.s32.totalorder (!%p553_p3), %s2031_s19, 1  ;;  %p646_p6 = scmp.lt.s32.totalorder (!%p553_p3), %s2027_s18, 1 }
  0x12   : > { %s2469_s24 = smov (%p39_p4, %s2467_s24), 0  ;;  %556 = sbr.rel (%p553_p3) target bundleno = 2837 (0xb15), region = 80 }
  0x13   : > { %2440 = sst [smem:[#allocation8_spill]] %s2469_s24 }
  0x14   : > { %s2441_s0 = sld [smem:[#allocation9_spill]] (!%p553_p3) }
  0x15   : > { %s2442_s1 = sld [smem:[#allocation10_spill]] (!%p553_p3) }
  0x16   : > { %s2443_s3 = sld [smem:[#allocation11_spill]] (!%p553_p3) }
  0x17   : > { %s2471_s19 = smov (!%p642_p5, %s2031_s19), 1  ;;  %s2444_s7 = sld [smem:[#allocation12_spill]] }
  0x18   : > { %s2169_s25 = scalar_select %p646_p6, %s2027_s18, 1 }
  0x19   : > { %s1759_s26 = sshll.u32 %s2471_s19, 3  ;;  %s2446_s17 = sld [smem:[#allocation14_spill]] }
  0x1a   : > { %s645_s29 = scalar_lea.vmem %s2441_s0, %s1759_s26  ;;  %s1805_s30 = sshll.u32 %s2169_s25, 4 }
  0x1b   : > { %s650_s24 = scalar_lea.vmem %s2442_s1, %s1805_s30  ;;  %s683_s15 = scalar_lea.vmem %s2416_s10, %s2169_s25 }
  0x1c   : > { %s2185_s13 = scalar_lea.vmem %s2443_s3, %s1805_s30  ;;  %s1808_s3 = sshll.u32 %s2169_s25, 5 }
  0x1d   : > { %s2202_s23 = scalar_lea.vmem %s2444_s7, %s1805_s30  ;;  %s2216_s0 = scalar_lea.vmem %s2415_s9, %s1808_s3 }
  0x1e   : > { %s686_s1 = scalar_lea.vmem %s2417_s11, %s2169_s25  ;;  %s2447_s20 = sld [smem:[#allocation17_spill]] }
  0x1f   : > { %s689_s7 = scalar_lea.vmem %s2446_s17, %s2169_s25  ;;  %s2448_s18 = sld [smem:[#allocation3_spill]] }
  0x24   : > { %s2229_s8 = scalar_lea.vmem %s2447_s20, %s1759_s26 }
  0x25   : > { %p1769_p7 = scmp.ne.s32.totalorder %s2448_s18, 0 }
  0x27   : > { %698 = sbr.rel (%p1769_p7) target bundleno = 46 (0x2e), region = 84 }
  0x2c   : > { %v699_v0 = vld [vmem:[%s645_s29] sm:$0xff]  ;;  %vm700_vm0 = vcmask 261120  }
  0x2d   : > { %701 = vst.msk [vmem:[#allocation2] sm:$0xff] %vm700_vm0, %v699_v0 }
  0x2e PF: > { %v1973_v1 = vld [vmem:[%s650_s24 + $0x8] sm:$0xff]   ;;  %v2045_v2 = vmov 0.0   ;;  %v1974_v3 = vld [vmem:[%s650_s24] sm:$0xff]   ;;  %vm2046_vm1 = vmmov 0   ;;  %vm727_vm2 = vcmask 261120   ;;  %s2449_s24 = scalar_lea.vmem %s2408_s2, %s2169_s25  ;;  %s2047_s26 = smov 104  }
  0x2f   : > { %1839 = vmatprep.subr.bf16.mxu0 %v2045_v2  ;;  %1847 = vmatprep.subr.bf16.mxu1 %v2045_v2  ;;  %v1770_v6 = vld [vmem:[%s2449_s24] ss:$0 sm:$0xff]  ;;  %s2048_s29 = smov 120   ;;  %s2049_s17 = smov 112   ;;  %vm808_vm3 = vcmask 64512   ;;  %vm1055_vm4 = vcmask 1043456  }
  0x30   : > { %1840 = vmatpush3.bf16.msra.mxu0 %v1973_v1  ;;  %1843 = vmatprep.mubr.msk.bf16.mxu0 %vm2046_vm1, %v2045_v2  ;;  %s2050_s19 = smov 96   ;;  %s2051_s27 = smov 64   ;;  %vm1256_vm5 = vcmask 130048   ;;  %vm1258_vm6 = vcmask 195584   ;;  %vm1461_vm7 = vcmask 523264  }
  0x31   : > { %1841 = vmatprep.subr.bf16.mxu0 %v2045_v2  ;;  %1849 = vmatprep.mubr.msk.bf16.mxu1 %vm2046_vm1, %v2045_v2  ;;  %s2052_s28 = smov 8   ;;  %s2053_s12 = smov 16  }
  0x32   : > { %s2054_s16 = smov 24   ;;  %s2450_s21 = scalar_lea.vmem %s2410_s4, %s2169_s25 }
  0x33   : > { %s2451_s22 = scalar_lea.vmem %s2411_s5, %s2169_s25  ;;  %s2452_s20 = scalar_lea.vmem %s2412_s6, %s2169_s25 }
  0x34   : > { %v2236_v4 = vld [vmem:[#allocation2] sm:$0xff]  ;;  %1842 = vmatpush3.bf16.msra.mxu0 %v1974_v3 }
  0x35   : > { %v707_v5 = vpack.c.bf16 %v2236_v4, %v2236_v4  ;;  %1853 = vmatprep.subr.bf16.mxu0 %v2045_v2 }
  0x37   : > { %1844 = vmatmul.mubr.msk.bf16.vlgmr.msra.gmra.mxu0 %vm727_vm2, %v707_v5 }
  0x38   : > { %1855 = vmatprep.mubr.msk.bf16.mxu0 %vm2046_vm1, %v2045_v2 }
  0xf7   : > { %v765_v7 = vpop.f32.mrf.mxu0 }
  0xf8   : > { %v766_v8 = vadd.f32 %v1770_v6, %v765_v7 }
  0xf9   : > { %v1845_v9 = vpop.f32.mrf.mxu0 }
  0xfa   : > { %794 = vrot.lane.b32.xlu1 %v766_v8, %s2047_s26  ;;  %788 = vrot.lane.b32.xlu0 %v766_v8, %s2048_s29  ;;  %v2252_v11 = vpack.c.bf16 %v766_v8, %v766_v8  ;;  %v776_v13 = vmul.f32 0.35355338, %v766_v8 }
  0xfb   : > { %v768_v10 = vpop.f32.mrf.mxu0 }
  0xfc   : > { %v797_v22 = vpack.c.bf16 %v776_v13, %v776_v13 }
  0xfd   : > { %v1846_v12 = vpop.f32.mrf.mxu0 }
  0xfe   : > { %791 = vrot.lane.b32.xlu0 %v766_v8, %s2049_s17  ;;  %806 = vrot.lane.b32.xlu1 %v2252_v11, %s2050_s19 }
 0x102   : > { %778 = vrot.lane.b32.xlu1 %v776_v13, %s2048_s29  ;;  %s2453_s29 = sld [smem:[#allocation13_spill]] }
 0x16c   : > { %v795_v14 = vpop.permute.xlu1 %794  ;;  %v789_v15 = vpop.permute.xlu0 %788 }
 0x16d   : > { %v2255_v16 = vpack.c.bf16 %v795_v14, %v795_v14  ;;  %v2257_v17 = vpack.c.bf16 %v789_v15, %v789_v15 }
 0x16f   : > { %856 = vrot.lane.b32.xlu0 %v2257_v17, %s2050_s19  ;;  %954 = vrot.lane.b32.xlu1 %v2255_v16, %s2050_s19 }
 0x170   : > { %v792_v18 = vpop.permute.xlu0 %791  ;;  %v807_v19 = vpop.permute.xlu1 %806 }
 0x171   : > { %v2261_v20 = vpack.c.bf16 %v792_v18, %v792_v18  ;;  %v813_v21 = vsel %vm808_vm3, %v807_v19, 0 }
 0x172   : > { %1848 = vmatpush3.bf16.xpose.msra.mxu1 %v813_v21 }
 0x173   : > { %905 = vrot.lane.b32.xlu0 %v2261_v20, %s2050_s19  ;;  %784 = vrot.lane.b32.xlu1 %v776_v13, %s2047_s26 }
 0x174   : > { %1859 = vmatprep.subr.bf16.mxu1 %v2045_v2  ;;  %v779_v25 = vpop.permute.xlu1 %778 }
 0x175   : > { %v798_v29 = vpack.c.bf16 %v779_v25, %v779_v25 }
 0x177   : > { %781 = vrot.lane.b32.xlu0 %v776_v13, %s2049_s17  ;;  %s2454_s17 = scalar_lea.vmem %s2453_s29, %s2169_s25 }
 0x179   : > { %1850 = vmatmul.mubr.msk.bf16.vlgmr.msra.gmra.mxu1 %vm808_vm3, %v797_v22 }
 0x17a   : > { %1861 = vmatprep.mubr.msk.bf16.mxu1 %vm2046_vm1, %v2045_v2 }
 0x1e1   : > { %v857_v23 = vpop.permute.xlu0 %856  ;;  %v955_v28 = vpop.permute.xlu1 %954 }
 0x1e2   : > { %v862_v24 = vsel %vm808_vm3, %v857_v23, 0  ;;  %v960_v31 = vsel %vm808_vm3, %v955_v28, 0 }
 0x1e3   : > { %1854 = vmatpush3.bf16.xpose.msra.mxu0 %v862_v24 }
 0x1e4   : > { %1865 = vmatprep.subr.bf16.mxu0 %v2045_v2 }
 0x1e5   : > { %v906_v26 = vpop.permute.xlu0 %905  ;;  %v785_v33 = vpop.permute.xlu1 %784 }
 0x1e6   : > { %v911_v27 = vsel %vm808_vm3, %v906_v26, 0  ;;  %v800_v34 = vpack.c.bf16 %v785_v33, %v785_v33 }
 0x1e7   : > { %1860 = vmatpush3.bf16.xpose.msra.mxu1 %v911_v27 }
 0x1e8   : > { %1871 = vmatprep.subr.bf16.mxu1 %v2045_v2 }
 0x1e9   : > { %v782_v30 = vpop.permute.xlu0 %781 }
 0x1ea   : > { %1856 = vmatmul.mubr.msk.bf16.vlgmr.msra.gmra.mxu0 %vm808_vm3, %v798_v29  ;;  %v799_v32 = vpack.c.bf16 %v782_v30, %v782_v30 }
 0x1eb   : > { %1866 = vmatpush3.bf16.xpose.msra.mxu0 %v960_v31  ;;  %1867 = vmatprep.mubr.msk.bf16.mxu0 %vm2046_vm1, %v2045_v2 }
 0x1ec   : > { %1877 = vmatprep.subr.bf16.mxu0 %v2045_v2 }
 0x1ee   : > { %1862 = vmatmul.mubr.msk.bf16.vlgmr.msra.gmra.mxu1 %vm808_vm3, %v799_v32 }
 0x1ef   : > { %1873 = vmatprep.mubr.msk.bf16.mxu1 %vm2046_vm1, %v2045_v2 }
 0x1f2   : > { %1868 = vmatmul.mubr.msk.bf16.vlgmr.msra.gmra.mxu0 %vm808_vm3, %v800_v34 }
 0x1f3   : > { %1879 = vmatprep.mubr.msk.bf16.mxu0 %vm2046_vm1, %v2045_v2 }
 0x239   : > { %v849_v35 = vpop.f32.mrf.mxu1 }
 0x23a   : > { %v1002_v36 = vsel %vm808_vm3, %v849_v35, -inf }
 0x23b   : > { %1003 = vmax.xlane.f32.xlu0 %v1002_v36  ;;  %v1851_v37 = vpop.f32.mrf.mxu1 }
 0x23d   : > { %v852_v38 = vpop.f32.mrf.mxu1 }
 0x23f   : > { %v1852_v39 = vpop.f32.mrf.mxu1 }
 0x2aa   : > { %v898_v40 = vpop.f32.mrf.mxu0 }
 0x2ab   : > { %v1005_v41 = vsel %vm808_vm3, %v898_v40, -inf }
 0x2ac   : > { %1006 = vmax.xlane.f32.xlu1 %v1005_v41  ;;  %v1857_v42 = vpop.f32.mrf.mxu0  ;;  %v1975_v41 = vld [vmem:[%s2185_s13 + $0x8] sm:$0xff]  }
 0x2ad   : > { %v1976_v42 = vld [vmem:[%s2185_s13] sm:$0xff]   ;;  %s2456_s13 = sld [smem:[#allocation3_spill]] }
 0x2ae   : > { %v901_v43 = vpop.f32.mrf.mxu0  ;;  %v947_v44 = vpop.f32.mrf.mxu1 }
 0x2af   : > { %v1008_v45 = vsel %vm808_vm3, %v947_v44, -inf }
 0x2b0   : > { %1009 = vmax.xlane.f32.xlu0 %v1008_v45  ;;  %v1858_v46 = vpop.f32.mrf.mxu0  ;;  %v1863_v47 = vpop.f32.mrf.mxu1 }
 0x2b2   : > { %v950_v48 = vpop.f32.mrf.mxu1  ;;  %v996_v49 = vpop.f32.mrf.mxu0 }
 0x2b3   : > { %v1011_v50 = vsel %vm808_vm3, %v996_v49, -inf  ;;  %p1800_p8 = scmp.ne.s32.totalorder %s2456_s13, 1 }
 0x2b4   : > { %v1864_v51 = vpop.f32.mrf.mxu1  ;;  %1012 = vmax.xlane.f32.xlu0 %v1011_v50  ;;  %v1869_v52 = vpop.f32.mrf.mxu0 }
 0x2b6   : > { %v999_v53 = vpop.f32.mrf.mxu0 }
 0x2b8   : > { %v1870_v54 = vpop.f32.mrf.mxu0 }
 0x2bd   : > { %1050 = vrot.lane.b32.xlu1 %v2252_v11, %s2051_s27 }
 0x2c4   : > { %v1004_v55 = vpop.xlane.xlu0 %1003 }
 0x2c5   : > { %v1014_v56 = vsub.f32 %v849_v35, %v1004_v55 }
 0x2c7   : > { %v1018_v57 = vmul.f32 1.442695, %v1014_v56 }
 0x2c9   : > { %1983 = vpow2.f32 %v1018_v57 }
 0x2d6   : > { %v1984_v58 = vpop.eup %1983 }
 0x2d7   : > { %v1026_v59 = vsel %vm808_vm3, %v1984_v58, 0.0 }
 0x2e1   : > { %1027 = vadd.xlane.f32.xlu1 %v1026_v59 }
 0x335   : > { %v1007_v60 = vpop.xlane.xlu1 %1006 }
 0x336   : > { %v1015_v61 = vsub.f32 %v898_v40, %v1007_v60 }
 0x338   : > { %v1020_v62 = vmul.f32 1.442695, %v1015_v61 }
 0x339   : > { %v1010_v63 = vpop.xlane.xlu0 %1009  ;;  %v1051_v0 = vpop.permute.xlu1 %1050 }
 0x33a   : > { %1985 = vpow2.f32 %v1020_v62  ;;  %v1016_v1 = vsub.f32 %v947_v44, %v1010_v63  ;;  %v1057_v3 = vsel %vm1055_vm4, %v1051_v0, 0  ;;  %v1782_v62 = vld [vmem:[%s2450_s21] ss:$0 sm:$0xff] }
 0x33b   : > { %1872 = vmatpush3.bf16.msra.mxu1 %v1057_v3 }
 0x33c   : > { %v1022_v5 = vmul.f32 1.442695, %v1016_v1  ;;  %1883 = vmatprep.subr.bf16.mxu1 %v2045_v2 }
 0x33d   : > { %v1013_v6 = vpop.xlane.xlu0 %1012 }
 0x33e   : > { %1987 = vpow2.f32 %v1022_v5  ;;  %v1017_v7 = vsub.f32 %v996_v49, %v1013_v6 }
 0x340   : > { %v1024_v8 = vmul.f32 1.442695, %v1017_v7 }
 0x342   : > { %1989 = vpow2.f32 %v1024_v8 }
 0x347   : > { %v1986_v9 = vpop.eup %1985 }
 0x348   : > { %v1029_v10 = vsel %vm808_vm3, %v1986_v9, 0.0 }
 0x349   : > { %1030 = vadd.xlane.f32.xlu0 %v1029_v10 }
 0x34b   : > { %v1988_v11 = vpop.eup %1987 }
 0x34c   : > { %v1032_v12 = vsel %vm808_vm3, %v1988_v11, 0.0 }
 0x34d   : > { %1033 = vadd.xlane.f32.xlu1 %v1032_v12 }
 0x34f   : > { %v1990_v13 = vpop.eup %1989 }
 0x350   : > { %v1035_v14 = vsel %vm808_vm3, %v1990_v13, 0.0 }
 0x351   : > { %1036 = vadd.xlane.f32.xlu0 %v1035_v14  ;;  %v1978_v14 = vld [vmem:[%s2202_s23] sm:$0xff]  }
 0x35e   : > { %1147 = vrot.lane.b32.xlu1 %v2261_v20, %s2051_s27 }
 0x362   : > { %1195 = vrot.lane.b32.xlu1 %v2255_v16, %s2051_s27 }
 0x367   : > { %1099 = vrot.lane.b32.xlu0 %v2257_v17, %s2051_s27 }
 0x36a   : > { %v1028_v15 = vpop.xlane.xlu1 %1027 }
 0x36b   : > { %1991 = vrcp.f32 %v1028_v15  ;;  %v1980_v15 = vld [vmem:[%s2216_s0 + $0x10] sm:$0xff]  }
 0x378   : > { %v1992_v18 = vpop.eup %1991 }
 0x379   : > { %v1039_v19 = vmul.f32 %v1992_v18, %v1984_v58 }
 0x37b   : > { %v1046_v21 = vpack.c.bf16 %v1039_v19, %v1039_v19 }
 0x37d   : > { %1874 = vmatmul.mubr.msk.bf16.vlgmr.msra.gmra.mxu1 %vm808_vm3, %v1046_v21 }
 0x37e   : > { %1885 = vmatprep.mubr.msk.bf16.mxu1 %vm2046_vm1, %v2045_v2 }
 0x3d2   : > { %v1031_v22 = vpop.xlane.xlu0 %1030 }
 0x3d3   : > { %1993 = vrcp.f32 %v1031_v22 }
 0x3d6   : > { %v1034_v23 = vpop.xlane.xlu1 %1033 }
 0x3d7   : > { %1995 = vrcp.f32 %v1034_v23  ;;  %v1786_v23 = vld [vmem:[%s2451_s22] ss:$0 sm:$0xff] }
 0x3da   : > { %v1148_v20 = vpop.permute.xlu1 %1147  ;;  %v1037_v24 = vpop.xlane.xlu0 %1036 }
 0x3db   : > { %v1153_v16 = vsel %vm1055_vm4, %v1148_v20, 0  ;;  %1997 = vrcp.f32 %v1037_v24  ;;  %v1787_v24 = vld [vmem:[%s2452_s20] ss:$0 sm:$0xff] }
 0x3dc   : > { %1884 = vmatpush3.bf16.msra.mxu1 %v1153_v16 }
 0x3dd   : > { %1895 = vmatprep.subr.bf16.mxu1 %v2045_v2 }
 0x3de   : > { %v1100_v17 = vpop.permute.xlu0 %1099  ;;  %v1196_v28 = vpop.permute.xlu1 %1195 }
 0x3df   : > { %v1105_v25 = vsel %vm1055_vm4, %v1100_v17, 0  ;;  %v1201_v31 = vsel %vm1055_vm4, %v1196_v28, 0  ;;  %v1788_v28 = vld [vmem:[%s2454_s17] ss:$0 sm:$0xff] }
 0x3e0   : > { %v1994_v26 = vpop.eup %1993  ;;  %1878 = vmatpush3.bf16.msra.mxu0 %v1105_v25 }
 0x3e1   : > { %1889 = vmatprep.subr.bf16.mxu0 %v2045_v2  ;;  %v1041_v27 = vmul.f32 %v1994_v26, %v1986_v9  ;;  %v1981_v26 = vld [vmem:[%s2216_s0 + $0x8] sm:$0xff]  }
 0x3e3   : > { %v1047_v29 = vpack.c.bf16 %v1041_v27, %v1041_v27  ;;  %v1982_v27 = vld [vmem:[%s2216_s0] sm:$0xff]  }
 0x3e4   : > { %v1996_v30 = vpop.eup %1995 }
 0x3e5   : > { %1880 = vmatmul.mubr.msk.bf16.vlgmr.msra.gmra.mxu0 %vm808_vm3, %v1047_v29  ;;  %v1043_v32 = vmul.f32 %v1996_v30, %v1988_v11 }
 0x3e6   : > { %1890 = vmatpush3.bf16.msra.mxu0 %v1201_v31  ;;  %1891 = vmatprep.mubr.msk.bf16.mxu0 %vm2046_vm1, %v2045_v2 }
 0x3e7   : > { %v1048_v33 = vpack.c.bf16 %v1043_v32, %v1043_v32  ;;  %1903 = vmatprep.subr.bf16.mxu0 %v2045_v2 }
 0x3e8   : > { %v1998_v34 = vpop.eup %1997 }
 0x3e9   : > { %1886 = vmatmul.mubr.msk.bf16.vlgmr.msra.gmra.mxu1 %vm808_vm3, %v1048_v33  ;;  %v1045_v35 = vmul.f32 %v1998_v34, %v1990_v13  ;;  %v1977_v13 = vld [vmem:[%s2202_s23 + $0x8] sm:$0xff]   ;;  %s2458_s23 = sld [smem:[#allocation16_spill]] (!%p1800_p8) }
 0x3ea   : > { %1899 = vmatprep.mubr.msk.bf16.mxu1 %vm2046_vm1, %v2045_v2  ;;  %1896 = vmatpush3.bf16.msra.mxu1 %v1975_v41 }
 0x3eb   : > { %v1049_v36 = vpack.c.bf16 %v1045_v35, %v1045_v35  ;;  %1897 = vmatprep.subr.bf16.mxu1 %v2045_v2 }
 0x3ed   : > { %1892 = vmatmul.mubr.msk.bf16.vlgmr.msra.gmra.mxu0 %vm808_vm3, %v1049_v36 }
 0x3ee   : > { %1907 = vmatprep.mubr.msk.bf16.mxu0 %vm2046_vm1, %v2045_v2  ;;  %1898 = vmatpush3.bf16.msra.mxu1 %v1976_v42 }
 0x3ef   : > { %1911 = vmatprep.subr.bf16.mxu1 %v2045_v2  ;;  %1904 = vmatpush3.bf16.msra.mxu0 %v1977_v13 }
 0x3f0   : > { %1905 = vmatprep.subr.bf16.mxu0 %v2045_v2 }
 0x3f3   : > { %1906 = vmatpush3.bf16.msra.mxu0 %v1978_v14 }
 0x43d   : > { %v1093_v37 = vpop.f32.mrf.mxu1 }
 0x43f   : > { %v1875_v38 = vpop.f32.mrf.mxu1 }
 0x441   : > { %v1096_v39 = vpop.f32.mrf.mxu1 }
 0x443   : > { %v1876_v40 = vpop.f32.mrf.mxu1 }
 0x4a5   : > { %v1141_v43 = vpop.f32.mrf.mxu0 }
 0x4a6   : > { %1244 = vrot.lane.b32.xlu0 %v1141_v43, %s2052_s28 }
 0x4a7   : > { %v1881_v44 = vpop.f32.mrf.mxu0 }
 0x4a9   : > { %v1144_v45 = vpop.f32.mrf.mxu0  ;;  %v1189_v46 = vpop.f32.mrf.mxu1 }
 0x4aa   : > { %1248 = vrot.lane.b32.xlu1 %v1189_v46, %s2053_s12 }
 0x4ab   : > { %v1882_v47 = vpop.f32.mrf.mxu0  ;;  %v1887_v48 = vpop.f32.mrf.mxu1 }
 0x4ad   : > { %v1192_v49 = vpop.f32.mrf.mxu1  ;;  %v1237_v50 = vpop.f32.mrf.mxu0 }
 0x4ae   : > { %1252 = vrot.lane.b32.xlu0 %v1237_v50, %s2054_s16 }
 0x4af   : > { %v1888_v51 = vpop.f32.mrf.mxu1  ;;  %v1893_v52 = vpop.f32.mrf.mxu0 }
 0x4b0   : > { %v1798_v52 = vld [vmem:[%s686_s1] ss:$0 sm:$0xff]  ;;  %s2457_s1 = sld [smem:[#allocation15_spill]] (!%p1800_p8) }
 0x4b1   : > { %v1240_v53 = vpop.f32.mrf.mxu0 }
 0x4b3   : > { %v1894_v54 = vpop.f32.mrf.mxu0 }
 0x4b4   : > { %v1799_v54 = vld [vmem:[%s689_s7] ss:$0 sm:$0xff] }
 0x518   : > { %v1245_v55 = vpop.permute.xlu0 %1244 }
 0x519   : > { %v1255_v57 = vsel %vm808_vm3, %v1093_v37, %v1245_v55 }
 0x51c   : > { %v1249_v56 = vpop.permute.xlu1 %1248 }
 0x51d   : > { %v1257_v58 = vsel %vm1256_vm5, %v1255_v57, %v1249_v56 }
 0x520   : > { %v1253_v59 = vpop.permute.xlu0 %1252 }
 0x521   : > { %v1259_v60 = vsel %vm1258_vm6, %v1257_v58, %v1253_v59 }
 0x522   : > { %v1260_v61 = vpack.c.bf16 %v1259_v60, %v1259_v60 }
 0x524   : > { %1900 = vmatmul.mubr.msk.bf16.vlgmr.msra.gmra.mxu1 %vm727_vm2, %v1260_v61 }
 0x525   : > { %1919 = vmatprep.mubr.msk.bf16.mxu1 %vm2046_vm1, %v2045_v2 }
 0x5e4   : > { %v1316_v63 = vpop.f32.mrf.mxu1 }
 0x5e5   : > { %v1317_v0 = vadd.f32 %v1782_v62, %v1316_v63 }
 0x5e6   : > { %v1901_v1 = vpop.f32.mrf.mxu1 }
 0x5e7   : > { %v1322_v3 = vadd.f32 %v1317_v0, %v2236_v4  ;;  %v1979_v4 = vld [vmem:[%s2216_s0 + $0x18] sm:$0xff]  }
 0x5e8   : > { %v1319_v5 = vpop.f32.mrf.mxu1  ;;  %1912 = vmatpush3.bf16.msra.mxu1 %v1979_v4 }
 0x5e9   : > { %v1325_v6 = vsel %vm727_vm2, %v1322_v3, 0.0  ;;  %1913 = vmatprep.subr.bf16.mxu1 %v2045_v2 }
 0x5ea   : > { %1326 = vadd.xlane.f32.xlu1 %v1325_v6  ;;  %v1902_v7 = vpop.f32.mrf.mxu1 }
 0x5ec   : > { %1914 = vmatpush3.bf16.msra.mxu1 %v1980_v15 }
 0x5ed   : > { %1915 = vmatprep.subr.bf16.mxu1 %v2045_v2 }
 0x5f0   : > { %1916 = vmatpush3.bf16.msra.mxu1 %v1981_v26 }
 0x5f1   : > { %1917 = vmatprep.subr.bf16.mxu1 %v2045_v2  ;;  %v1792_v2 = vld [vmem:[%s683_s15] ss:$0 sm:$0xff] }
 0x5f4   : > { %1918 = vmatpush3.bf16.msra.mxu1 %v1982_v27 }
 0x673   : > { %v1327_v8 = vpop.xlane.xlu1 %1326 }
 0x674   : > { %v1329_v9 = vmul.f32 0.03125, %v1327_v8 }
 0x676   : > { %v1330_v10 = vsub.f32 %v1322_v3, %v1329_v9 }
 0x678   : > { %v1331_v11 = vmul.f32 %v1330_v10, %v1330_v10 }
 0x67a   : > { %v1332_v12 = vsel %vm727_vm2, %v1331_v11, 0.0 }
 0x67b   : > { %1333 = vadd.xlane.f32.xlu0 %v1332_v12 }
 0x704   : > { %v1334_v18 = vpop.xlane.xlu0 %1333 }
 0x705   : > { %v1335_v19 = vmul.f32 0.03125, %v1334_v18 }
 0x707   : > { %v1336_v21 = vadd.f32 1e-05, %v1335_v19 }
 0x709   : > { %1999 = vrsqrt.f32 %v1336_v21 }
 0x716   : > { %v2000_v22 = vpop.eup %1999 }
 0x717   : > { %v1338_v20 = vmul.f32 %v2000_v22, %v1330_v10 }
 0x719   : > { %v1345_v16 = vmul.f32 %v1786_v23, %v1338_v20 }
 0x71b   : > { %v1352_v17 = vadd.f32 %v1787_v24, %v1345_v16 }
 0x71d   : > { %v1357_v25 = vpack.c.bf16 %v1352_v17, %v1352_v17 }
 0x71f   : > { %1908 = vmatmul.mubr.msk.bf16.vlgmr.msra.gmra.mxu0 %vm727_vm2, %v1357_v25 }
 0x7df   : > { %v1414_v29 = vpop.f32.mrf.mxu0 }
 0x7e0   : > { %v1415_v30 = vadd.f32 %v1788_v28, %v1414_v29 }
 0x7e1   : > { %v1909_v31 = vpop.f32.mrf.mxu0 }
 0x7e2   : > { %v1420_v32 = vmax.f32 %v1415_v30, 0.0 }
 0x7e3   : > { %v1417_v33 = vpop.f32.mrf.mxu0 }
 0x7e4   : > { %v1429_v34 = vpack.c.bf16 %v1420_v32, %v1420_v32 }
 0x7e5   : > { %v1910_v35 = vpop.f32.mrf.mxu0 }
 0x7e6   : > { %1920 = vmatmul.mubr.msk.bf16.vlgmr.msra.gmra.mxu1 %vm1461_vm7, %v1429_v34 }
 0x8a6   : > { %v1499_v36 = vpop.f32.mrf.mxu1 }
 0x8a7   : > { %v1500_v37 = vadd.f32 %v1792_v2, %v1499_v36 }
 0x8a8   : > { %v1921_v38 = vpop.f32.mrf.mxu1 }
 0x8a9   : > { %v1505_v39 = vadd.f32 %v1500_v37, %v1352_v17 }
 0x8aa   : > { %v1502_v40 = vpop.f32.mrf.mxu1 }
 0x8ab   : > { %v1508_v41 = vsel %vm727_vm2, %v1505_v39, 0.0 }
 0x8ac   : > { %1509 = vadd.xlane.f32.xlu0 %v1508_v41  ;;  %v1922_v42 = vpop.f32.mrf.mxu1 }
 0x935   : > { %v1510_v43 = vpop.xlane.xlu0 %1509 }
 0x936   : > { %v1511_v44 = vmul.f32 0.03125, %v1510_v43 }
 0x938   : > { %v1512_v45 = vsub.f32 %v1505_v39, %v1511_v44 }
 0x93a   : > { %v1513_v46 = vmul.f32 %v1512_v45, %v1512_v45 }
 0x93c   : > { %v1514_v47 = vsel %vm727_vm2, %v1513_v46, 0.0 }
 0x93d   : > { %1515 = vadd.xlane.f32.xlu1 %v1514_v47 }
 0x9c6   : > { %v1516_v48 = vpop.xlane.xlu1 %1515 }
 0x9c7   : > { %v1517_v49 = vmul.f32 0.03125, %v1516_v48 }
 0x9c9   : > { %v1518_v50 = vadd.f32 1e-05, %v1517_v49 }
 0x9cb   : > { %2001 = vrsqrt.f32 %v1518_v50 }
 0x9d8   : > { %v2002_v51 = vpop.eup %2001 }
 0x9d9   : > { %v1520_v53 = vmul.f32 %v2002_v51, %v1512_v45 }
 0x9db   : > { %v1527_v55 = vmul.f32 %v1798_v52, %v1520_v53  ;;  %1539 = sbr.rel (%p1800_p8) target bundleno = 2837 (0xb15), region = 88 }
 0x9dd   : > { %v1534_v56 = vadd.f32 %v1799_v54, %v1527_v55 }
 0x9df   : > { %1535 = vst.msk [vmem:[#allocation2] sm:$0xff] %vm727_vm2, %v1534_v56 }
 0x9e0   : > { %v1542_v57 = vsel %vm727_vm2, %v1534_v56, 0.0  ;;  %v1801_v5 = vld [vmem:[%s2457_s1] ss:$0 sm:$0xff] }
 0x9e1   : > { %1543 = vadd.xlane.f32.xlu0 %v1542_v57  ;;  %v1802_v7 = vld [vmem:[%s2458_s23] ss:$0 sm:$0xff] }
 0xa6a   : > { %v1544_v58 = vpop.xlane.xlu0 %1543 }
 0xa6b   : > { %v1545_v59 = vmul.f32 0.03125, %v1544_v58 }
 0xa6d   : > { %v1546_v60 = vsub.f32 %v1534_v56, %v1545_v59 }
 0xa6f   : > { %v1547_v61 = vmul.f32 %v1546_v60, %v1546_v60 }
 0xa71   : > { %v1548_v62 = vsel %vm727_vm2, %v1547_v61, 0.0 }
 0xa72   : > { %1549 = vadd.xlane.f32.xlu0 %v1548_v62 }
 0xafb   : > { %v1550_v63 = vpop.xlane.xlu0 %1549 }
 0xafc   : > { %v1551_v0 = vmul.f32 0.03125, %v1550_v63 }
 0xafe   : > { %v1552_v1 = vadd.f32 1e-05, %v1551_v0 }
 0xb00   : > { %2003 = vrsqrt.f32 %v1552_v1 }
 0xb0d   : > { %v2004_v3 = vpop.eup %2003 }
 0xb0e   : > { %v1554_v6 = vmul.f32 %v2004_v3, %v1546_v60 }
 0xb10   : > { %v1561_v8 = vmul.f32 %v1801_v5, %v1554_v6 }
 0xb12   : > { %v1568_v9 = vadd.f32 %v1802_v7, %v1561_v8 }
 0xb14   : > { %1569 = vst.msk [vmem:[%s2229_s8] sm:$0xff] %vm727_vm2, %v1568_v9 }
 0xb15 PF: > { %s2459_s14 = sld [smem:[#allocation6_spill]] }
 0xb16   : > { %s2460_s18 = sld [smem:[#allocation4_spill]] }
 0xb17   : > { %s2461_s19 = sld [smem:[#allocation5_spill]] }
 0xb18   : > { %s2462_s20 = sld [smem:[#allocation7_spill]] }
 0xb19   : > { %s2463_s21 = sld [smem:[#allocation8_spill]] }
 0xb1b   : > { %s25_s22 = sadd.s32 1, %s2459_s14  }
 0xb1c   : > { %p22_p9 = scmp.ge.s32.totalorder %s25_s22, 6  }
 0xb1e   :  { %24 = sbr.rel (!%p22_p9) target bundleno = 10 (0xa), region = 154 }

// kernel: _lambda_.3
= control target key start
LH: loop header
LB: loop body
LE: loop exit
PB: predicated region body
PF: predicated region fallthrough
CT: control target
= control target key end

     0   :  { %s3711_s30 = smov 0   ;;  %s4186_s0 = inlined_call_operand.vmem [shape: f32[2,8,32], index: 0, kind: input, shape index: {}]   ;;  %s4187_s1 = inlined_call_operand.vmem [shape: f32[2,8,32], index: 1, kind: input, shape index: {}]   ;;  %s4188_s2 = inlined_call_operand.vmem [shape: f32[8,8], index: 2, kind: input, shape index: {}]   ;;  %s4189_s3 = inlined_call_operand.vmem [shape: bf16[2,32,96], index: 3, kind: input, shape index: {}]   ;;  %s4190_s4 = inlined_call_operand.vmem [shape: f32[2,1,96], index: 4, kind: input, shape index: {}]   ;;  %s4191_s5 = inlined_call_operand.vmem [shape: bf16[2,32,32], index: 5, kind: input, shape index: {}]   ;;  %s4192_s6 = inlined_call_operand.vmem [shape: f32[2,1,32], index: 6, kind: input, shape index: {}]   ;;  %s4193_s7 = inlined_call_operand.vmem [shape: f32[2,1,32], index: 7, kind: input, shape index: {}]   ;;  %s4194_s8 = inlined_call_operand.vmem [shape: f32[2,1,32], index: 8, kind: input, shape index: {}]   ;;  %s4195_s9 = inlined_call_operand.vmem [shape: bf16[2,32,32], index: 9, kind: input, shape index: {}]   ;;  %s4196_s10 = inlined_call_operand.vmem [shape: f32[2,1,32], index: 10, kind: input, shape index: {}]   ;;  %s4197_s11 = inlined_call_operand.vmem [shape: bf16[2,32,64], index: 11, kind: input, shape index: {}]   ;;  %s4198_s12 = inlined_call_operand.vmem [shape: f32[2,1,64], index: 12, kind: input, shape index: {}]   ;;  %s4199_s13 = inlined_call_operand.vmem [shape: bf16[2,32,32], index: 13, kind: input, shape index: {}]   ;;  %s4200_s14 = inlined_call_operand.vmem [shape: f32[2,1,32], index: 14, kind: input, shape index: {}]   ;;  %s4201_s15 = inlined_call_operand.vmem [shape: f32[2,1,32], index: 15, kind: input, shape index: {}]   ;;  %s4202_s16 = inlined_call_operand.vmem [shape: f32[2,1,32], index: 16, kind: input, shape index: {}]   ;;  %s4203_s17 = inlined_call_operand.vmem [shape: bf16[2,32,64], index: 17, kind: input, shape index: {}]   ;;  %s4204_s18 = inlined_call_operand.vmem [shape: f32[2,1,64], index: 18, kind: input, shape index: {}]   ;;  %s4205_s19 = inlined_call_operand.vmem [shape: bf16[2,64,32], index: 19, kind: input, shape index: {}]   ;;  %s4206_s20 = inlined_call_operand.vmem [shape: f32[2,1,32], index: 20, kind: input, shape index: {}]   ;;  %s4207_s21 = inlined_call_operand.vmem [shape: f32[2,1,32], index: 21, kind: input, shape index: {}]   ;;  %s4208_s22 = inlined_call_operand.vmem [shape: f32[2,1,32], index: 22, kind: input, shape index: {}]   ;;  %s4209_s23 = inlined_call_operand.vmem [shape: f32[1,32], index: 23, kind: input, shape index: {}]   ;;  %s4210_s24 = inlined_call_operand.vmem [shape: f32[1,32], index: 24, kind: input, shape index: {}]   ;;  %s4211_s25 = inlined_call_operand.vmem [shape: bf16[32,128], index: 25, kind: input, shape index: {}]   ;;  %s4212_s26 = inlined_call_operand.vmem [shape: f32[1,128], index: 26, kind: input, shape index: {}]   ;;  %s4213_s27 = inlined_call_operand.vmem [shape: f32[2,8,128], index: 27, kind: output, shape index: {}]  }
   0x1   :  { %4221 = sst [smem:[#allocation11_spill]] %s4186_s0 }
   0x2   :  { %4222 = sst [smem:[#allocation12_spill]] %s4187_s1 }
   0x3   :  { %4223 = sst [smem:[#allocation13_spill]] %s4188_s2 }
   0x4   :  { %4224 = sst [smem:[#allocation14_spill]] %s4189_s3 }
   0x5   :  { %4225 = sst [smem:[#allocation15_spill]] %s4190_s4  ;;  %s3707_s4 = smov 0  }
   0x6   :  { %4226 = sst [smem:[#allocation16_spill]] %s4191_s5 }
   0x7   :  { %4227 = sst [smem:[#allocation17_spill]] %s4192_s6 }
   0x8   :  { %4228 = sst [smem:[#allocation18_spill]] %s4193_s7  ;;  %s3705_s7 = smov 0  }
   0x9   :  { %4229 = sst [smem:[#allocation19_spill]] %s4194_s8  ;;  %s3709_s8 = smov 0  }
   0xa   :  { %4230 = sst [smem:[#allocation20_spill]] %s4195_s9  ;;  %s3713_s9 = smov 0  }
   0xb   :  { %4231 = sst [smem:[#allocation21_spill]] %s4196_s10 }
   0xc   :  { %4232 = sst [smem:[#allocation22_spill]] %s4197_s11 }
   0xd   :  { %4233 = sst [smem:[#allocation23_spill]] %s4199_s13 }
   0xe   :  { %4234 = sst [smem:[#allocation24_spill]] %s4201_s15 }
   0xf   :  { %4235 = sst [smem:[#allocation25_spill]] %s4202_s16 }
  0x10   :  { %4236 = sst [smem:[#allocation26_spill]] %s4203_s17 }
  0x11   :  { %4237 = sst [smem:[#allocation27_spill]] %s4204_s18 }
  0x12   :  { %4238 = sst [smem:[#allocation28_spill]] %s4207_s21 }
  0x13   :  { %4239 = sst [smem:[#allocation29_spill]] %s4208_s22 }
  0x14   :  { %4240 = sst [smem:[#allocation30_spill]] %s4209_s23 }
  0x15   :  { %4241 = sst [smem:[#allocation31_spill]] %s4210_s24 }
  0x16   :  { %4242 = sst [smem:[#allocation32_spill]] %s4211_s25 }
  0x17   :  { %4243 = sst [smem:[#allocation33_spill]] %s4212_s26 }
  0x18   :  { %4244 = sst [smem:[#allocation34_spill]] %s4213_s27 }
  0x19 LB: > { %4245 = sst [smem:[#allocation3_spill]] %s3535_s7  ;;  %s46_s5 = sadd.s32 1, %s3543_s8  ;;  %s3551_s9 = sphi %s3713_s9, %s37_s9   ;;  %s3547_s30 = sphi %s3711_s30, %s4308_s30   ;;  %s3543_s8 = sphi %s3709_s8, %s4307_s8   ;;  %s3539_s4 = sphi %s3707_s4, %s4306_s4   ;;  %s3535_s7 = sphi %s3705_s7, %s4305_s7  }
  0x1a   : > { %4246 = sst [smem:[#allocation4_spill]] %s3543_s8  ;;  %s49_s28 = sadd.s32 1, %s3547_s30 }
  0x1b   : > { %4247 = sst [smem:[#allocation5_spill]] %s3547_s30  ;;  %p47_p0 = scmp.ge.s32.totalorder %s46_s5, 2 }
  0x1c   : > { %4248 = sst [smem:[#allocation6_spill]] %s3551_s9  ;;  %p3094_p1 = scmp.ge.s32.totalorder %s3551_s9, 1 }
  0x1d   : > { %p931_p2 = scmp.lt.s32.totalorder %s3551_s9, 5  ;;  %s4310_s5 = smov (%p47_p0, %s46_s5), 0 }
  0x1e   : > { %4249 = sst [smem:[#allocation7_spill]] %s4310_s5  ;;  %s4312_s28 = smov (!%p47_p0, %s49_s28), %s3547_s30 }
  0x1f   : > { %p932_p3 = pnand %p3094_p1, %p931_p2  ;;  %p51_p4 = scmp.ge.s32.totalorder %s4312_s28, 2 }
  0x21   : > { %s4314_s28 = smov (%p51_p4, %s4312_s28), 0  ;;  %935 = sbr.rel (%p932_p3) target bundleno = 4714 (0x126a), region = 128 }
  0x22   : > { %4250 = sst [smem:[#allocation8_spill]] %s4314_s28 }
  0x26   : > { %p1079_p5 = scmp.lt.s32.totalorder %s3539_s4, 1  ;;  %p1087_p6 = scmp.lt.s32.totalorder %s3535_s7, 1 }
  0x27   : > { %s4251_s6 = sld [smem:[#allocation11_spill]] }
  0x28   : > { %s4316_s4 = smov (!%p1079_p5, %s3539_s4), 1  ;;  %s4254_s25 = sld [smem:[#allocation14_spill]] }
  0x29   : > { %s3739_s0 = scalar_select %p1087_p6, %s3535_s7, 1 }
  0x2a   : > { %s3741_s10 = sshll.u32 %s4316_s4, 3  ;;  %s4261_s29 = sld [smem:[#allocation20_spill]] }
  0x2b   : > { %s3174_s30 = sshll.u32 %s3739_s0, 4  ;;  %s4263_s22 = sld [smem:[#allocation22_spill]] }
  0x2c   : > { %s4264_s13 = sld [smem:[#allocation23_spill]] }
  0x2d   : > { %s1082_s11 = scalar_lea.vmem %s4251_s6, %s3741_s10  ;;  %s4256_s6 = sld [smem:[#allocation16_spill]] }
  0x2e   : > { %s3759_s7 = scalar_lea.vmem %s4254_s25, %s3174_s30  ;;  %s4267_s17 = sld [smem:[#allocation26_spill]] }
  0x2f   : > { %4255 = sst [smem:[#allocation9_spill]] %s3759_s7 }
  0x30   : > { %s3781_s1 = scalar_lea.vmem %s4261_s29, %s3174_s30  ;;  %s4269_s3 = sld [smem:[#allocation28_spill]] }
  0x31   : > { %s3790_s8 = scalar_lea.vmem %s4263_s22, %s3174_s30  ;;  %s4271_s24 = sld [smem:[#allocation34_spill]] }
  0x32   : > { %s3799_s21 = scalar_lea.vmem %s4264_s13, %s3174_s30  ;;  %s3180_s13 = sshll.u32 %s3739_s0, 5 }
  0x33   : > { %s3764_s27 = scalar_lea.vmem %s4256_s6, %s3174_s30  ;;  %s3826_s25 = scalar_lea.vmem %s4205_s19, %s3180_s13 }
  0x34   : > { %4257 = sst [smem:[#allocation10_spill]] %s3764_s27  ;;  %s3816_s9 = scalar_lea.vmem %s4267_s17, %s3174_s30 }
  0x35   : > { %s1154_s27 = scalar_lea.vmem %s4206_s20, %s3739_s0  ;;  %s4270_s17 = sld [smem:[#allocation29_spill]] }
  0x36   : > { %s1157_s28 = scalar_lea.vmem %s4269_s3, %s3739_s0  ;;  %s4272_s15 = sld [smem:[#allocation3_spill]] }
  0x37   : > { %s1164_s18 = scalar_lea.vmem %s4271_s24, %s3741_s10 }
  0x3b   : > { %s1160_s16 = scalar_lea.vmem %s4270_s17, %s3739_s0 }
  0x3c   : > { %p3112_p7 = scmp.ne.s32.totalorder %s4272_s15, 0 }
  0x3e   : > { %1169 = sbr.rel (%p3112_p7) target bundleno = 69 (0x45), region = 132 }
  0x43   : > { %v1170_v0 = vld [vmem:[%s1082_s11] sm:$0xff]  ;;  %vm1171_vm0 = vcmask 261120  }
  0x44   : > { %1172 = vst.msk [vmem:[#allocation2] sm:$0xff] %vm1171_vm0, %v1170_v0 }
  0x45 PF: > { %s4273_s13 = sld [smem:[#allocation9_spill]]  ;;  %v3553_v2 = vmov 0.0   ;;  %vm3554_vm1 = vmmov 0   ;;  %vm1199_vm2 = vcmask 261120   ;;  %s3555_s3 = smov 104   ;;  %vm1281_vm3 = vcmask 64512  }
  0x46   : > { %3239 = vmatprep.subr.bf16.mxu1 %v3553_v2  ;;  %3253 = vmatprep.subr.bf16.mxu0 %v3553_v2  ;;  %s4274_s11 = sld [smem:[#allocation15_spill]]  ;;  %s3556_s22 = smov 120   ;;  %vm1528_vm4 = vcmask 1043456   ;;  %vm1729_vm5 = vcmask 130048   ;;  %vm1731_vm6 = vcmask 195584   ;;  %vm2637_vm7 = vcmask 523264  }
  0x47   : > { %3243 = vmatprep.mubr.msk.bf16.mxu1 %vm3554_vm1, %v3553_v2  ;;  %3255 = vmatprep.mubr.msk.bf16.mxu0 %vm3554_vm1, %v3553_v2  ;;  %s3557_s7 = smov 112   ;;  %s3558_s29 = smov 96  }
  0x48   : > { %s4276_s5 = sld [smem:[#allocation13_spill]]  ;;  %s3559_s30 = smov 64  }
  0x49   : > { %s4277_s26 = sld [smem:[#allocation10_spill]]  ;;  %s3560_s23 = smov 8  }
  0x4a   : > { %s3561_s4 = smov 16   ;;  %s4282_s15 = sld [smem:[#allocation18_spill]] }
  0x4b   : > { %v3455_v1 = vld [vmem:[%s4273_s13 + $0x8] sm:$0xff]   ;;  %v3456_v3 = vld [vmem:[%s4273_s13] sm:$0xff]   ;;  %s3562_s13 = smov 24   ;;  %s4294_s2 = sld [smem:[#allocation27_spill]] }
  0x4c   : > { %3240 = vmatpush3.bf16.msra.mxu1 %v3455_v1  ;;  %v3851_v4 = vld [vmem:[#allocation2] sm:$0xff]  ;;  %s4275_s24 = scalar_lea.vmem %s4274_s11, %s3739_s0  ;;  %s4278_s11 = sld [smem:[#allocation17_spill]] }
  0x4d   : > { %3241 = vmatprep.subr.bf16.mxu1 %v3553_v2  ;;  %v1179_v5 = vpack.c.bf16 %v3851_v4, %v3851_v4  ;;  %v3113_v6 = vld [vmem:[%s4275_s24] ss:$0 sm:$0xff] }
  0x4e   : > { %v1243_v35 = vld [vmem:[%s4276_s5] sm:$0xff]  ;;  %s4280_s5 = sld [smem:[#allocation12_spill]] }
  0x50   : > { %3242 = vmatpush3.bf16.msra.mxu1 %v3456_v3  ;;  %s4283_s17 = scalar_lea.vmem %s4282_s15, %s3739_s0  ;;  %s4287_s15 = sld [smem:[#allocation21_spill]] }
  0x51   : > { %3247 = vmatprep.subr.bf16.mxu1 %v3553_v2 }
  0x52   : > { %s4279_s24 = scalar_lea.vmem %s4278_s11, %s3739_s0  ;;  %s4292_s11 = sld [smem:[#allocation25_spill]] }
  0x53   : > { %3244 = vmatmul.mubr.msk.bf16.vlgmr.msra.gmra.mxu1 %vm1199_vm2, %v1179_v5 }
  0x54   : > { %3249 = vmatprep.mubr.msk.bf16.mxu1 %vm3554_vm1, %v3553_v2 }
 0x113   : > { %v1237_v7 = vpop.f32.mrf.mxu1 }
 0x114   : > { %v1238_v8 = vadd.f32 %v3113_v6, %v1237_v7 }
 0x115   : > { %v3245_v9 = vpop.f32.mrf.mxu1 }
 0x116   : > { %1267 = vrot.lane.b32.xlu1 %v1238_v8, %s3555_s3  ;;  %1261 = vrot.lane.b32.xlu0 %v1238_v8, %s3556_s22  ;;  %v3869_v11 = vpack.c.bf16 %v1238_v8, %v1238_v8  ;;  %v1249_v13 = vmul.f32 0.35355338, %v1238_v8 }
 0x117   : > { %v1240_v10 = vpop.f32.mrf.mxu1 }
 0x118   : > { %v1270_v22 = vpack.c.bf16 %v1249_v13, %v1249_v13 }
 0x119   : > { %v3246_v12 = vpop.f32.mrf.mxu1 }
 0x11a   : > { %1264 = vrot.lane.b32.xlu0 %v1238_v8, %s3557_s7  ;;  %1279 = vrot.lane.b32.xlu1 %v3869_v11, %s3558_s29 }
 0x11e   : > { %1251 = vrot.lane.b32.xlu1 %v1249_v13, %s3556_s22 }
 0x188   : > { %v1268_v14 = vpop.permute.xlu1 %1267  ;;  %v1262_v15 = vpop.permute.xlu0 %1261 }
 0x189   : > { %v3875_v16 = vpack.c.bf16 %v1268_v14, %v1268_v14  ;;  %v3877_v17 = vpack.c.bf16 %v1262_v15, %v1262_v15 }
 0x18b   : > { %1329 = vrot.lane.b32.xlu0 %v3877_v17, %s3558_s29  ;;  %1427 = vrot.lane.b32.xlu1 %v3875_v16, %s3558_s29 }
 0x18c   : > { %v1265_v18 = vpop.permute.xlu0 %1264  ;;  %v1280_v19 = vpop.permute.xlu1 %1279 }
 0x18d   : > { %v3883_v20 = vpack.c.bf16 %v1265_v18, %v1265_v18  ;;  %v1286_v21 = vsel %vm1281_vm3, %v1280_v19, 0 }
 0x18e   : > { %3248 = vmatpush3.bf16.xpose.msra.mxu1 %v1286_v21 }
 0x18f   : > { %1378 = vrot.lane.b32.xlu0 %v3883_v20, %s3558_s29  ;;  %1257 = vrot.lane.b32.xlu1 %v1249_v13, %s3555_s3 }
 0x190   : > { %3259 = vmatprep.subr.bf16.mxu1 %v3553_v2  ;;  %v1252_v25 = vpop.permute.xlu1 %1251 }
 0x191   : > { %v1271_v29 = vpack.c.bf16 %v1252_v25, %v1252_v25 }
 0x193   : > { %1254 = vrot.lane.b32.xlu0 %v1249_v13, %s3557_s7 }
 0x195   : > { %3250 = vmatmul.mubr.msk.bf16.vlgmr.msra.gmra.mxu1 %vm1281_vm3, %v1270_v22 }
 0x196   : > { %3261 = vmatprep.mubr.msk.bf16.mxu1 %vm3554_vm1, %v3553_v2 }
 0x1fd   : > { %v1330_v23 = vpop.permute.xlu0 %1329  ;;  %v1428_v28 = vpop.permute.xlu1 %1427 }
 0x1fe   : > { %v1335_v24 = vsel %vm1281_vm3, %v1330_v23, 0  ;;  %v1433_v31 = vsel %vm1281_vm3, %v1428_v28, 0 }
 0x1ff   : > { %3254 = vmatpush3.bf16.xpose.msra.mxu0 %v1335_v24 }
 0x200   : > { %3265 = vmatprep.subr.bf16.mxu0 %v3553_v2 }
 0x201   : > { %v1379_v26 = vpop.permute.xlu0 %1378  ;;  %v1258_v33 = vpop.permute.xlu1 %1257 }
 0x202   : > { %v1384_v27 = vsel %vm1281_vm3, %v1379_v26, 0  ;;  %v1273_v34 = vpack.c.bf16 %v1258_v33, %v1258_v33 }
 0x203   : > { %3260 = vmatpush3.bf16.xpose.msra.mxu1 %v1384_v27 }
 0x204   : > { %3271 = vmatprep.subr.bf16.mxu1 %v3553_v2 }
 0x205   : > { %v1255_v30 = vpop.permute.xlu0 %1254 }
 0x206   : > { %3256 = vmatmul.mubr.msk.bf16.vlgmr.msra.gmra.mxu0 %vm1281_vm3, %v1271_v29  ;;  %v1272_v32 = vpack.c.bf16 %v1255_v30, %v1255_v30 }
 0x207   : > { %3266 = vmatpush3.bf16.xpose.msra.mxu0 %v1433_v31  ;;  %3267 = vmatprep.mubr.msk.bf16.mxu0 %vm3554_vm1, %v3553_v2 }
 0x208   : > { %3277 = vmatprep.subr.bf16.mxu0 %v3553_v2 }
 0x20a   : > { %3262 = vmatmul.mubr.msk.bf16.vlgmr.msra.gmra.mxu1 %vm1281_vm3, %v1272_v32 }
 0x20b   : > { %3273 = vmatprep.mubr.msk.bf16.mxu1 %vm3554_vm1, %v3553_v2 }
 0x20e   : > { %3268 = vmatmul.mubr.msk.bf16.vlgmr.msra.gmra.mxu0 %vm1281_vm3, %v1273_v34 }
 0x20f   : > { %3279 = vmatprep.mubr.msk.bf16.mxu0 %vm3554_vm1, %v3553_v2 }
 0x255   : > { %v1322_v36 = vpop.f32.mrf.mxu1 }
 0x256   : > { %v1323_v37 = vadd.f32 %v1322_v36, %v1243_v35 }
 0x257   : > { %v3251_v38 = vpop.f32.mrf.mxu1 }
 0x258   : > { %v1475_v39 = vsel %vm1281_vm3, %v1323_v37, -inf }
 0x259   : > { %1476 = vmax.xlane.f32.xlu0 %v1475_v39  ;;  %v1325_v40 = vpop.f32.mrf.mxu1 }
 0x25b   : > { %v3252_v41 = vpop.f32.mrf.mxu1 }
 0x2c6   : > { %v1371_v42 = vpop.f32.mrf.mxu0 }
 0x2c7   : > { %v1372_v43 = vadd.f32 %v1371_v42, %v1243_v35 }
 0x2c8   : > { %v3257_v44 = vpop.f32.mrf.mxu0 }
 0x2c9   : > { %v1478_v45 = vsel %vm1281_vm3, %v1372_v43, -inf }
 0x2ca   : > { %1479 = vmax.xlane.f32.xlu1 %v1478_v45  ;;  %v1374_v46 = vpop.f32.mrf.mxu0  ;;  %v1420_v47 = vpop.f32.mrf.mxu1 }
 0x2cb   : > { %v1421_v48 = vadd.f32 %v1420_v47, %v1243_v35  ;;  %v3457_v46 = vld [vmem:[%s4277_s26 + $0x8] sm:$0xff]   ;;  %v3458_v47 = vld [vmem:[%s4277_s26] sm:$0xff]  }
 0x2cc   : > { %v3258_v49 = vpop.f32.mrf.mxu0  ;;  %v3263_v50 = vpop.f32.mrf.mxu1 }
 0x2cd   : > { %v1481_v51 = vsel %vm1281_vm3, %v1421_v48, -inf }
 0x2ce   : > { %v1469_v52 = vpop.f32.mrf.mxu0  ;;  %1482 = vmax.xlane.f32.xlu0 %v1481_v51  ;;  %v1423_v53 = vpop.f32.mrf.mxu1 }
 0x2cf   : > { %v1470_v54 = vadd.f32 %v1469_v52, %v1243_v35 }
 0x2d0   : > { %v3264_v55 = vpop.f32.mrf.mxu1  ;;  %v3269_v56 = vpop.f32.mrf.mxu0 }
 0x2d1   : > { %v1484_v57 = vsel %vm1281_vm3, %v1470_v54, -inf }
 0x2d2   : > { %v1472_v58 = vpop.f32.mrf.mxu0  ;;  %1485 = vmax.xlane.f32.xlu0 %v1484_v57 }
 0x2d4   : > { %v3270_v59 = vpop.f32.mrf.mxu0 }
 0x2db   : > { %1523 = vrot.lane.b32.xlu1 %v3869_v11, %s3559_s30 }
 0x2e2   : > { %v1477_v60 = vpop.xlane.xlu0 %1476 }
 0x2e3   : > { %v1487_v61 = vsub.f32 %v1323_v37, %v1477_v60 }
 0x2e5   : > { %v1491_v62 = vmul.f32 1.442695, %v1487_v61 }
 0x2e7   : > { %3471 = vpow2.f32 %v1491_v62 }
 0x2f4   : > { %v3472_v63 = vpop.eup %3471 }
 0x2f5   : > { %v1499_v0 = vsel %vm1281_vm3, %v3472_v63, 0.0 }
 0x2ff   : > { %1500 = vadd.xlane.f32.xlu1 %v1499_v0 }
 0x353   : > { %v1480_v1 = vpop.xlane.xlu1 %1479 }
 0x354   : > { %v1488_v3 = vsub.f32 %v1372_v43, %v1480_v1 }
 0x356   : > { %v1493_v5 = vmul.f32 1.442695, %v1488_v3 }
 0x357   : > { %v1524_v6 = vpop.permute.xlu1 %1523  ;;  %v1483_v7 = vpop.xlane.xlu0 %1482 }
 0x358   : > { %3473 = vpow2.f32 %v1493_v5  ;;  %v1530_v8 = vsel %vm1528_vm4, %v1524_v6, 0  ;;  %v1489_v9 = vsub.f32 %v1421_v48, %v1483_v7  ;;  %v3125_v5 = vld [vmem:[%s4279_s24] ss:$0 sm:$0xff]  ;;  %s4293_s24 = scalar_lea.vmem %s4292_s11, %s3739_s0 }
 0x359   : > { %3272 = vmatpush3.bf16.msra.mxu1 %v1530_v8 }
 0x35a   : > { %v1495_v10 = vmul.f32 1.442695, %v1489_v9  ;;  %3283 = vmatprep.subr.bf16.mxu1 %v3553_v2 }
 0x35b   : > { %v1486_v11 = vpop.xlane.xlu0 %1485 }
 0x35c   : > { %3475 = vpow2.f32 %v1495_v10  ;;  %v1490_v12 = vsub.f32 %v1470_v54, %v1486_v11 }
 0x35e   : > { %v1497_v13 = vmul.f32 1.442695, %v1490_v12 }
 0x360   : > { %3477 = vpow2.f32 %v1497_v13 }
 0x365   : > { %v3474_v14 = vpop.eup %3473 }
 0x366   : > { %v1502_v15 = vsel %vm1281_vm3, %v3474_v14, 0.0 }
 0x367   : > { %1503 = vadd.xlane.f32.xlu0 %v1502_v15 }
 0x369   : > { %v3476_v18 = vpop.eup %3475 }
 0x36a   : > { %v1505_v19 = vsel %vm1281_vm3, %v3476_v18, 0.0 }
 0x36b   : > { %1506 = vadd.xlane.f32.xlu1 %v1505_v19 }
 0x36d   : > { %v3478_v21 = vpop.eup %3477 }
 0x36e   : > { %v1508_v22 = vsel %vm1281_vm3, %v3478_v21, 0.0 }
 0x36f   : > { %1509 = vadd.xlane.f32.xlu0 %v1508_v22 }
 0x37c   : > { %1620 = vrot.lane.b32.xlu1 %v3883_v20, %s3559_s30 }
 0x380   : > { %1668 = vrot.lane.b32.xlu1 %v3875_v16, %s3559_s30 }
 0x385   : > { %1572 = vrot.lane.b32.xlu0 %v3877_v17, %s3559_s30  ;;  %s4281_s30 = scalar_lea.vmem %s4280_s5, %s3741_s10  ;;  %s4295_s5 = scalar_lea.vmem %s4294_s2, %s3739_s0 }
 0x386   : > { %v1174_v22 = vld [vmem:[%s4281_s30] sm:$0xff]  ;;  %s4286_s30 = scalar_lea.vmem %s4198_s12, %s3739_s0 }
 0x388   : > { %v1501_v23 = vpop.xlane.xlu1 %1500 }
 0x389   : > { %3479 = vrcp.f32 %v1501_v23  ;;  %v1897_v23 = vpack.c.bf16 %v1174_v22, %v1174_v22 }
 0x396   : > { %v3480_v24 = vpop.eup %3479 }
 0x397   : > { %v1512_v25 = vmul.f32 %v3480_v24, %v3472_v63  ;;  %v3461_v24 = vld [vmem:[%s3781_s1 + $0x8] sm:$0xff]  }
 0x399   : > { %v1519_v26 = vpack.c.bf16 %v1512_v25, %v1512_v25  ;;  %v3462_v25 = vld [vmem:[%s3781_s1] sm:$0xff]   ;;  %s4284_s1 = sld [smem:[#allocation19_spill]] }
 0x39b   : > { %3274 = vmatmul.mubr.msk.bf16.vlgmr.msra.gmra.mxu1 %vm1281_vm3, %v1519_v26 }
 0x39c   : > { %3285 = vmatprep.mubr.msk.bf16.mxu1 %vm3554_vm1, %v3553_v2 }
 0x39f   : > { %s4285_s6 = scalar_lea.vmem %s4284_s1, %s3739_s0 }
 0x3f0   : > { %v1504_v27 = vpop.xlane.xlu0 %1503 }
 0x3f1   : > { %3481 = vrcp.f32 %v1504_v27 }
 0x3f4   : > { %v1507_v28 = vpop.xlane.xlu1 %1506 }
 0x3f5   : > { %3483 = vrcp.f32 %v1507_v28 }
 0x3f8   : > { %v1621_v20 = vpop.permute.xlu1 %1620  ;;  %v1510_v29 = vpop.xlane.xlu0 %1509 }
 0x3f9   : > { %v1626_v16 = vsel %vm1528_vm4, %v1621_v20, 0  ;;  %3485 = vrcp.f32 %v1510_v29  ;;  %v3129_v29 = vld [vmem:[%s4283_s17] ss:$0 sm:$0xff]  ;;  %s4288_s17 = scalar_lea.vmem %s4287_s15, %s3739_s0 }
 0x3fa   : > { %3284 = vmatpush3.bf16.msra.mxu1 %v1626_v16 }
 0x3fb   : > { %3295 = vmatprep.subr.bf16.mxu1 %v3553_v2 }
 0x3fc   : > { %v1573_v17 = vpop.permute.xlu0 %1572  ;;  %v1669_v33 = vpop.permute.xlu1 %1668 }
 0x3fd   : > { %v1578_v30 = vsel %vm1528_vm4, %v1573_v17, 0  ;;  %v1674_v36 = vsel %vm1528_vm4, %v1669_v33, 0  ;;  %v3130_v17 = vld [vmem:[%s4285_s6] ss:$0 sm:$0xff] }
 0x3fe   : > { %v3482_v31 = vpop.eup %3481  ;;  %3278 = vmatpush3.bf16.msra.mxu0 %v1578_v30  ;;  %v3135_v33 = vld [vmem:[%s4286_s30] ss:$0 sm:$0xff] }
 0x3ff   : > { %3289 = vmatprep.subr.bf16.mxu0 %v3553_v2  ;;  %v1514_v32 = vmul.f32 %v3482_v31, %v3474_v14 }
 0x401   : > { %v1520_v34 = vpack.c.bf16 %v1514_v32, %v1514_v32 }
 0x402   : > { %v3484_v35 = vpop.eup %3483 }
 0x403   : > { %3280 = vmatmul.mubr.msk.bf16.vlgmr.msra.gmra.mxu0 %vm1281_vm3, %v1520_v34  ;;  %v1516_v37 = vmul.f32 %v3484_v35, %v3476_v18 }
 0x404   : > { %3290 = vmatpush3.bf16.msra.mxu0 %v1674_v36  ;;  %3291 = vmatprep.mubr.msk.bf16.mxu0 %vm3554_vm1, %v3553_v2 }
 0x405   : > { %v1521_v38 = vpack.c.bf16 %v1516_v37, %v1516_v37  ;;  %3303 = vmatprep.subr.bf16.mxu0 %v3553_v2 }
 0x406   : > { %v3486_v39 = vpop.eup %3485 }
 0x407   : > { %3286 = vmatmul.mubr.msk.bf16.vlgmr.msra.gmra.mxu1 %vm1281_vm3, %v1521_v38  ;;  %v1518_v40 = vmul.f32 %v3486_v39, %v3478_v21  ;;  %v3459_v21 = vld [vmem:[%s3790_s8 + $0x8] sm:$0xff]  }
 0x408   : > { %3299 = vmatprep.mubr.msk.bf16.mxu1 %vm3554_vm1, %v3553_v2  ;;  %3296 = vmatpush3.bf16.msra.mxu1 %v3457_v46 }
 0x409   : > { %v1522_v41 = vpack.c.bf16 %v1518_v40, %v1518_v40  ;;  %3297 = vmatprep.subr.bf16.mxu1 %v3553_v2 }
 0x40b   : > { %3292 = vmatmul.mubr.msk.bf16.vlgmr.msra.gmra.mxu0 %vm1281_vm3, %v1522_v41 }
 0x40c   : > { %3307 = vmatprep.mubr.msk.bf16.mxu0 %vm3554_vm1, %v3553_v2  ;;  %3298 = vmatpush3.bf16.msra.mxu1 %v3458_v47 }
 0x40d   : > { %3311 = vmatprep.subr.bf16.mxu1 %v3553_v2  ;;  %3304 = vmatpush3.bf16.msra.mxu0 %v3461_v24 }
 0x40e   : > { %3305 = vmatprep.subr.bf16.mxu0 %v3553_v2 }
 0x411   : > { %3306 = vmatpush3.bf16.msra.mxu0 %v3462_v25 }
 0x412   : > { %3319 = vmatprep.subr.bf16.mxu0 %v3553_v2 }
 0x45b   : > { %v1566_v42 = vpop.f32.mrf.mxu1 }
 0x45d   : > { %v3275_v43 = vpop.f32.mrf.mxu1 }
 0x45f   : > { %v1569_v44 = vpop.f32.mrf.mxu1 }
 0x460   : > { %v3131_v44 = vld [vmem:[%s4288_s17] ss:$0 sm:$0xff] }
 0x461   : > { %v3276_v45 = vpop.f32.mrf.mxu1 }
 0x4c3   : > { %v1614_v48 = vpop.f32.mrf.mxu0 }
 0x4c4   : > { %1717 = vrot.lane.b32.xlu0 %v1614_v48, %s3560_s23 }
 0x4c5   : > { %v3281_v49 = vpop.f32.mrf.mxu0 }
 0x4c7   : > { %v1617_v50 = vpop.f32.mrf.mxu0  ;;  %v1662_v51 = vpop.f32.mrf.mxu1 }
 0x4c8   : > { %1721 = vrot.lane.b32.xlu1 %v1662_v51, %s3561_s4 }
 0x4c9   : > { %v3282_v52 = vpop.f32.mrf.mxu0  ;;  %v3287_v53 = vpop.f32.mrf.mxu1 }
 0x4cb   : > { %v1665_v54 = vpop.f32.mrf.mxu1  ;;  %v1710_v55 = vpop.f32.mrf.mxu0 }
 0x4cc   : > { %1725 = vrot.lane.b32.xlu0 %v1710_v55, %s3562_s13 }
 0x4cd   : > { %v3288_v56 = vpop.f32.mrf.mxu1  ;;  %v3293_v57 = vpop.f32.mrf.mxu0 }
 0x4cf   : > { %v1713_v58 = vpop.f32.mrf.mxu0 }
 0x4d1   : > { %v3294_v59 = vpop.f32.mrf.mxu0 }
 0x536   : > { %v1718_v60 = vpop.permute.xlu0 %1717 }
 0x537   : > { %v1728_v62 = vsel %vm1281_vm3, %v1566_v42, %v1718_v60 }
 0x53a   : > { %v1722_v61 = vpop.permute.xlu1 %1721 }
 0x53b   : > { %v1730_v63 = vsel %vm1729_vm5, %v1728_v62, %v1722_v61 }
 0x53e   : > { %v1726_v0 = vpop.permute.xlu0 %1725 }
 0x53f   : > { %v1732_v1 = vsel %vm1731_vm6, %v1730_v63, %v1726_v0 }
 0x540   : > { %v1733_v3 = vpack.c.bf16 %v1732_v1, %v1732_v1 }
 0x542   : > { %3300 = vmatmul.mubr.msk.bf16.vlgmr.msra.gmra.mxu1 %vm1199_vm2, %v1733_v3 }
 0x543   : > { %3315 = vmatprep.mubr.msk.bf16.mxu1 %vm3554_vm1, %v3553_v2  ;;  %3312 = vmatpush3.bf16.msra.mxu1 %v3459_v21 }
 0x544   : > { %3313 = vmatprep.subr.bf16.mxu1 %v3553_v2 }
 0x602   : > { %v1789_v6 = vpop.f32.mrf.mxu1 }
 0x603   : > { %v1790_v7 = vadd.f32 %v3125_v5, %v1789_v6 }
 0x604   : > { %v3301_v8 = vpop.f32.mrf.mxu1 }
 0x605   : > { %v1795_v9 = vadd.f32 %v1790_v7, %v3851_v4  ;;  %v3460_v4 = vld [vmem:[%s3790_s8] sm:$0xff]  }
 0x606   : > { %v1792_v10 = vpop.f32.mrf.mxu1  ;;  %3314 = vmatpush3.bf16.msra.mxu1 %v3460_v4 }
 0x607   : > { %v1798_v11 = vsel %vm1199_vm2, %v1795_v9, 0.0  ;;  %3325 = vmatprep.subr.bf16.mxu1 %v3553_v2 }
 0x608   : > { %1799 = vadd.xlane.f32.xlu1 %v1798_v11  ;;  %v3302_v12 = vpop.f32.mrf.mxu1 }
 0x609   : > { %3316 = vmatmul.mubr.msk.bf16.vlgmr.msra.gmra.mxu1 %vm1199_vm2, %v1897_v23 }
 0x60a   : > { %3327 = vmatprep.mubr.msk.bf16.mxu1 %vm3554_vm1, %v3553_v2 }
 0x691   : > { %v1800_v13 = vpop.xlane.xlu1 %1799 }
 0x692   : > { %v1802_v14 = vmul.f32 0.03125, %v1800_v13 }
 0x694   : > { %v1803_v15 = vsub.f32 %v1795_v9, %v1802_v14 }
 0x696   : > { %v1804_v18 = vmul.f32 %v1803_v15, %v1803_v15 }
 0x698   : > { %v1805_v19 = vsel %vm1199_vm2, %v1804_v18, 0.0 }
 0x699   : > { %1806 = vadd.xlane.f32.xlu0 %v1805_v19 }
 0x6c9   : > { %v1954_v34 = vpop.f32.mrf.mxu1 }
 0x6ca   : > { %v1955_v35 = vadd.f32 %v3135_v33, %v1954_v34 }
 0x6cb   : > { %v3317_v36 = vpop.f32.mrf.mxu1 }
 0x6cc   : > { %1977 = vrot.lane.b32.xlu0 %v1955_v35, %s3556_s22  ;;  %1980 = vrot.lane.b32.xlu1 %v1955_v35, %s3557_s7  ;;  %v4010_v39 = vpack.c.bf16 %v1955_v35, %v1955_v35 }
 0x6cd   : > { %v1957_v37 = vpop.f32.mrf.mxu1 }
 0x6ce   : > { %v1998_v40 = vsel %vm1281_vm3, %v4010_v39, 0 }
 0x6cf   : > { %v3318_v38 = vpop.f32.mrf.mxu1 }
 0x6d0   : > { %1983 = vrot.lane.b32.xlu0 %v1955_v35, %s3555_s3 }
 0x722   : > { %v1807_v26 = vpop.xlane.xlu0 %1806 }
 0x723   : > { %v1808_v27 = vmul.f32 0.03125, %v1807_v26 }
 0x725   : > { %v1809_v28 = vadd.f32 1e-05, %v1808_v27 }
 0x727   : > { %3487 = vrsqrt.f32 %v1809_v28 }
 0x734   : > { %v3488_v20 = vpop.eup %3487 }
 0x735   : > { %v1811_v16 = vmul.f32 %v3488_v20, %v1803_v15 }
 0x737   : > { %v1818_v30 = vmul.f32 %v3129_v29, %v1811_v16 }
 0x739   : > { %v3995_v31 = vadd.f32 %v3130_v17, %v1818_v30 }
 0x73b   : > { %v1830_v32 = vpack.c.bf16 %v3995_v31, %v3995_v31 }
 0x73d   : > { %3308 = vmatmul.mubr.msk.bf16.vlgmr.msra.gmra.mxu0 %vm1199_vm2, %v1830_v32 }
 0x73e   : > { %3321 = vmatprep.mubr.msk.bf16.mxu0 %vm3554_vm1, %v3553_v2  ;;  %3320 = vmatpush3.bf16.xpose.msra.mxu0 %v1998_v40  ;;  %v1978_v41 = vpop.permute.xlu0 %1977  ;;  %v1981_v45 = vpop.permute.xlu1 %1980 }
 0x73f   : > { %3331 = vmatprep.subr.bf16.mxu0 %v3553_v2  ;;  %v1991_v42 = vpack.c.bf16 %v1978_v41, %v1978_v41  ;;  %v4022_v48 = vpack.c.bf16 %v1981_v45, %v1981_v45 }
 0x741   : > { %v2044_v43 = vsel %vm1281_vm3, %v1991_v42, 0  ;;  %v2090_v53 = vsel %vm1281_vm3, %v4022_v48, 0 }
 0x742   : > { %3326 = vmatpush3.bf16.xpose.msra.mxu1 %v2044_v43  ;;  %v1984_v55 = vpop.permute.xlu0 %1983 }
 0x743   : > { %3337 = vmatprep.subr.bf16.mxu1 %v3553_v2  ;;  %v4033_v56 = vpack.c.bf16 %v1984_v55, %v1984_v55 }
 0x745   : > { %v2136_v59 = vsel %vm1281_vm3, %v4033_v56, 0 }
 0x7fd   : > { %v1887_v46 = vpop.f32.mrf.mxu0 }
 0x7fe   : > { %v1888_v47 = vadd.f32 %v3131_v44, %v1887_v46 }
 0x7ff   : > { %v3309_v49 = vpop.f32.mrf.mxu0 }
 0x800   : > { %v1965_v50 = vmul.f32 0.35355338, %v1888_v47 }
 0x801   : > { %v1890_v51 = vpop.f32.mrf.mxu0 }
 0x802   : > { %v1986_v52 = vpack.c.bf16 %v1965_v50, %v1965_v50  ;;  %1967 = vrot.lane.b32.xlu1 %v1965_v50, %s3556_s22  ;;  %1973 = vrot.lane.b32.xlu0 %v1965_v50, %s3555_s3  ;;  %s4289_s22 = scalar_lea.vmem %s4200_s14, %s3739_s0  ;;  %s4298_s3 = sld [smem:[#allocation3_spill]] }
 0x803   : > { %v3310_v54 = vpop.f32.mrf.mxu0 }
 0x804   : > { %3322 = vmatmul.mubr.msk.bf16.vlgmr.msra.gmra.mxu0 %vm1281_vm3, %v1986_v52 }
 0x805   : > { %3332 = vmatpush3.bf16.xpose.msra.mxu0 %v2090_v53  ;;  %3333 = vmatprep.mubr.msk.bf16.mxu0 %vm3554_vm1, %v3553_v2 }
 0x806   : > { %1970 = vrot.lane.b32.xlu1 %v1965_v50, %s3557_s7  ;;  %3343 = vmatprep.subr.bf16.mxu0 %v3553_v2 }
 0x808   : > { %p3165_p8 = scmp.ne.s32.totalorder %s4298_s3, 1 }
 0x809   : > { %s4301_s11 = sld [smem:[#allocation31_spill]] (!%p3165_p8) }
 0x80a   : > { %s4302_s6 = sld [smem:[#allocation33_spill]] (!%p3165_p8) }
 0x874   : > { %v1968_v57 = vpop.permute.xlu1 %1967  ;;  %v1974_v62 = vpop.permute.xlu0 %1973 }
 0x875   : > { %v1987_v58 = vpack.c.bf16 %v1968_v57, %v1968_v57  ;;  %v1989_v63 = vpack.c.bf16 %v1974_v62, %v1974_v62 }
 0x877   : > { %3328 = vmatmul.mubr.msk.bf16.vlgmr.msra.gmra.mxu1 %vm1281_vm3, %v1987_v58 }
 0x878   : > { %3338 = vmatpush3.bf16.xpose.msra.mxu1 %v2136_v59  ;;  %v1971_v60 = vpop.permute.xlu1 %1970  ;;  %3339 = vmatprep.mubr.msk.bf16.mxu1 %vm3554_vm1, %v3553_v2 }
 0x879   : > { %v1988_v61 = vpack.c.bf16 %v1971_v60, %v1971_v60  ;;  %3349 = vmatprep.subr.bf16.mxu1 %v3553_v2 }
 0x87b   : > { %3334 = vmatmul.mubr.msk.bf16.vlgmr.msra.gmra.mxu0 %vm1281_vm3, %v1988_v61 }
 0x87c   : > { %3345 = vmatprep.mubr.msk.bf16.mxu0 %vm3554_vm1, %v3553_v2 }
 0x87f   : > { %3340 = vmatmul.mubr.msk.bf16.vlgmr.msra.gmra.mxu1 %vm1281_vm3, %v1989_v63 }
 0x880   : > { %3351 = vmatprep.mubr.msk.bf16.mxu1 %vm3554_vm1, %v3553_v2 }
 0x8c4   : > { %v2034_v0 = vpop.f32.mrf.mxu0 }
 0x8c5   : > { %v2178_v1 = vsel %vm1281_vm3, %v2034_v0, -inf }
 0x8c6   : > { %2179 = vmax.xlane.f32.xlu1 %v2178_v1  ;;  %v3323_v3 = vpop.f32.mrf.mxu0 }
 0x8c8   : > { %v2037_v5 = vpop.f32.mrf.mxu0 }
 0x8ca   : > { %v3324_v6 = vpop.f32.mrf.mxu0 }
 0x937   : > { %v2080_v7 = vpop.f32.mrf.mxu1 }
 0x938   : > { %v2181_v8 = vsel %vm1281_vm3, %v2080_v7, -inf }
 0x939   : > { %2182 = vmax.xlane.f32.xlu0 %v2181_v8  ;;  %v3329_v9 = vpop.f32.mrf.mxu1  ;;  %v3463_v8 = vld [vmem:[%s3799_s21 + $0x8] sm:$0xff]  }
 0x93a   : > { %v3464_v9 = vld [vmem:[%s3799_s21] sm:$0xff]  }
 0x93b   : > { %v2083_v10 = vpop.f32.mrf.mxu1  ;;  %v2126_v11 = vpop.f32.mrf.mxu0 }
 0x93c   : > { %v2184_v12 = vsel %vm1281_vm3, %v2126_v11, -inf }
 0x93d   : > { %v3335_v13 = vpop.f32.mrf.mxu0  ;;  %2185 = vmax.xlane.f32.xlu0 %v2184_v12  ;;  %v3330_v14 = vpop.f32.mrf.mxu1 }
 0x93f   : > { %v2129_v15 = vpop.f32.mrf.mxu0  ;;  %v2172_v18 = vpop.f32.mrf.mxu1 }
 0x940   : > { %v2187_v19 = vsel %vm1281_vm3, %v2172_v18, -inf }
 0x941   : > { %v3336_v21 = vpop.f32.mrf.mxu0  ;;  %2188 = vmax.xlane.f32.xlu1 %v2187_v19  ;;  %v3341_v4 = vpop.f32.mrf.mxu1 }
 0x943   : > { %v2175_v22 = vpop.f32.mrf.mxu1 }
 0x945   : > { %v3342_v23 = vpop.f32.mrf.mxu1 }
 0x94f   : > { %v2180_v24 = vpop.xlane.xlu1 %2179 }
 0x950   : > { %v2190_v25 = vsub.f32 %v2034_v0, %v2180_v24 }
 0x952   : > { %2276 = vrot.lane.b32.xlu1 %v1991_v42, %s3558_s29  ;;  %v2194_v26 = vmul.f32 1.442695, %v2190_v25 }
 0x953   : > { %2227 = vrot.lane.b32.xlu0 %v4010_v39, %s3558_s29 }
 0x954   : > { %3489 = vpow2.f32 %v2194_v26 }
 0x961   : > { %v3490_v27 = vpop.eup %3489 }
 0x962   : > { %v2202_v28 = vsel %vm1281_vm3, %v3490_v27, 0.0 }
 0x972   : > { %2203 = vadd.xlane.f32.xlu0 %v2202_v28 }
 0x9c2   : > { %v2183_v20 = vpop.xlane.xlu0 %2182 }
 0x9c3   : > { %v2191_v29 = vsub.f32 %v2080_v7, %v2183_v20 }
 0x9c5   : > { %v2196_v16 = vmul.f32 1.442695, %v2191_v29 }
 0x9c6   : > { %v2186_v17 = vpop.xlane.xlu0 %2185 }
 0x9c7   : > { %3491 = vpow2.f32 %v2196_v16  ;;  %v2192_v30 = vsub.f32 %v2126_v11, %v2186_v17  ;;  %v3147_v16 = vld [vmem:[%s4289_s22] ss:$0 sm:$0xff] }
 0x9c9   : > { %v2198_v32 = vmul.f32 1.442695, %v2192_v30 }
 0x9ca   : > { %v2228_v33 = vpop.permute.xlu0 %2227  ;;  %v2189_v34 = vpop.xlane.xlu1 %2188 }
 0x9cb   : > { %3493 = vpow2.f32 %v2198_v32  ;;  %v2233_v35 = vsel %vm1528_vm4, %v2228_v33, 0  ;;  %v2193_v36 = vsub.f32 %v2172_v18, %v2189_v34 }
 0x9cc   : > { %3344 = vmatpush3.bf16.msra.mxu0 %v2233_v35 }
 0x9cd   : > { %v2200_v37 = vmul.f32 1.442695, %v2193_v36  ;;  %3355 = vmatprep.subr.bf16.mxu0 %v3553_v2 }
 0x9ce   : > { %v2277_v38 = vpop.permute.xlu1 %2276 }
 0x9cf   : > { %3495 = vpow2.f32 %v2200_v37  ;;  %v2282_v39 = vsel %vm1528_vm4, %v2277_v38, 0 }
 0x9d0   : > { %3350 = vmatpush3.bf16.msra.mxu1 %v2282_v39 }
 0x9d1   : > { %3361 = vmatprep.subr.bf16.mxu1 %v3553_v2 }
 0x9d4   : > { %v3492_v40 = vpop.eup %3491 }
 0x9d5   : > { %v2205_v41 = vsel %vm1281_vm3, %v3492_v40, 0.0 }
 0x9d6   : > { %2206 = vadd.xlane.f32.xlu1 %v2205_v41 }
 0x9d8   : > { %v3494_v42 = vpop.eup %3493 }
 0x9d9   : > { %v2208_v43 = vsel %vm1281_vm3, %v3494_v42, 0.0 }
 0x9da   : > { %2209 = vadd.xlane.f32.xlu0 %v2208_v43  ;;  %v3466_v43 = vld [vmem:[%s3816_s9] sm:$0xff]  }
 0x9dc   : > { %v3496_v44 = vpop.eup %3495 }
 0x9dd   : > { %v2211_v45 = vsel %vm1281_vm3, %v3496_v44, 0.0 }
 0x9de   : > { %2212 = vadd.xlane.f32.xlu1 %v2211_v45 }
 0x9ef   : > { %2325 = vrot.lane.b32.xlu1 %v4022_v48, %s3558_s29 }
 0x9f0   : > { %2374 = vrot.lane.b32.xlu0 %v4033_v56, %s3558_s29  ;;  %s4290_s29 = sld [smem:[#allocation24_spill]] }
 0x9fb   : > { %v2204_v46 = vpop.xlane.xlu0 %2203 }
 0x9fc   : > { %3497 = vrcp.f32 %v2204_v46 }
 0xa09   : > { %v3498_v47 = vpop.eup %3497 }
 0xa0a   : > { %v2215_v49 = vmul.f32 %v3498_v47, %v3490_v27 }
 0xa0c   : > { %v2222_v50 = vpack.c.bf16 %v2215_v49, %v2215_v49 }
 0xa0e   : > { %3346 = vmatmul.mubr.msk.bf16.vlgmr.msra.gmra.mxu0 %vm1281_vm3, %v2222_v50 }
 0xa0f   : > { %3357 = vmatprep.mubr.msk.bf16.mxu0 %vm3554_vm1, %v3553_v2 }
 0xa5f   : > { %v2207_v51 = vpop.xlane.xlu1 %2206 }
 0xa60   : > { %3499 = vrcp.f32 %v2207_v51 }
 0xa63   : > { %v2210_v52 = vpop.xlane.xlu0 %2209 }
 0xa64   : > { %3501 = vrcp.f32 %v2210_v52  ;;  %v3152_v52 = vld [vmem:[%s4293_s24] ss:$0 sm:$0xff] }
 0xa67   : > { %v2213_v53 = vpop.xlane.xlu1 %2212  ;;  %v2375_v57 = vpop.permute.xlu0 %2374 }
 0xa68   : > { %3503 = vrcp.f32 %v2213_v53  ;;  %v2380_v60 = vsel %vm1528_vm4, %v2375_v57, 0  ;;  %v3153_v57 = vld [vmem:[%s4295_s5] ss:$0 sm:$0xff] }
 0xa6b   : > { %v2326_v48 = vpop.permute.xlu1 %2325 }
 0xa6c   : > { %v2331_v54 = vsel %vm1528_vm4, %v2326_v48, 0 }
 0xa6d   : > { %v3500_v55 = vpop.eup %3499  ;;  %3356 = vmatpush3.bf16.msra.mxu0 %v2331_v54 }
 0xa6e   : > { %v2217_v56 = vmul.f32 %v3500_v55, %v3492_v40  ;;  %3367 = vmatprep.subr.bf16.mxu0 %v3553_v2  ;;  %v3469_v55 = vld [vmem:[%s3826_s25 + $0x8] sm:$0xff]  }
 0xa70   : > { %v2223_v58 = vpack.c.bf16 %v2217_v56, %v2217_v56  ;;  %v3470_v56 = vld [vmem:[%s3826_s25] sm:$0xff]  }
 0xa71   : > { %v3502_v59 = vpop.eup %3501 }
 0xa72   : > { %3352 = vmatmul.mubr.msk.bf16.vlgmr.msra.gmra.mxu1 %vm1281_vm3, %v2223_v58  ;;  %v2219_v61 = vmul.f32 %v3502_v59, %v3494_v42  ;;  %v3465_v42 = vld [vmem:[%s3816_s9 + $0x8] sm:$0xff]  }
 0xa73   : > { %3362 = vmatpush3.bf16.msra.mxu1 %v2380_v60  ;;  %3363 = vmatprep.mubr.msk.bf16.mxu1 %vm3554_vm1, %v3553_v2 }
 0xa74   : > { %v2224_v62 = vpack.c.bf16 %v2219_v61, %v2219_v61  ;;  %3375 = vmatprep.subr.bf16.mxu1 %v3553_v2 }
 0xa75   : > { %v3504_v63 = vpop.eup %3503 }
 0xa76   : > { %3358 = vmatmul.mubr.msk.bf16.vlgmr.msra.gmra.mxu0 %vm1281_vm3, %v2224_v62  ;;  %v2221_v0 = vmul.f32 %v3504_v63, %v3496_v44  ;;  %v3468_v44 = vld [vmem:[%s3826_s25 + $0x10] sm:$0xff]  }
 0xa77   : > { %3371 = vmatprep.mubr.msk.bf16.mxu0 %vm3554_vm1, %v3553_v2  ;;  %3368 = vmatpush3.bf16.msra.mxu0 %v3463_v8 }
 0xa78   : > { %v2225_v1 = vpack.c.bf16 %v2221_v0, %v2221_v0  ;;  %3369 = vmatprep.subr.bf16.mxu0 %v3553_v2 }
 0xa7a   : > { %3364 = vmatmul.mubr.msk.bf16.vlgmr.msra.gmra.mxu1 %vm1281_vm3, %v2225_v1 }
 0xa7b   : > { %3379 = vmatprep.mubr.msk.bf16.mxu1 %vm3554_vm1, %v3553_v2  ;;  %3370 = vmatpush3.bf16.msra.mxu0 %v3464_v9 }
 0xa7c   : > { %3383 = vmatprep.subr.bf16.mxu0 %v3553_v2  ;;  %3376 = vmatpush3.bf16.msra.mxu1 %v3465_v42 }
 0xa7d   : > { %3377 = vmatprep.subr.bf16.mxu1 %v3553_v2 }
 0xa80   : > { %3378 = vmatpush3.bf16.msra.mxu1 %v3466_v43 }
 0xace   : > { %v2269_v3 = vpop.f32.mrf.mxu0 }
 0xad0   : > { %v3347_v5 = vpop.f32.mrf.mxu0 }
 0xad2   : > { %v2272_v6 = vpop.f32.mrf.mxu0 }
 0xad4   : > { %v3348_v7 = vpop.f32.mrf.mxu0 }
 0xb32   : > { %v2318_v10 = vpop.f32.mrf.mxu1 }
 0xb33   : > { %2423 = vrot.lane.b32.xlu1 %v2318_v10, %s3560_s23  ;;  %s4291_s23 = scalar_lea.vmem %s4290_s29, %s3739_s0 }
 0xb34   : > { %v3353_v11 = vpop.f32.mrf.mxu1  ;;  %v3151_v50 = vld [vmem:[%s4291_s23] ss:$0 sm:$0xff]  ;;  %s4300_s23 = sld [smem:[#allocation30_spill]] (!%p3165_p8) }
 0xb36   : > { %v2321_v12 = vpop.f32.mrf.mxu1  ;;  %v2367_v13 = vpop.f32.mrf.mxu0 }
 0xb37   : > { %2427 = vrot.lane.b32.xlu0 %v2367_v13, %s3561_s4 }
 0xb38   : > { %v3354_v14 = vpop.f32.mrf.mxu1  ;;  %v3359_v15 = vpop.f32.mrf.mxu0 }
 0xb3a   : > { %v2370_v18 = vpop.f32.mrf.mxu0  ;;  %v2416_v19 = vpop.f32.mrf.mxu1 }
 0xb3b   : > { %2431 = vrot.lane.b32.xlu1 %v2416_v19, %s3562_s13 }
 0xb3c   : > { %v3360_v21 = vpop.f32.mrf.mxu0  ;;  %v3365_v4 = vpop.f32.mrf.mxu1 }
 0xb3d   : > { %v3163_v4 = vld [vmem:[%s1157_s28] ss:$0 sm:$0xff] }
 0xb3e   : > { %v2419_v22 = vpop.f32.mrf.mxu1 }
 0xb40   : > { %v3366_v23 = vpop.f32.mrf.mxu1 }
 0xb41   : > { %v3164_v23 = vld [vmem:[%s1160_s16] ss:$0 sm:$0xff]  ;;  %s4299_s16 = sld [smem:[#allocation32_spill]] (!%p3165_p8) }
 0xba5   : > { %v2424_v24 = vpop.permute.xlu1 %2423 }
 0xba6   : > { %v2434_v26 = vsel %vm1281_vm3, %v2269_v3, %v2424_v24 }
 0xba9   : > { %v2428_v25 = vpop.permute.xlu0 %2427 }
 0xbaa   : > { %v2435_v27 = vsel %vm1729_vm5, %v2434_v26, %v2428_v25 }
 0xbad   : > { %v2432_v28 = vpop.permute.xlu1 %2431 }
 0xbae   : > { %v2436_v20 = vsel %vm1731_vm6, %v2435_v27, %v2432_v28 }
 0xbaf   : > { %v2437_v29 = vpack.c.bf16 %v2436_v20, %v2436_v20 }
 0xbb1   : > { %3372 = vmatmul.mubr.msk.bf16.vlgmr.msra.gmra.mxu0 %vm1199_vm2, %v2437_v29 }
 0xbb2   : > { %3391 = vmatprep.mubr.msk.bf16.mxu0 %vm3554_vm1, %v3553_v2 }
 0xc71   : > { %v2493_v17 = vpop.f32.mrf.mxu0 }
 0xc72   : > { %v2494_v30 = vadd.f32 %v3147_v16, %v2493_v17 }
 0xc73   : > { %v3373_v32 = vpop.f32.mrf.mxu0 }
 0xc74   : > { %v2499_v33 = vadd.f32 %v2494_v30, %v3995_v31  ;;  %v3467_v31 = vld [vmem:[%s3826_s25 + $0x18] sm:$0xff]  }
 0xc75   : > { %v2496_v34 = vpop.f32.mrf.mxu0  ;;  %3384 = vmatpush3.bf16.msra.mxu0 %v3467_v31 }
 0xc76   : > { %v2502_v35 = vsel %vm1199_vm2, %v2499_v33, 0.0  ;;  %3385 = vmatprep.subr.bf16.mxu0 %v3553_v2 }
 0xc77   : > { %2503 = vadd.xlane.f32.xlu0 %v2502_v35  ;;  %v3374_v36 = vpop.f32.mrf.mxu0 }
 0xc79   : > { %3386 = vmatpush3.bf16.msra.mxu0 %v3468_v44 }
 0xc7a   : > { %3387 = vmatprep.subr.bf16.mxu0 %v3553_v2 }
 0xc7d   : > { %3388 = vmatpush3.bf16.msra.mxu0 %v3469_v55 }
 0xc7e   : > { %3389 = vmatprep.subr.bf16.mxu0 %v3553_v2  ;;  %v3157_v2 = vld [vmem:[%s1154_s27] ss:$0 sm:$0xff] }
 0xc81   : > { %3390 = vmatpush3.bf16.msra.mxu0 %v3470_v56 }
 0xd00   : > { %v2504_v37 = vpop.xlane.xlu0 %2503 }
 0xd01   : > { %v2505_v38 = vmul.f32 0.03125, %v2504_v37 }
 0xd03   : > { %v2506_v39 = vsub.f32 %v2499_v33, %v2505_v38 }
 0xd05   : > { %v2507_v40 = vmul.f32 %v2506_v39, %v2506_v39 }
 0xd07   : > { %v2508_v41 = vsel %vm1199_vm2, %v2507_v40, 0.0 }
 0xd08   : > { %2509 = vadd.xlane.f32.xlu1 %v2508_v41 }
 0xd91   : > { %v2510_v45 = vpop.xlane.xlu1 %2509 }
 0xd92   : > { %v2511_v46 = vmul.f32 0.03125, %v2510_v45 }
 0xd94   : > { %v2512_v47 = vadd.f32 1e-05, %v2511_v46 }
 0xd96   : > { %3505 = vrsqrt.f32 %v2512_v47 }
 0xda3   : > { %v3506_v49 = vpop.eup %3505 }
 0xda4   : > { %v2514_v51 = vmul.f32 %v3506_v49, %v2506_v39 }
 0xda6   : > { %v2521_v53 = vmul.f32 %v3151_v50, %v2514_v51 }
 0xda8   : > { %v2528_v48 = vadd.f32 %v3152_v52, %v2521_v53 }
 0xdaa   : > { %v2533_v54 = vpack.c.bf16 %v2528_v48, %v2528_v48 }
 0xdac   : > { %3380 = vmatmul.mubr.msk.bf16.vlgmr.msra.gmra.mxu1 %vm1199_vm2, %v2533_v54 }
 0xe6c   : > { %v2590_v58 = vpop.f32.mrf.mxu1 }
 0xe6d   : > { %v2591_v59 = vadd.f32 %v3153_v57, %v2590_v58 }
 0xe6e   : > { %v3381_v60 = vpop.f32.mrf.mxu1 }
 0xe6f   : > { %v2596_v61 = vmax.f32 %v2591_v59, 0.0 }
 0xe70   : > { %v2593_v62 = vpop.f32.mrf.mxu1 }
 0xe71   : > { %v2605_v63 = vpack.c.bf16 %v2596_v61, %v2596_v61 }
 0xe72   : > { %v3382_v0 = vpop.f32.mrf.mxu1 }
 0xe73   : > { %3392 = vmatmul.mubr.msk.bf16.vlgmr.msra.gmra.mxu0 %vm2637_vm7, %v2605_v63 }
 0xf33   : > { %v2675_v1 = vpop.f32.mrf.mxu0 }
 0xf34   : > { %v2676_v3 = vadd.f32 %v3157_v2, %v2675_v1 }
 0xf35   : > { %v3393_v5 = vpop.f32.mrf.mxu0 }
 0xf36   : > { %v2681_v6 = vadd.f32 %v2676_v3, %v2528_v48 }
 0xf37   : > { %v2678_v7 = vpop.f32.mrf.mxu0 }
 0xf38   : > { %v2684_v8 = vsel %vm1199_vm2, %v2681_v6, 0.0 }
 0xf39   : > { %2685 = vadd.xlane.f32.xlu0 %v2684_v8  ;;  %v3394_v9 = vpop.f32.mrf.mxu0 }
 0xfc2   : > { %v2686_v10 = vpop.xlane.xlu0 %2685 }
 0xfc3   : > { %v2687_v11 = vmul.f32 0.03125, %v2686_v10 }
 0xfc5   : > { %v2688_v12 = vsub.f32 %v2681_v6, %v2687_v11 }
 0xfc7   : > { %v2689_v13 = vmul.f32 %v2688_v12, %v2688_v12 }
 0xfc9   : > { %v2690_v14 = vsel %vm1199_vm2, %v2689_v13, 0.0 }
 0xfca   : > { %2691 = vadd.xlane.f32.xlu0 %v2690_v14 }
0x1053   : > { %v2692_v15 = vpop.xlane.xlu0 %2691 }
0x1054   : > { %v2693_v18 = vmul.f32 0.03125, %v2692_v15 }
0x1056   : > { %v2694_v19 = vadd.f32 1e-05, %v2693_v18 }
0x1058   : > { %3507 = vrsqrt.f32 %v2694_v19 }
0x1065   : > { %v3508_v21 = vpop.eup %3507 }
0x1066   : > { %v2696_v22 = vmul.f32 %v3508_v21, %v2688_v12 }
0x1068   : > { %v2703_v24 = vmul.f32 %v3163_v4, %v2696_v22  ;;  %2715 = sbr.rel (%p3165_p8) target bundleno = 4714 (0x126a), region = 136 }
0x106a   : > { %v2710_v25 = vadd.f32 %v3164_v23, %v2703_v24 }
0x106c   : > { %2711 = vst.msk [vmem:[#allocation2] sm:$0xff] %vm1199_vm2, %v2710_v25 }
0x106d   : > { %v2718_v26 = vsel %vm1199_vm2, %v2710_v25, 0.0  ;;  %v3509_v17 = vld [vmem:[%s4299_s16 + $0x8] sm:$0xff]   ;;  %v3563_v30 = vmov 0.0   ;;  %vm3564_vm8 = vmmov 0   ;;  %v3510_v32 = vld [vmem:[%s4299_s16] sm:$0xff]  }
0x106e   : > { %2719 = vadd.xlane.f32.xlu0 %v2718_v26  ;;  %3395 = vmatprep.subr.bf16.mxu0 %v3563_v30  ;;  %v3166_v37 = vld [vmem:[%s4300_s23] ss:$0 sm:$0xff] }
0x106f   : > { %3399 = vmatprep.mubr.msk.bf16.mxu0 %vm3564_vm8, %v3563_v30  ;;  %3396 = vmatpush3.bf16.msra.mxu0 %v3509_v17  ;;  %v3167_v39 = vld [vmem:[%s4301_s11] ss:$0 sm:$0xff] }
0x1070   : > { %3397 = vmatprep.subr.bf16.mxu0 %v3563_v30  ;;  %v3168_v43 = vld [vmem:[%s4302_s6] ss:$0 sm:$0xff] }
0x1073   : > { %3398 = vmatpush3.bf16.msra.mxu0 %v3510_v32 }
0x10f7   : > { %v2720_v27 = vpop.xlane.xlu0 %2719 }
0x10f8   : > { %v2721_v28 = vmul.f32 0.03125, %v2720_v27 }
0x10fa   : > { %v2722_v20 = vsub.f32 %v2710_v25, %v2721_v28 }
0x10fc   : > { %v2723_v29 = vmul.f32 %v2722_v20, %v2722_v20 }
0x10fe   : > { %v2724_v16 = vsel %vm1199_vm2, %v2723_v29, 0.0 }
0x10ff   : > { %2725 = vadd.xlane.f32.xlu0 %v2724_v16 }
0x1188   : > { %v2726_v33 = vpop.xlane.xlu0 %2725 }
0x1189   : > { %v2727_v34 = vmul.f32 0.03125, %v2726_v33 }
0x118b   : > { %v2728_v35 = vadd.f32 1e-05, %v2727_v34 }
0x118d   : > { %3511 = vrsqrt.f32 %v2728_v35 }
0x119a   : > { %v3512_v36 = vpop.eup %3511 }
0x119b   : > { %v2730_v38 = vmul.f32 %v3512_v36, %v2722_v20 }
0x119d   : > { %v2737_v40 = vmul.f32 %v3166_v37, %v2730_v38 }
0x119f   : > { %v2744_v41 = vadd.f32 %v3167_v39, %v2737_v40 }
0x11a1   : > { %v2749_v42 = vpack.c.bf16 %v2744_v41, %v2744_v41 }
0x11a3   : > { %3400 = vmatmul.mubr.msk.bf16.vlgmr.msra.gmra.mxu0 %vm1199_vm2, %v2749_v42 }
0x1263   : > { %v2806_v31 = vpop.f32.mrf.mxu0 }
0x1264   : > { %v2807_v44 = vadd.f32 %v3168_v43, %v2806_v31 }
0x1265   : > { %v3401_v45 = vpop.f32.mrf.mxu0 }
0x1266   : > { %2812 = vst [vmem:[%s1164_s18] sm:$0xff] %v2807_v44 }
0x1267   : > { %v2809_v46 = vpop.f32.mrf.mxu0 }
0x1269   : > { %v3402_v47 = vpop.f32.mrf.mxu0 }
0x126a PF: > { %s4304_s8 = sld [smem:[#allocation6_spill]] }
0x126b   : > { %s4305_s7 = sld [smem:[#allocation4_spill]] }
0x126c   : > { %s4306_s4 = sld [smem:[#allocation5_spill]] }
0x126d   : > { %s4308_s30 = sld [smem:[#allocation8_spill]] }
0x1270   : > { %s37_s9 = sadd.s32 1, %s4304_s8   ;;  %s4307_s8 = sld [smem:[#allocation7_spill]] }
0x1271   : > { %p34_p9 = scmp.ge.s32.totalorder %s37_s9, 6  }
0x1273   :  { %36 = sbr.rel (!%p34_p9) target bundleno = 25 (0x19), region = 229 }

</bundles_post_ra>
